<compile_context>
chip_gen: v7x
topology: tpu7x:2x2x1
jax: 0.10.0
libtpu: 0.0.40
codegen_flags: <defaults>
</compile_context>

<pallas_src>
import jax
import jax.numpy as jnp
from jax.experimental import pallas as pl
from jax.experimental.pallas import tpu as pltpu

EPS = 1e-5
LANE = 128


def _round_up(x, m):
    return ((x + m - 1) // m) * m


def _bn_relu(h, gamma, beta):
    """Training-mode BatchNorm1d (biased batch variance) fused with ReLU.

    One-pass stats and a single fused scale/shift:
        s = gamma * rsqrt(max(E[h^2] - E[h]^2, 0) + eps)
        y = relu(h * s + (beta - E[h] * s))
    """
    mean = jnp.mean(h, axis=0, keepdims=True)
    var = jnp.maximum(jnp.mean(h * h, axis=0, keepdims=True) - mean * mean, 0.0)
    scale = gamma * jax.lax.rsqrt(var + EPS)
    shift = beta - mean * scale
    return jnp.maximum(h * scale + shift, 0.0)


def _generator_kernel(x_ref, w1_ref, g1_ref, be1_ref,
                      w2_ref, g2_ref, be2_ref, w3_ref,
                      out_ref, h1_ref):
    j = pl.program_id(1)  # h2-tile index within this core's slice

    @pl.when(j == 0)
    def _init():
        # Layer 1 (once per core): single aligned K=128 dot on the pre-packed
        # concat(noise, feature).  Linear bias dropped (cancels under
        # training-mode BatchNorm1d).
        h = jnp.dot(x_ref[...], w1_ref[...], preferred_element_type=jnp.float32)
        h = _bn_relu(h, g1_ref[...], be1_ref[...])
        h1_ref[...] = h.astype(jnp.bfloat16)
        # Layer-3 partials accumulate directly into the resident output block.
        out_ref[...] = jnp.zeros_like(out_ref)

    # Layer 2 on one tile of the (padded) 64*input_dim feature axis.
    # BN is per-feature over the batch, so tiling this axis is exact.
    h2 = jnp.dot(h1_ref[...], w2_ref[...], preferred_element_type=jnp.float32)
    h2 = _bn_relu(h2, g2_ref[...], be2_ref[...])

    # Layer 3: partial contraction over this h2 tile, accumulated in f32.
    out_ref[...] += jnp.dot(h2.astype(jnp.bfloat16), w3_ref[...],
                            preferred_element_type=jnp.float32)


def _plan_h2_tiling(h2_pad, max_tile=4096):
    """Pick (ncores, tiles_per_core, tile_size) for the padded h2 axis.

    Prefers the largest tile (<= max_tile, multiple of 128, divides h2_pad)
    whose tile count is even so the tiles can be split across 2 TensorCores;
    otherwise falls back to the largest tile with a single core slice.
    h2_pad is a multiple of 128 so a valid tile always exists.
    """
    best_even = None
    best_any = None
    t = LANE
    while t <= min(h2_pad, max_tile):
        if h2_pad % t == 0:
            best_any = t
            if (h2_pad // t) % 2 == 0:
                best_even = t
        t += LANE
    if best_even is not None:
        return 2, (h2_pad // best_even) // 2, best_even
    return 1, h2_pad // best_any, best_any


def _pack_input(noise, feature, k_pad):
    """concat(noise, feature) -> bf16, zero-padded to K = k_pad (exact: pad
    rows of w1 are zero)."""
    x = jnp.concatenate([noise, feature], axis=-1).astype(jnp.bfloat16)
    k = x.shape[1]
    if k < k_pad:
        x = jnp.pad(x, ((0, 0), (0, k_pad - k)))
    return x


def generator_forward(noise, feature, params, output_dim):
    B = noise.shape[0]
    k_pad, h1 = params["w1"].shape
    h2_pad = params["w2"].shape[1]
    out_pad = params["w3"].shape[1]            # lane-padded multiple of 128

    nc, ntj, tn2 = _plan_h2_tiling(h2_pad)
    x = _pack_input(noise, feature, k_pad)

    # VMEM budget: single-buffered residents + double-buffered per-step tiles
    # + per-core output block + scratch + headroom.
    bf, f4 = 2, 4
    resident = (B * k_pad * bf                  # x (packed input)
                + k_pad * h1 * bf               # w1
                + 2 * h1 * f4)                  # g1, be1
    per_step = (h1 * tn2 * bf                   # w2 tile
                + 2 * tn2 * f4                  # g2, be2 tiles
                + tn2 * out_pad * bf)           # w3 tile
    out_block = B * out_pad * f4
    scratch = B * h1 * bf
    vmem_limit = int(resident + 2 * per_step + 2 * out_block + scratch + (8 << 20))

    const = lambda c, j: (0, 0)
    tile_col = lambda c, j: (0, c * ntj + j)

    grid_spec = pltpu.PrefetchScalarGridSpec(
        num_scalar_prefetch=0,
        grid=(nc, ntj),
        in_specs=[
            # Resident, constant-index inputs: single-buffered.
            pl.BlockSpec((B, k_pad), const, pipeline_mode=pl.Buffered(1)),   # x
            pl.BlockSpec((k_pad, h1), const, pipeline_mode=pl.Buffered(1)),  # w1
            pl.BlockSpec((1, h1), const, pipeline_mode=pl.Buffered(1)),      # gamma1
            pl.BlockSpec((1, h1), const, pipeline_mode=pl.Buffered(1)),      # beta1
            # Streamed per-step tiles: default double-buffering.
            pl.BlockSpec((h1, tn2), tile_col),                               # w2 tile
            pl.BlockSpec((1, tn2), tile_col),                                # gamma2 tile
            pl.BlockSpec((1, tn2), tile_col),                                # beta2 tile
            pl.BlockSpec((tn2, out_pad), lambda c, j: (c * ntj + j, 0)),     # w3 tile
        ],
        # One partial-output block per core slice; resident across the h2 axis.
        out_specs=pl.BlockSpec((None, B, out_pad), lambda c, j: (c, 0, 0)),
        scratch_shapes=[
            pltpu.VMEM((B, h1), jnp.bfloat16),   # layer-1 activations (resident)
        ],
    )

    partials = pl.pallas_call(
        _generator_kernel,
        out_shape=jax.ShapeDtypeStruct((nc, B, out_pad), jnp.float32),
        grid_spec=grid_spec,
        compiler_params=pltpu.CompilerParams(
            # Core-split axis is independent -> "parallel"; the h2 axis carries
            # the layer-3 reduction -> "arbitrary".
            dimension_semantics=("parallel", "arbitrary"),
            vmem_limit_bytes=vmem_limit,
        ),
    )(x, params["w1"], params["g1"], params["be1"],
      params["w2"], params["g2"], params["be2"], params["w3"])

    out = partials.sum(axis=0) + params["b3"]
    return out[:, :output_dim]


def init_params(key, input_dim, feature_num, output_dim):
    """Synthetic init mimicking utils.initialize_weights: Linear W ~ N(0, 0.02),
    biases 0, BN gamma = 1, beta = 0.  Weights are stored in bf16 (MXU operands);
    BN params and b3 stay f32.  b1/b2 are omitted (cancel under training-mode
    BatchNorm1d).  The concat-K, h2 and output axes are zero-padded to multiples
    of 128 (exact: padded w1/w2 columns feed zero rows of w3)."""
    d_in = input_dim + feature_num
    h1 = 1024
    h2 = 64 * input_dim
    k_pad = _round_up(d_in, LANE)
    h2_pad = _round_up(h2, LANE)
    out_pad = _round_up(output_dim, LANE)

    k1, k2, k3 = jax.random.split(key, 3)
    w1 = 0.02 * jax.random.normal(k1, (d_in, h1), jnp.float32)
    w2 = 0.02 * jax.random.normal(k2, (h1, h2), jnp.float32)
    w3 = 0.02 * jax.random.normal(k3, (h2, output_dim), jnp.float32)

    w1p = jnp.zeros((k_pad, h1), jnp.float32).at[:d_in, :].set(w1)
    w2p = jnp.zeros((h1, h2_pad), jnp.float32).at[:, :h2].set(w2)
    w3p = jnp.zeros((h2_pad, out_pad), jnp.float32).at[:h2, :output_dim].set(w3)

    return {
        "w1": w1p.astype(jnp.bfloat16),
        "g1": jnp.ones((1, h1), jnp.float32),
        "be1": jnp.zeros((1, h1), jnp.float32),
        "w2": w2p.astype(jnp.bfloat16),
        "g2": jnp.ones((1, h2_pad), jnp.float32),
        "be2": jnp.zeros((1, h2_pad), jnp.float32),
        "w3": w3p.astype(jnp.bfloat16),
        "b3": jnp.zeros((1, out_pad), jnp.float32),
    }


def generator_ref(noise, feature, params, output_dim):
    """Pure-JAX reference performing the same math (bf16 MXU operands, f32 acc,
    training-mode BN, bias-free first two Linears)."""
    k_pad = params["w1"].shape[0]
    x = _pack_input(noise, feature, k_pad)
    h = jnp.dot(x, params["w1"], preferred_element_type=jnp.float32)
    h = _bn_relu(h, params["g1"], params["be1"])
    h = jnp.dot(h.astype(jnp.bfloat16), params["w2"],
                preferred_element_type=jnp.float32)
    h = _bn_relu(h, params["g2"], params["be2"])
    out = (jnp.dot(h.astype(jnp.bfloat16), params["w3"],
                   preferred_element_type=jnp.float32) + params["b3"])
    return out[:, :output_dim]


if __name__ == "__main__":
    # Small shapes consistent with the module (64*input_dim is module-defined).
    INPUT_DIM = 32      # h2 = 64*32 = 2048 -> tile 1024, split as grid (2, 1)
    FEATURE_NUM = 8
    OUTPUT_DIM = 8
    BATCH = 8           # weight-stream-bound; larger B is nearly free (see review)

    key = jax.random.PRNGKey(0)
    kp, kn, kf = jax.random.split(key, 3)

    params = init_params(kp, INPUT_DIM, FEATURE_NUM, OUTPUT_DIM)
    noise = jax.random.normal(kn, (BATCH, INPUT_DIM), jnp.float32)
    feature = jax.random.normal(kf, (BATCH, FEATURE_NUM), jnp.float32)

    out = generator_forward(noise, feature, params, OUTPUT_DIM)
    out = jax.block_until_ready(out)

    ref = generator_ref(noise, feature, params, OUTPUT_DIM)
    assert out.shape == (BATCH, OUTPUT_DIM)
    assert jnp.allclose(out, ref, rtol=5e-3, atol=5e-3), "mismatch vs reference"

    print("KERNEL_OK")
</pallas_src>

<mosaic_0001>
module attributes {stable_mosaic.version = 11 : i64} {
  func.func @_generator_kernel(%arg0: i32, %arg1: i32, %arg2: memref<8x128xbf16, #tpu.memory_space<vmem>>, %arg3: memref<128x1024xbf16, #tpu.memory_space<vmem>>, %arg4: memref<1x1024xf32, #tpu.memory_space<vmem>>, %arg5: memref<1x1024xf32, #tpu.memory_space<vmem>>, %arg6: memref<1024x1024xbf16, #tpu.memory_space<vmem>>, %arg7: memref<1x1024xf32, #tpu.memory_space<vmem>>, %arg8: memref<1x1024xf32, #tpu.memory_space<vmem>>, %arg9: memref<1024x128xbf16, #tpu.memory_space<vmem>>, %arg10: memref<1x8x128xf32, #tpu.memory_space<vmem>>, %arg11: memref<8x1024xbf16, #tpu.memory_space<vmem>>) attributes {dimension_semantics = [#tpu.dimension_semantics<parallel>, #tpu.dimension_semantics<arbitrary>], iteration_bounds = array<i64: 2, 1>, scalar_prefetch = 0 : i64, scratch_operands = 1 : i64, tpu.core_type = #tpu.core_type<tc>, window_params = [{pipeline_mode = #tpu.pipeline_mode<synchronous>, transform_indices = @transform_0, window_bounds = array<i64: 8, 128>}, {pipeline_mode = #tpu.pipeline_mode<synchronous>, transform_indices = @transform_1, window_bounds = array<i64: 128, 1024>}, {pipeline_mode = #tpu.pipeline_mode<synchronous>, transform_indices = @transform_2, window_bounds = array<i64: 1, 1024>}, {pipeline_mode = #tpu.pipeline_mode<synchronous>, transform_indices = @transform_3, window_bounds = array<i64: 1, 1024>}, {transform_indices = @transform_4, window_bounds = array<i64: 1024, 1024>}, {transform_indices = @transform_5, window_bounds = array<i64: 1, 1024>}, {transform_indices = @transform_6, window_bounds = array<i64: 1, 1024>}, {transform_indices = @transform_7, window_bounds = array<i64: 1024, 128>}, {transform_indices = @transform_8, window_bounds = array<i64: 1, 8, 128>}]} {
    %c0_i32 = arith.constant 0 : i32
    %0 = arith.cmpi eq, %arg1, %c0_i32 : i32
    %1 = arith.extui %0 : i1 to i32
    %c0_i32_0 = arith.constant 0 : i32
    %2 = arith.cmpi ne, %1, %c0_i32_0 : i32
    scf.if %2 {
      %c0_24 = arith.constant 0 : index
      %c0_25 = arith.constant 0 : index
      %42 = vector.load %arg2[%c0_24, %c0_25] : memref<8x128xbf16, #tpu.memory_space<vmem>>, vector<8x128xbf16>
      %c0_26 = arith.constant 0 : index
      %c0_27 = arith.constant 0 : index
      %43 = vector.load %arg3[%c0_26, %c0_27] : memref<128x1024xbf16, #tpu.memory_space<vmem>>, vector<128x1024xbf16>
      %cst_28 = arith.constant dense<0.000000e+00> : vector<8x1024xf32>
      %44 = tpu.matmul %42, %43, %cst_28 {dimension_numbers = #tpu.dot_dimension_numbers<[1], [0], [0], [1], [0, 0, 1, 1], [], []>} : vector<8x128xbf16>, vector<128x1024xbf16>, vector<8x1024xf32> -> vector<8x1024xf32>
      %c0_29 = arith.constant 0 : index
      %c0_30 = arith.constant 0 : index
      %45 = vector.load %arg4[%c0_29, %c0_30] : memref<1x1024xf32, #tpu.memory_space<vmem>>, vector<1x1024xf32>
      %c0_31 = arith.constant 0 : index
      %c0_32 = arith.constant 0 : index
      %46 = vector.load %arg5[%c0_31, %c0_32] : memref<1x1024xf32, #tpu.memory_space<vmem>>, vector<1x1024xf32>
      %cst_33 = arith.constant dense<0.000000e+00> : vector<1024xf32>
      %47 = vector.multi_reduction <add>, %44, %cst_33 [0] : vector<8x1024xf32> to vector<1024xf32>
      %48 = vector.shape_cast %47 : vector<1024xf32> to vector<1x1024xf32>
      %cst_34 = arith.constant 8.000000e+00 : f32
      %49 = vector.broadcast %cst_34 : f32 to vector<1x1024xf32>
      %50 = arith.divf %48, %49 : vector<1x1024xf32>
      %51 = arith.mulf %44, %44 : vector<8x1024xf32>
      %cst_35 = arith.constant dense<0.000000e+00> : vector<1024xf32>
      %52 = vector.multi_reduction <add>, %51, %cst_35 [0] : vector<8x1024xf32> to vector<1024xf32>
      %53 = vector.shape_cast %52 : vector<1024xf32> to vector<1x1024xf32>
      %cst_36 = arith.constant 8.000000e+00 : f32
      %54 = vector.broadcast %cst_36 : f32 to vector<1x1024xf32>
      %55 = arith.divf %53, %54 : vector<1x1024xf32>
      %56 = arith.mulf %50, %50 : vector<1x1024xf32>
      %57 = arith.subf %55, %56 : vector<1x1024xf32>
      %cst_37 = arith.constant 0.000000e+00 : f32
      %58 = vector.broadcast %cst_37 : f32 to vector<1x1024xf32>
      %59 = arith.maximumf %57, %58 : vector<1x1024xf32>
      %cst_38 = arith.constant 9.99999974E-6 : f32
      %60 = vector.broadcast %cst_38 : f32 to vector<1x1024xf32>
      %61 = arith.addf %59, %60 : vector<1x1024xf32>
      %62 = math.rsqrt %61 : vector<1x1024xf32>
      %63 = arith.mulf %45, %62 : vector<1x1024xf32>
      %64 = arith.mulf %50, %63 : vector<1x1024xf32>
      %65 = arith.subf %46, %64 : vector<1x1024xf32>
      %66 = vector.broadcast %63 : vector<1x1024xf32> to vector<8x1024xf32>
      %67 = arith.mulf %44, %66 : vector<8x1024xf32>
      %68 = vector.broadcast %65 : vector<1x1024xf32> to vector<8x1024xf32>
      %69 = arith.addf %67, %68 : vector<8x1024xf32>
      %cst_39 = arith.constant 0.000000e+00 : f32
      %70 = vector.broadcast %cst_39 : f32 to vector<8x1024xf32>
      %71 = arith.maximumf %69, %70 : vector<8x1024xf32>
      %72 = arith.truncf %71 : vector<8x1024xf32> to vector<8x1024xbf16>
      %c0_40 = arith.constant 0 : index
      %c0_41 = arith.constant 0 : index
      %73 = vector.load %arg11[%c0_40, %c0_41] : memref<8x1024xbf16, #tpu.memory_space<vmem>>, vector<8x1024xbf16>
      tpu.vector_store %arg11[%c0_40, %c0_41], %72 {strides = array<i32>} : memref<8x1024xbf16, #tpu.memory_space<vmem>>, vector<8x1024xbf16>,
      %cst_42 = arith.constant 0.000000e+00 : f32
      %74 = vector.broadcast %cst_42 : f32 to vector<8x128xf32>
      %c0_43 = arith.constant 0 : index
      %c0_44 = arith.constant 0 : index
      %c0_45 = arith.constant 0 : index
      %75 = vector.load %arg10[%c0_43, %c0_44, %c0_45] : memref<1x8x128xf32, #tpu.memory_space<vmem>>, vector<1x8x128xf32>
      %76 = vector.shape_cast %75 : vector<1x8x128xf32> to vector<8x128xf32>
      %77 = vector.shape_cast %74 : vector<8x128xf32> to vector<1x8x128xf32>
      tpu.vector_store %arg10[%c0_43, %c0_44, %c0_45], %77 {strides = array<i32>} : memref<1x8x128xf32, #tpu.memory_space<vmem>>, vector<1x8x128xf32>,
    } else {
    }
    %c0 = arith.constant 0 : index
    %c0_1 = arith.constant 0 : index
    %3 = vector.load %arg11[%c0, %c0_1] : memref<8x1024xbf16, #tpu.memory_space<vmem>>, vector<8x1024xbf16>
    %c0_2 = arith.constant 0 : index
    %c0_3 = arith.constant 0 : index
    %4 = vector.load %arg6[%c0_2, %c0_3] : memref<1024x1024xbf16, #tpu.memory_space<vmem>>, vector<1024x1024xbf16>
    %cst = arith.constant dense<0.000000e+00> : vector<8x1024xf32>
    %5 = tpu.matmul %3, %4, %cst {dimension_numbers = #tpu.dot_dimension_numbers<[1], [0], [0], [1], [0, 0, 1, 1], [], []>} : vector<8x1024xbf16>, vector<1024x1024xbf16>, vector<8x1024xf32> -> vector<8x1024xf32>
    %c0_4 = arith.constant 0 : index
    %c0_5 = arith.constant 0 : index
    %6 = vector.load %arg7[%c0_4, %c0_5] : memref<1x1024xf32, #tpu.memory_space<vmem>>, vector<1x1024xf32>
    %c0_6 = arith.constant 0 : index
    %c0_7 = arith.constant 0 : index
    %7 = vector.load %arg8[%c0_6, %c0_7] : memref<1x1024xf32, #tpu.memory_space<vmem>>, vector<1x1024xf32>
    %cst_8 = arith.constant dense<0.000000e+00> : vector<1024xf32>
    %8 = vector.multi_reduction <add>, %5, %cst_8 [0] : vector<8x1024xf32> to vector<1024xf32>
    %9 = vector.shape_cast %8 : vector<1024xf32> to vector<1x1024xf32>
    %cst_9 = arith.constant 8.000000e+00 : f32
    %10 = vector.broadcast %cst_9 : f32 to vector<1x1024xf32>
    %11 = arith.divf %9, %10 : vector<1x1024xf32>
    %12 = arith.mulf %5, %5 : vector<8x1024xf32>
    %cst_10 = arith.constant dense<0.000000e+00> : vector<1024xf32>
    %13 = vector.multi_reduction <add>, %12, %cst_10 [0] : vector<8x1024xf32> to vector<1024xf32>
    %14 = vector.shape_cast %13 : vector<1024xf32> to vector<1x1024xf32>
    %cst_11 = arith.constant 8.000000e+00 : f32
    %15 = vector.broadcast %cst_11 : f32 to vector<1x1024xf32>
    %16 = arith.divf %14, %15 : vector<1x1024xf32>
    %17 = arith.mulf %11, %11 : vector<1x1024xf32>
    %18 = arith.subf %16, %17 : vector<1x1024xf32>
    %cst_12 = arith.constant 0.000000e+00 : f32
    %19 = vector.broadcast %cst_12 : f32 to vector<1x1024xf32>
    %20 = arith.maximumf %18, %19 : vector<1x1024xf32>
    %cst_13 = arith.constant 9.99999974E-6 : f32
    %21 = vector.broadcast %cst_13 : f32 to vector<1x1024xf32>
    %22 = arith.addf %20, %21 : vector<1x1024xf32>
    %23 = math.rsqrt %22 : vector<1x1024xf32>
    %24 = arith.mulf %6, %23 : vector<1x1024xf32>
    %25 = arith.mulf %11, %24 : vector<1x1024xf32>
    %26 = arith.subf %7, %25 : vector<1x1024xf32>
    %27 = vector.broadcast %24 : vector<1x1024xf32> to vector<8x1024xf32>
    %28 = arith.mulf %5, %27 : vector<8x1024xf32>
    %29 = vector.broadcast %26 : vector<1x1024xf32> to vector<8x1024xf32>
    %30 = arith.addf %28, %29 : vector<8x1024xf32>
    %cst_14 = arith.constant 0.000000e+00 : f32
    %31 = vector.broadcast %cst_14 : f32 to vector<8x1024xf32>
    %32 = arith.maximumf %30, %31 : vector<8x1024xf32>
    %c0_15 = arith.constant 0 : index
    %c0_16 = arith.constant 0 : index
    %c0_17 = arith.constant 0 : index
    %33 = vector.load %arg10[%c0_15, %c0_16, %c0_17] : memref<1x8x128xf32, #tpu.memory_space<vmem>>, vector<1x8x128xf32>
    %34 = vector.shape_cast %33 : vector<1x8x128xf32> to vector<8x128xf32>
    %35 = arith.truncf %32 : vector<8x1024xf32> to vector<8x1024xbf16>
    %c0_18 = arith.constant 0 : index
    %c0_19 = arith.constant 0 : index
    %36 = vector.load %arg9[%c0_18, %c0_19] : memref<1024x128xbf16, #tpu.memory_space<vmem>>, vector<1024x128xbf16>
    %cst_20 = arith.constant dense<0.000000e+00> : vector<8x128xf32>
    %37 = tpu.matmul %35, %36, %cst_20 {dimension_numbers = #tpu.dot_dimension_numbers<[1], [0], [0], [1], [0, 0, 1, 1], [], []>} : vector<8x1024xbf16>, vector<1024x128xbf16>, vector<8x128xf32> -> vector<8x128xf32>
    %38 = arith.addf %34, %37 : vector<8x128xf32>
    %c0_21 = arith.constant 0 : index
    %c0_22 = arith.constant 0 : index
    %c0_23 = arith.constant 0 : index
    %39 = vector.load %arg10[%c0_21, %c0_22, %c0_23] : memref<1x8x128xf32, #tpu.memory_space<vmem>>, vector<1x8x128xf32>
    %40 = vector.shape_cast %39 : vector<1x8x128xf32> to vector<8x128xf32>
    %41 = vector.shape_cast %38 : vector<8x128xf32> to vector<1x8x128xf32>
    tpu.vector_store %arg10[%c0_21, %c0_22, %c0_23], %41 {strides = array<i32>} : memref<1x8x128xf32, #tpu.memory_space<vmem>>, vector<1x8x128xf32>,
    return
  }
  func.func @transform_0(%arg0: i32, %arg1: i32) -> (i32, i32) {
    %c0_i32 = arith.constant 0 : i32
    %c0_i32_0 = arith.constant 0 : i32
    %c0_i32_1 = arith.constant 0 : i32
    return %c0_i32, %c0_i32_0 : i32, i32
  }
  func.func @transform_1(%arg0: i32, %arg1: i32) -> (i32, i32) {
    %c0_i32 = arith.constant 0 : i32
    %c0_i32_0 = arith.constant 0 : i32
    %c0_i32_1 = arith.constant 0 : i32
    return %c0_i32, %c0_i32_0 : i32, i32
  }
  func.func @transform_2(%arg0: i32, %arg1: i32) -> (i32, i32) {
    %c0_i32 = arith.constant 0 : i32
    %c0_i32_0 = arith.constant 0 : i32
    %c0_i32_1 = arith.constant 0 : i32
    return %c0_i32, %c0_i32_0 : i32, i32
  }
  func.func @transform_3(%arg0: i32, %arg1: i32) -> (i32, i32) {
    %c0_i32 = arith.constant 0 : i32
    %c0_i32_0 = arith.constant 0 : i32
    %c0_i32_1 = arith.constant 0 : i32
    return %c0_i32, %c0_i32_0 : i32, i32
  }
  func.func @transform_4(%arg0: i32, %arg1: i32) -> (i32, i32) {
    %c1_i32 = arith.constant 1 : i32
    %0 = arith.muli %arg0, %c1_i32 : i32
    %1 = arith.addi %0, %arg1 : i32
    %c0_i32 = arith.constant 0 : i32
    %c0_i32_0 = arith.constant 0 : i32
    return %c0_i32, %1 : i32, i32
  }
  func.func @transform_5(%arg0: i32, %arg1: i32) -> (i32, i32) {
    %c1_i32 = arith.constant 1 : i32
    %0 = arith.muli %arg0, %c1_i32 : i32
    %1 = arith.addi %0, %arg1 : i32
    %c0_i32 = arith.constant 0 : i32
    %c0_i32_0 = arith.constant 0 : i32
    return %c0_i32, %1 : i32, i32
  }
  func.func @transform_6(%arg0: i32, %arg1: i32) -> (i32, i32) {
    %c1_i32 = arith.constant 1 : i32
    %0 = arith.muli %arg0, %c1_i32 : i32
    %1 = arith.addi %0, %arg1 : i32
    %c0_i32 = arith.constant 0 : i32
    %c0_i32_0 = arith.constant 0 : i32
    return %c0_i32, %1 : i32, i32
  }
  func.func @transform_7(%arg0: i32, %arg1: i32) -> (i32, i32) {
    %c1_i32 = arith.constant 1 : i32
    %0 = arith.muli %arg0, %c1_i32 : i32
    %1 = arith.addi %0, %arg1 : i32
    %c0_i32 = arith.constant 0 : i32
    %c0_i32_0 = arith.constant 0 : i32
    return %1, %c0_i32 : i32, i32
  }
  func.func @transform_8(%arg0: i32, %arg1: i32) -> (i32, i32, i32) {
    %c0_i32 = arith.constant 0 : i32
    %c0_i32_0 = arith.constant 0 : i32
    %c0_i32_1 = arith.constant 0 : i32
    return %arg0, %c0_i32, %c0_i32_0 : i32, i32, i32
  }
}

</mosaic_0001>

<bundles_post_ra>
// kernel: tpu_custom_call.1
= control target key start
LH: loop header
LB: loop body
LE: loop exit
PB: predicated region body
PF: predicated region fallthrough
CT: control target
= control target key end

     0   :  { %s9469_s0 = inlined_call_operand.hbm [shape: bf16[8,128], index: 0, kind: input, shape index: {}]   ;;  %s9470_s1 = inlined_call_operand.hbm [shape: bf16[128,1024], index: 1, kind: input, shape index: {}]   ;;  %s9471_s2 = inlined_call_operand.hbm [shape: f32[1,1024], index: 2, kind: input, shape index: {}]   ;;  %s9472_s3 = inlined_call_operand.hbm [shape: f32[1,1024], index: 3, kind: input, shape index: {}]   ;;  %s9473_s4 = inlined_call_operand.hbm [shape: bf16[1024,2048], index: 4, kind: input, shape index: {}]   ;;  %s9474_s5 = inlined_call_operand.hbm [shape: f32[1,2048], index: 5, kind: input, shape index: {}]   ;;  %s9475_s6 = inlined_call_operand.hbm [shape: f32[1,2048], index: 6, kind: input, shape index: {}]   ;;  %s9476_s7 = inlined_call_operand.hbm [shape: bf16[2048,128], index: 7, kind: input, shape index: {}]   ;;  %s9477_s8 = inlined_call_operand.hbm [shape: f32[2,8,128], index: 8, kind: output, shape index: {}]  }
   0x1   :  { %9502 = sst [smem:[#allocation29_spill]] %s9469_s0 }
   0x2   :  { %9503 = sst [smem:[#allocation30_spill]] %s9473_s4 }
   0x3   :  { %9504 = sst [smem:[#allocation31_spill]] %s9474_s5 }
   0x4   :  { %9505 = sst [smem:[#allocation32_spill]] %s9477_s8 }
   0x5   :  { %13 = vsyncpa [#allocation4], 0 }
   0x6   :  { %14 = vsyncpa [#allocation7], 0 }
   0x7   :  { %15 = vsyncpa [#allocation10], 0 }
   0x8   :  { %16 = vsyncpa [#allocation5], 0 }
   0x9   :  { %18 = vsyncpa [#allocation5 + $0x1], 0  ;;  %s7980_s27 = smov 0   ;;  %s7982_s28 = smov 0  }
   0xa   :  { %s7984_s29 = smov 0   ;;  %s7986_s30 = smov 0  }
   0xb   :  { %s7988_s9 = smov 0   ;;  %s7990_s10 = smov 0  }
   0xc LB: > { %9506 = sst [smem:[#allocation21_spill]] %s7897_s27  ;;  %s8011_s11 = sadd.s32 4294967295, %s7917_s10   ;;  %s7917_s10 = sphi %s7990_s10, %s24_s10   ;;  %s7913_s9 = sphi %s7988_s9, %s9573_s9   ;;  %s7909_s30 = sphi %s7986_s30, %s9572_s30   ;;  %s7905_s29 = sphi %s7984_s29, %s9568_s29   ;;  %s7901_s28 = sphi %s7982_s28, %s9571_s28   ;;  %s7897_s27 = sphi %s7980_s27, %s9570_s27  }
   0xd   : > { %9507 = sst [smem:[#allocation22_spill]] %s7905_s29  ;;  %s6532_s12 = sadd.s32 4294967294, %s7917_s10  }
   0xe   : > { %9508 = sst [smem:[#allocation23_spill]] %s7909_s30  ;;  %p136_p0 = scmp.ne.s32.totalorder %s7905_s29, %s7901_s28 }
   0xf   : > { %9509 = sst [smem:[#allocation24_spill]] %s7917_s10  ;;  %p137_p1 = scmp.eq.s32.totalorder %s7917_s10, 0 }
  0x10   : > { %p142_p2 = scmp.ne.s32.totalorder %s7901_s28, %s7897_s27  ;;  %p9480_p3 = scmp.eq.s32.totalorder %s8011_s11, 0 }
  0x11   : > { %p250_p4 = scmp.eq.s32.totalorder %s8011_s11, 1  ;;  %p8022_p5 = por %p137_p1, %p136_p0 }
  0x12   : > { %p256_p6 = scmp.eq.s32.totalorder %s6532_s12, 1  ;;  %p8028_p7 = por %p9480_p3, %p142_p2 }
  0x13   : > { %p8032_p8 = por %p250_p4, %p136_p0  ;;  %p6533_p10 = scmp.ge.s32.totalorder %s7917_s10, 1 }
  0x14   : > { %s9511_s15 = scalar_select %p8028_p7, 1, 0 }
  0x15   : > { %s9512_s16 = scalar_select %p8032_p8, 1, 0 }
  0x16   : > { %p8036_p9 = por %p256_p6, %p142_p2  ;;  %p263_p11 = scmp.lt.s32.totalorder %s7917_s10, 3 }
  0x17   : > { %9513 = sst [smem:[#allocation25_spill]] %s9512_s16  ;;  %s7919_s19 = smov [#allocation3]  }
  0x18   : > { %s9514_s17 = scalar_select %p8036_p9, 1, 0 }
  0x19   : > { %p8043_p13 = pnand %p6533_p10, %p263_p11  ;;  %s276_s20 = sshll.u32 %s7919_s19, 4  ;;  %s277_s20 = int_to_ptr.vmem [resolvable:$true] %s276_s20 }
  0x1a   : > { %9515 = sst [smem:[#allocation26_spill]] %s9514_s17  ;;  %p7429_p1 = scmp.lt.s32.totalorder %s7917_s10, 2 }
  0x1b   : > { %s9516_s18 = scalar_select %p8043_p13, 1, 0 }
  0x1c   : > { %p7395_p0 = pneg %p8043_p13  ;;  %p8052_p4 = pnand %p7429_p1, %p8022_p5 }
  0x1d   : > { %s36_s23 = sadd.s32 1, %s7913_s9  ;;  %s9520_s0 = sld [smem:[#allocation29_spill]] }
  0x1e   : > { %s9517_s21 = scalar_select %p8052_p4, 1, 0 }
  0x1f   : > { %p8058_p2 = pnand %p7395_p0, %p9480_p3  ;;  %p8063_p6 = scmp.ge.s32.totalorder %s36_s23, 2 }
  0x21   : > { %s9518_s22 = scalar_select %p8058_p2, 1, 0 }
  0x22   : > { %s9519_s24 = scalar_select %p8063_p6, 1, 0 }
  0x23   : > { %s7591_s12 = scalar_lea.hbm %s9520_s0, 64  ;;  %p8075_p10 = pneg %p8058_p2 }
  0x24   : > { %p7592_p5 = scmp.ne.s32.totalorder %s9520_s0, %s7591_s12  ;;  %p7598_p0 = scmp.lt.u32.totalorder %s7591_s12, %s9520_s0 }
  0x25   : > { %s9521_s13 = scalar_select %p8075_p10, 1, 0 }
  0x26   : > { %p7594_p11 = pnand %p8075_p10, %p7592_p5 }
  0x28   : > { %p7595_p1 = pneg %p7594_p11 }
  0x2a   : > { %p7600_p12 = pnand %p7598_p0, %p7595_p1 }
  0x2c   : > { %7603 = shalt.err (!%p7600_p12)
}
  0x2d   : > { %s7604_s25 = scalar_lea.vmem %s277_s20, 64  ;;  %p7612_p7 = scmp.lt.s32.totalorder %s277_s20, %s277_s20 }
  0x2e   : > { %p7605_p3 = scmp.ne.s32.totalorder %s277_s20, %s7604_s25  ;;  %p7613_p13 = scmp.lt.s32.totalorder %s7604_s25, %s7604_s25 }
  0x30   : > { %p7607_p9 = pnand %p7605_p3, %p8075_p10  ;;  %p7614_p4 = por %p7613_p13, %p7612_p7 }
  0x32   : > { %p7608_p8 = pneg %p7607_p9 }
  0x34   : > { %p7615_p6 = pnand %p7614_p4, %p7608_p8 }
  0x36   : > { %7618 = shalt.err (!%p7615_p6)
}
  0x37   : > { %7398 = dma.hbm_to_vmem [thread:$0]  (!%p8058_p2), %s9520_s0, 64, %s277_s20, [#allocation4]  }
  0x38   : > { %p9522_p3 = scmp.ne.s32.totalorder %s9519_s24, 0  ;;  %s322_s27 = sand.u32 1, %s7917_s10  }
  0x39   : > { %s8099_s12 = sand.u32 1, %s7905_s29   ;;  %s7217_s25 = sshll.u32 %s7913_s9, 9 }
  0x3a   : > { %s9575_s23 = smov (%p9522_p3, %s36_s23), 0  ;;  %s6539_s19 = sshll.u32 %s8099_s12, 12 }
  0x3b   : > { %9523 = sst [smem:[#allocation27_spill]] %s9575_s23  ;;  %s126_s17 = ssub.s32 %s7913_s9, %s9575_s23 }
  0x3c   : > { %p127_p7 = scmp.eq.s32.totalorder %s126_s17, 0  ;;  %s9524_s26 = sadd.s32 1, %s7905_s29 }
  0x3d   : > { %s9526_s4 = sld [smem:[#allocation30_spill]]  ;;  %s326_s24 = scalar_lea.vmem [#allocation11], %s6539_s19 }
  0x3e   : > { %s8106_s14 = scalar_select %p127_p7, %s7905_s29, %s9524_s26  }
  0x3f   : > { %s334_s17 = sshll.u32 %s326_s24, 4  ;;  %s9496_s0 = sshll.u32 %s8099_s12, 3  ;;  %s8113_s17 = int_to_ptr.vmem [resolvable:$true] %s334_s17 }
  0x40   : > { %9525 = sst [smem:[#allocation28_spill]] %s8106_s14  ;;  %s8116_s23 = scalar_lea.sflag [#allocation4], %s322_s27 }
  0x41   : > { %p9527_p9 = scmp.ne.s32.totalorder %s9517_s21, 0 }
  0x43   : > { %s8111_s20 = scalar_lea.hbm %s9526_s4, %s7217_s25  ;;  %p8122_p12 = pneg %p9527_p9 }
  0x44   : > { %s7619_s10 = scalar_lea.hbm %s8111_s20, 65536  ;;  %s7624_s19 = scalar_lea.hbm %s9526_s4, 131072 }
  0x45   : > { %p7620_p8 = scmp.ne.s32.totalorder %s8111_s20, %s7619_s10  ;;  %p7625_p6 = scmp.lt.u32.totalorder %s8111_s20, %s9526_s4 }
  0x46   : > { %s9528_s26 = scalar_select %p8122_p12, 1, 0 }
  0x47   : > { %p7622_p13 = pnand %p8122_p12, %p7620_p8  ;;  %p7626_p5 = scmp.lt.u32.totalorder %s7624_s19, %s7619_s10 }
  0x48   : > { %p7628_p1 = scmp.lt.u32.totalorder %s7619_s10, %s8111_s20 }
  0x49   : > { %p7623_p4 = pneg %p7622_p13  ;;  %p7627_p11 = por %p7626_p5, %p7625_p6 }
  0x4b   : > { %p7629_p0 = por %p7628_p1, %p7627_p11 }
  0x4d   : > { %p7630_p3 = pnand %p7629_p0, %p7623_p4 }
  0x4f   : > { %7633 = shalt.err (!%p7630_p3)
}
  0x50   : > { %s7634_s27 = scalar_lea.vmem %s8113_s17, 65536  ;;  %s7920_s8 = smov [#allocation11]  }
  0x51   : > { %p7635_p7 = scmp.ne.s32.totalorder %s8113_s17, %s7634_s27  ;;  %s7639_s16 = sshll.u32 %s7920_s8, 4  ;;  %s7640_s16 = int_to_ptr.vmem [resolvable:$false] %s7639_s16 }
  0x52   : > { %s7641_s25 = scalar_lea.vmem %s7640_s16, 131072  ;;  %p7642_p2 = scmp.lt.s32.totalorder %s8113_s17, %s7640_s16 }
  0x53   : > { %p7637_p8 = pnand %p7635_p7, %p8122_p12  ;;  %p7643_p10 = scmp.lt.s32.totalorder %s7641_s25, %s7634_s27 }
  0x55   : > { %p7638_p13 = pneg %p7637_p8  ;;  %p7644_p6 = por %p7643_p10, %p7642_p2 }
  0x57   : > { %p7645_p5 = pnand %p7644_p6, %p7638_p13 }
  0x59   : > { %7648 = shalt.err (!%p7645_p5)
}
  0x5a   : > { %s7921_s10 = smov 1024   ;;  %s9497_s19 = smov 512  }
  0x5b   : > { %s9499_s24 = smov 32   ;;  %s7218_s8 = sshll.u32 %s7913_s9, 7 }
  0x5c   : > { %7411 = dma.hbm_to_vmem [thread:$0]  (!%p9527_p9), %s8111_s20, 65536, %s8113_s17, %s8116_s23, %s7921_s10, %s9497_s19, %s9499_s24  }
  0x5d   : > { %s9529_s5 = sld [smem:[#allocation31_spill]]  ;;  %s348_s4 = scalar_lea.vmem [#allocation12], %s9496_s0 }
  0x5e   : > { %s357_s14 = sshll.u32 %s348_s4, 4  ;;  %s358_s14 = int_to_ptr.vmem [resolvable:$true] %s357_s14 }
  0x63   : > { %s8154_s25 = scalar_lea.hbm %s9529_s5, %s7218_s8  ;;  %s7654_s10 = scalar_lea.hbm %s9529_s5, 256 }
  0x64   : > { %s7649_s29 = scalar_lea.hbm %s8154_s25, 128  ;;  %p7655_p11 = scmp.lt.u32.totalorder %s8154_s25, %s9529_s5 }
  0x65   : > { %p7650_p2 = scmp.ne.s32.totalorder %s8154_s25, %s7649_s29  ;;  %p7656_p1 = scmp.lt.u32.totalorder %s7654_s10, %s7649_s29 }
  0x66   : > { %p7658_p3 = scmp.lt.u32.totalorder %s7649_s29, %s8154_s25 }
  0x67   : > { %p7652_p10 = pnand %p7650_p2, %p8122_p12  ;;  %p7657_p0 = por %p7656_p1, %p7655_p11 }
  0x69   : > { %p7653_p4 = pneg %p7652_p10  ;;  %p7659_p7 = por %p7658_p3, %p7657_p0 }
  0x6b   : > { %p7660_p8 = pnand %p7659_p7, %p7653_p4 }
  0x6d   : > { %7663 = shalt.err (!%p7660_p8)
}
  0x6e   : > { %s7664_s4 = scalar_lea.vmem %s358_s14, 128  ;;  %s7924_s0 = smov [#allocation12]  }
  0x6f   : > { %p7665_p13 = scmp.ne.s32.totalorder %s358_s14, %s7664_s4  ;;  %s7669_s19 = sshll.u32 %s7924_s0, 4  ;;  %s7670_s19 = int_to_ptr.vmem [resolvable:$false] %s7669_s19 }
  0x70   : > { %s7671_s20 = scalar_lea.vmem %s7670_s19, 256  ;;  %p7672_p2 = scmp.lt.s32.totalorder %s358_s14, %s7670_s19 }
  0x71   : > { %p7667_p6 = pnand %p7665_p13, %p8122_p12  ;;  %p7673_p10 = scmp.lt.s32.totalorder %s7671_s20, %s7664_s4 }
  0x73   : > { %p7668_p5 = pneg %p7667_p6  ;;  %p7674_p9 = por %p7673_p10, %p7672_p2 }
  0x75   : > { %p7675_p1 = pnand %p7674_p9, %p7668_p5 }
  0x77   : > { %7678 = shalt.err (!%p7675_p1)
}
  0x78   : > { %p9530_p11 = scmp.ne.s32.totalorder %s9517_s21, 0  ;;  %s7925_s29 = smov [#allocation6]  }
  0x79   : > { %s286_s17 = sshll.u32 %s7925_s29, 4  ;;  %s8181_s27 = scalar_lea.hbm %s9475_s6, %s7218_s8  ;;  %s287_s17 = int_to_ptr.vmem [resolvable:$true] %s286_s17 }
  0x7a   : > { %7414 = dma.hbm_to_vmem [thread:$0]  (!%p9530_p11), %s8154_s25, 128, %s358_s14, %s8116_s23  }
  0x7b   : > { %s7679_s4 = scalar_lea.hbm %s9470_s1, 8192  ;;  %p9531_p4 = scmp.ne.s32.totalorder %s9521_s13, 0 }
  0x7c   : > { %p7680_p9 = scmp.ne.s32.totalorder %s9470_s1, %s7679_s4  ;;  %p7686_p7 = scmp.lt.u32.totalorder %s7679_s4, %s9470_s1 }
  0x7e   : > { %p7682_p0 = pnand %p7680_p9, %p9531_p4 }
  0x80   : > { %p7683_p3 = pneg %p7682_p0 }
  0x82   : > { %p7688_p8 = pnand %p7686_p7, %p7683_p3 }
  0x84   : > { %7691 = shalt.err (!%p7688_p8)
}
  0x85   : > { %s7692_s29 = scalar_lea.vmem %s287_s17, 8192  ;;  %p7700_p2 = scmp.lt.s32.totalorder %s287_s17, %s287_s17 }
  0x86   : > { %p7693_p13 = scmp.ne.s32.totalorder %s287_s17, %s7692_s29  ;;  %p7701_p10 = scmp.lt.s32.totalorder %s7692_s29, %s7692_s29 }
  0x88   : > { %p7695_p6 = pnand %p7693_p13, %p9531_p4  ;;  %p7702_p1 = por %p7701_p10, %p7700_p2 }
  0x8a   : > { %p7696_p5 = pneg %p7695_p6 }
  0x8c   : > { %p7703_p11 = pnand %p7702_p1, %p7696_p5 }
  0x8e   : > { %7706 = shalt.err (!%p7703_p11)
}
  0x8f   : > { %p9532_p9 = scmp.ne.s32.totalorder %s9518_s22, 0  ;;  %s9533_s24 = smov 32  }
  0x90   : > { %s9534_s8 = smov 512   ;;  %s9535_s19 = sshll.u32 %s8099_s12, 3 }
  0x91   : > { %7401 = dma.hbm_to_vmem [thread:$0]  (!%p9532_p9), %s9470_s1, 8192, %s287_s17, [#allocation7], %s9534_s8, %s9534_s8, %s9533_s24  }
  0x92   : > { %s368_s16 = scalar_lea.vmem [#allocation13], %s9535_s19  ;;  %s7926_s20 = smov [#allocation8]  }
  0x93   : > { %s377_s4 = sshll.u32 %s368_s16, 4  ;;  %s300_s14 = sshll.u32 %s7926_s20, 4  ;;  %s8206_s4 = int_to_ptr.vmem [resolvable:$true] %s377_s4  ;;  %s301_s14 = int_to_ptr.vmem [resolvable:$true] %s300_s14 }
  0x94   : > { %s7707_s25 = scalar_lea.hbm %s8181_s27, 128  ;;  %s7712_s0 = scalar_lea.hbm %s9475_s6, 256 }
  0x95   : > { %p7708_p11 = scmp.ne.s32.totalorder %s8181_s27, %s7707_s25  ;;  %p7713_p7 = scmp.lt.u32.totalorder %s8181_s27, %s9475_s6 }
  0x96   : > { %p7714_p8 = scmp.lt.u32.totalorder %s7712_s0, %s7707_s25  ;;  %p7716_p6 = scmp.lt.u32.totalorder %s7707_s25, %s8181_s27 }
  0x97   : > { %p7710_p0 = pnand %p7708_p11, %p8122_p12 }
  0x98   : > { %p7715_p13 = por %p7714_p8, %p7713_p7 }
  0x99   : > { %p7711_p3 = pneg %p7710_p0 }
  0x9a   : > { %p7717_p5 = por %p7716_p6, %p7715_p13 }
  0x9c   : > { %p7718_p2 = pnand %p7717_p5, %p7711_p3 }
  0x9e   : > { %7721 = shalt.err (!%p7718_p2)
}
  0x9f   : > { %s7722_s17 = scalar_lea.vmem %s8206_s4, 128  ;;  %s7927_s24 = smov [#allocation13]  }
  0xa0   : > { %p7723_p10 = scmp.ne.s32.totalorder %s8206_s4, %s7722_s17  ;;  %s7727_s8 = sshll.u32 %s7927_s24, 4  ;;  %s7728_s8 = int_to_ptr.vmem [resolvable:$false] %s7727_s8 }
  0xa1   : > { %s7729_s5 = scalar_lea.vmem %s7728_s8, 256  ;;  %p7730_p0 = scmp.lt.s32.totalorder %s8206_s4, %s7728_s8 }
  0xa2   : > { %p7725_p1 = pnand %p7723_p10, %p8122_p12  ;;  %p7731_p9 = scmp.lt.s32.totalorder %s7729_s5, %s7722_s17 }
  0xa4   : > { %p7726_p11 = pneg %p7725_p1  ;;  %p7732_p7 = por %p7731_p9, %p7730_p0 }
  0xa6   : > { %p7733_p8 = pnand %p7732_p7, %p7726_p11 }
  0xa8   : > { %7736 = shalt.err (!%p7733_p8)
}
  0xa9   : > { %p9536_p3 = scmp.ne.s32.totalorder %s9517_s21, 0  ;;  %s7737_s16 = scalar_lea.hbm %s9471_s2, 128 }
  0xaa   : > { %p7738_p13 = scmp.ne.s32.totalorder %s9471_s2, %s7737_s16  ;;  %p7744_p5 = scmp.lt.u32.totalorder %s7737_s16, %s9471_s2 }
  0xab   : > { %7417 = dma.hbm_to_vmem [thread:$0]  (!%p9536_p3), %s8181_s27, 128, %s8206_s4, %s8116_s23  }
  0xac   : > { %p7740_p9 = pnand %p7738_p13, %p9531_p4 }
  0xae   : > { %p7741_p6 = pneg %p7740_p9 }
  0xb0   : > { %p7746_p2 = pnand %p7744_p5, %p7741_p6 }
  0xb2   : > { %7749 = shalt.err (!%p7746_p2)
}
  0xb3   : > { %s7750_s0 = scalar_lea.vmem %s301_s14, 128  ;;  %p7758_p0 = scmp.lt.s32.totalorder %s301_s14, %s301_s14 }
  0xb4   : > { %p7751_p10 = scmp.ne.s32.totalorder %s301_s14, %s7750_s0  ;;  %p7759_p7 = scmp.lt.s32.totalorder %s7750_s0, %s7750_s0 }
  0xb6   : > { %p7753_p1 = pnand %p7751_p10, %p9531_p4  ;;  %p7760_p8 = por %p7759_p7, %p7758_p0 }
  0xb8   : > { %p7754_p11 = pneg %p7753_p1 }
  0xba   : > { %p7761_p3 = pnand %p7760_p8, %p7754_p11 }
  0xbc   : > { %7764 = shalt.err (!%p7761_p3)
}
  0xbd   : > { %p9537_p13 = scmp.ne.s32.totalorder %s9518_s22, 0  ;;  %s7928_s17 = smov [#allocation9]  }
  0xbe   : > { %s311_s24 = sshll.u32 %s7928_s17, 4  ;;  %s6548_s8 = sshll.u32 %s8099_s12, 9  ;;  %s312_s24 = int_to_ptr.vmem [resolvable:$true] %s311_s24 }
  0xbf   : > { %7404 = dma.hbm_to_vmem [thread:$0]  (!%p9537_p13), %s9471_s2, 128, %s301_s14, [#allocation7]  }
  0xc0   : > { %s7765_s19 = scalar_lea.hbm %s9472_s3, 128 }
  0xc1   : > { %p7766_p3 = scmp.ne.s32.totalorder %s9472_s3, %s7765_s19  ;;  %p7772_p5 = scmp.lt.u32.totalorder %s7765_s19, %s9472_s3 }
  0xc3   : > { %p7768_p9 = pnand %p7766_p3, %p9531_p4 }
  0xc5   : > { %p7769_p6 = pneg %p7768_p9 }
  0xc7   : > { %p7774_p2 = pnand %p7772_p5, %p7769_p6 }
  0xc9   : > { %7777 = shalt.err (!%p7774_p2)
}
  0xca   : > { %s7778_s14 = scalar_lea.vmem %s312_s24, 128  ;;  %p7786_p0 = scmp.lt.s32.totalorder %s312_s24, %s312_s24 }
  0xcb   : > { %p7779_p10 = scmp.ne.s32.totalorder %s312_s24, %s7778_s14  ;;  %p7787_p7 = scmp.lt.s32.totalorder %s7778_s14, %s7778_s14 }
  0xcd   : > { %p7781_p1 = pnand %p7779_p10, %p9531_p4  ;;  %p7788_p8 = por %p7787_p7, %p7786_p0 }
  0xcf   : > { %p7782_p11 = pneg %p7781_p1 }
  0xd1   : > { %p7789_p12 = pnand %p7788_p8, %p7782_p11 }
  0xd3   : > { %7792 = shalt.err (!%p7789_p12)
}
  0xd4   : > { %7407 = dma.hbm_to_vmem [thread:$0]  (!%p9537_p13), %s9472_s3, 128, %s312_s24, [#allocation10]  }
  0xd5   : > { %s7220_s0 = sshll.u32 %s7913_s9, 13  ;;  %s388_s27 = scalar_lea.vmem [#allocation14], %s6548_s8 }
  0xd6   : > { %s396_s4 = sshll.u32 %s388_s27, 4  ;;  %s8271_s5 = scalar_lea.hbm %s9476_s7, %s7220_s0  ;;  %s8273_s4 = int_to_ptr.vmem [resolvable:$true] %s396_s4 }
  0xd7   : > { %s7793_s22 = scalar_lea.hbm %s8271_s5, 8192  ;;  %p9538_p4 = scmp.ne.s32.totalorder %s9528_s26, 0 }
  0xd8   : > { %p7794_p12 = scmp.ne.s32.totalorder %s8271_s5, %s7793_s22  ;;  %s7798_s8 = scalar_lea.hbm %s9476_s7, 16384 }
  0xd9   : > { %p7799_p13 = scmp.lt.u32.totalorder %s8271_s5, %s9476_s7  ;;  %p7800_p6 = scmp.lt.u32.totalorder %s7798_s8, %s7793_s22 }
  0xda   : > { %p7796_p3 = pnand %p7794_p12, %p9538_p4  ;;  %p7802_p2 = scmp.lt.u32.totalorder %s7793_s22, %s8271_s5 }
  0xdb   : > { %p7801_p5 = por %p7800_p6, %p7799_p13 }
  0xdc   : > { %p7797_p9 = pneg %p7796_p3 }
  0xdd   : > { %p7803_p10 = por %p7802_p2, %p7801_p5 }
  0xdf   : > { %p7804_p1 = pnand %p7803_p10, %p7797_p9 }
  0xe1   : > { %7807 = shalt.err (!%p7804_p1)
}
  0xe2   : > { %s7808_s20 = scalar_lea.vmem %s8273_s4, 8192  ;;  %s7929_s25 = smov [#allocation14]  }
  0xe3   : > { %p7809_p11 = scmp.ne.s32.totalorder %s8273_s4, %s7808_s20  ;;  %s7813_s29 = sshll.u32 %s7929_s25, 4  ;;  %s7814_s29 = int_to_ptr.vmem [resolvable:$false] %s7813_s29 }
  0xe4   : > { %s7815_s14 = scalar_lea.vmem %s7814_s29, 16384  ;;  %p7816_p8 = scmp.lt.s32.totalorder %s8273_s4, %s7814_s29 }
  0xe5   : > { %p7811_p0 = pnand %p7809_p11, %p9538_p4  ;;  %p7817_p12 = scmp.lt.s32.totalorder %s7815_s14, %s7808_s20 }
  0xe7   : > { %p7812_p7 = pneg %p7811_p0  ;;  %p7818_p3 = por %p7817_p12, %p7816_p8 }
  0xe9   : > { %p7819_p13 = pnand %p7818_p3, %p7812_p7 }
  0xeb   : > { %7822 = shalt.err (!%p7819_p13)
}
  0xec   : > { %s7930_s12 = smov 64   ;;  %s7931_s10 = smov 4  }
  0xed   : > { %p9539_p9 = scmp.ne.s32.totalorder %s9517_s21, 0  ;;  %p9540_p4 = scmp.ne.s32.totalorder %s9516_s18, 0 }
  0xee   : > { %p9541_p6 = scmp.eq.s32.totalorder (!%p9540_p4), %s8011_s11, 0 }
  0xef   : > { %7420 = dma.hbm_to_vmem [thread:$0]  (!%p9539_p9), %s8271_s5, 8192, %s8273_s4, %s8116_s23, %s7930_s12, %s7930_s12, %s7931_s10  }
  0xf0   : > { %408 = sbr.rel (%p9540_p4) target bundleno = 1623 (0x657), region = 52 }
  0xf7   : > { %7876 = dma.done.wait (%p9541_p6), [#allocation4], 64   ;;  %p9542_p5 = pmov %p9541_p6 }
  0xf9   : > { %7878 = vsyncadd (%p9542_p5), [#allocation4], 4294967232  ;;  %p9543_p2 = pmov %p9542_p5 }
  0xfb   : > { %7880 = dma.done.wait (%p9543_p2), [#allocation7], 8320   ;;  %p9544_p10 = pmov %p9543_p2 }
  0xfc   : > { %p9545_p1 = pmov %p9543_p2 }
  0xfd   : > { %7882 = vsyncadd (%p9544_p10), [#allocation7], 4294958976 }
  0xfe   : > { %7884 = dma.done.wait (%p9545_p1), [#allocation10], 128   ;;  %p9546_p11 = pmov %p9545_p1 }
  0xff   : > { %s426_s18 = sand.u32 1, %s8011_s11   ;;  %s8313_s21 = sand.u32 1, %s7901_s28  }
 0x100   : > { %7886 = vsyncadd (%p9546_p11), [#allocation10], 4294967168  ;;  %s6556_s23 = sshll.u32 %s8313_s21, 12  ;;  %s427_s26 = scalar_lea.sflag [#allocation4], %s426_s18 }
 0x101   : > { %s8316_s0 = scalar_lea.vmem [#allocation11], %s6556_s23  ;;  %p9547_p0 = scmp.ne.s32.totalorder %s9511_s15, 0 }
 0x103   : > { %7888 = dma.done.wait (%p9547_p0), %s427_s26, 73984  }
 0x104   : > { %7890 = vsyncadd (%p9547_p0), %s427_s26, 4294893312  ;;  %v7932_v0 = vmov 0   ;;  %v519_v1 = vld [vmem:[#allocation6] sm:$0xff]  ;;  %v520_v3 = vld [vmem:[#allocation6 + $0x8] sm:$0xff]  ;;  %s6559_s11 = sshll.u32 %s8313_s21, 9  ;;  %s9335_s27 = sshll.u32 %s8313_s21, 3 }
 0x105   : > { %935 = vmatprep.mubr.bf16.mxu0 %v7932_v0  ;;  %976 = vmatprep.mubr.bf16.mxu1 %v7932_v0  ;;  %v523_v2 = vld [vmem:[#allocation6 + $0x20] sm:$0xff]  ;;  %v524_v5 = vld [vmem:[#allocation6 + $0x28] sm:$0xff]  ;;  %v521_v63 = vld [vmem:[#allocation6 + $0x10] sm:$0xff]  ;;  %s9273_s15 = scalar_lea.vmem [#allocation14], %s6559_s11  ;;  %s439_s4 = scalar_lea.vmem [#allocation12], %s9335_s27 }
 0x106   : > { %v6562_v4 = vcombine.high %v519_v1, %v523_v2  ;;  %v6561_v6 = vcombine.low %v519_v1, %v523_v2  ;;  %v527_v7 = vld [vmem:[#allocation6 + $0x40] sm:$0xff]  ;;  %v6564_v9 = vcombine.high %v520_v3, %v524_v5  ;;  %v6563_v10 = vcombine.low %v520_v3, %v524_v5  ;;  %v528_v12 = vld [vmem:[#allocation6 + $0x48] sm:$0xff]  ;;  %v525_v1 = vld [vmem:[#allocation6 + $0x30] sm:$0xff]  ;;  %s448_s17 = scalar_lea.vmem [#allocation13], %s9335_s27  ;;  %s9558_s13 = sld [smem:[#allocation23_spill]] }
 0x107   : > { %v531_v8 = vld [vmem:[#allocation6 + $0x60] sm:$0xff]  ;;  %v532_v13 = vld [vmem:[#allocation6 + $0x68] sm:$0xff]  ;;  %v522_v2 = vld [vmem:[#allocation6 + $0x18] sm:$0xff]  ;;  %s9559_s5 = sld [smem:[#allocation25_spill]]  ;;  %s504_s24 = scalar_lea.vmem [#allocation15], %s9335_s27 }
 0x108   : > { %v6570_v11 = vcombine.high %v527_v7, %v531_v8  ;;  %v535_v14 = vld [vmem:[#allocation6 + $0x80] sm:$0xff]  ;;  %903 = vmatprep.subr.bf16.mxu0 %v6562_v4  ;;  %v6572_v15 = vcombine.high %v528_v12, %v532_v13  ;;  %v536_v17 = vld [vmem:[#allocation6 + $0x88] sm:$0xff]  ;;  %944 = vmatprep.subr.bf16.mxu1 %v6564_v9  ;;  %v6569_v19 = vcombine.low %v527_v7, %v531_v8  ;;  %v526_v3 = vld [vmem:[#allocation6 + $0x38] sm:$0xff]  ;;  %s6351_s30 = sshll.u32 %s504_s24, 4  ;;  %s9560_s16 = sld [smem:[#allocation32_spill]]  ;;  %s9422_s30 = int_to_ptr.vmem [resolvable:$true] %s6351_s30 }
 0x109   : > { %v539_v16 = vld [vmem:[#allocation6 + $0xa0] sm:$0xff]  ;;  %v540_v18 = vld [vmem:[#allocation6 + $0xa8] sm:$0xff]  ;;  %904 = vmatpush1.bf16.msra.mxu0 %v6561_v6  ;;  %945 = vmatpush1.bf16.msra.mxu1 %v6563_v10  ;;  %v6571_v20 = vcombine.low %v528_v12, %v532_v13  ;;  %v6566_v6 = vcombine.high %v521_v63, %v525_v1  ;;  %v6568_v7 = vcombine.high %v522_v2, %v526_v3  ;;  %v529_v8 = vld [vmem:[#allocation6 + $0x50] sm:$0xff]  ;;  %s6338_s25 = scalar_lea.sflag [#allocation5], %s8313_s21  ;;  %s7823_s29 = scalar_lea.vmem %s9422_s30, 128 }
 0x10a   : > { %905 = vmatprep.subr.bf16.mxu0 %v6570_v11  ;;  %v6578_v21 = vcombine.high %v535_v14, %v539_v16  ;;  %946 = vmatprep.subr.bf16.mxu1 %v6572_v15  ;;  %v6580_v22 = vcombine.high %v536_v17, %v540_v18  ;;  %v543_v23 = vld [vmem:[#allocation6 + $0xc0] sm:$0xff]  ;;  %v544_v25 = vld [vmem:[#allocation6 + $0xc8] sm:$0xff]  ;;  %v6577_v27 = vcombine.low %v535_v14, %v539_v16  ;;  %v533_v9 = vld [vmem:[#allocation6 + $0x70] sm:$0xff]  ;;  %p7824_p7 = scmp.ne.s32.totalorder %s9422_s30, %s7823_s29  ;;  %s7934_s14 = smov [#allocation15]  }
 0x10b   : > { %v547_v24 = vld [vmem:[#allocation6 + $0xe0] sm:$0xff]  ;;  %v548_v26 = vld [vmem:[#allocation6 + $0xe8] sm:$0xff]  ;;  %v6579_v28 = vcombine.low %v536_v17, %v540_v18  ;;  %v530_v10 = vld [vmem:[#allocation6 + $0x58] sm:$0xff]  ;;  %v6565_v13 = vcombine.low %v521_v63, %v525_v1  ;;  %v6567_v14 = vcombine.low %v522_v2, %v526_v3  ;;  %v6574_v15 = vcombine.high %v529_v8, %v533_v9  ;;  %s7827_s12 = sshll.u32 %s7934_s14, 4  ;;  %s7828_s12 = int_to_ptr.vmem [resolvable:$false] %s7827_s12 }
 0x10c   : > { %v6586_v29 = vcombine.high %v543_v23, %v547_v24  ;;  %v6588_v30 = vcombine.high %v544_v25, %v548_v26  ;;  %v551_v31 = vld [vmem:[#allocation6 + $0x100] sm:$0xff]  ;;  %v552_v33 = vld [vmem:[#allocation6 + $0x108] sm:$0xff]  ;;  %v6585_v35 = vcombine.low %v543_v23, %v547_v24  ;;  %v6587_v36 = vcombine.low %v544_v25, %v548_v26  ;;  %v534_v11 = vld [vmem:[#allocation6 + $0x78] sm:$0xff]  ;;  %s7214_s22 = sshll.u32 %s9558_s13, 7  ;;  %s7829_s10 = scalar_lea.vmem %s7828_s12, 256 }
 0x10d   : > { %906 = vmatpush1.bf16.msra.mxu0 %v6569_v19  ;;  %947 = vmatpush1.bf16.msra.mxu1 %v6571_v20  ;;  %v555_v32 = vld [vmem:[#allocation6 + $0x120] sm:$0xff]  ;;  %v556_v34 = vld [vmem:[#allocation6 + $0x128] sm:$0xff]  ;;  %v8324_v12 = vld [vmem:[#allocation3] sm:$0xf]  ;;  %v6576_v16 = vcombine.high %v530_v10, %v534_v11  ;;  %p9561_p8 = scmp.ne.s32.totalorder %s9559_s5, 0  ;;  %p7830_p13 = scmp.lt.s32.totalorder %s9422_s30, %s7828_s12 }
 0x10e   : > { %907 = vmatprep.subr.bf16.mxu0 %v6578_v21  ;;  %948 = vmatprep.subr.bf16.mxu1 %v6580_v22  ;;  %v6594_v37 = vcombine.high %v551_v31, %v555_v32  ;;  %v6596_v38 = vcombine.high %v552_v33, %v556_v34  ;;  %v559_v39 = vld [vmem:[#allocation6 + $0x140] sm:$0xff]  ;;  %v560_v41 = vld [vmem:[#allocation6 + $0x148] sm:$0xff]  ;;  %v6593_v43 = vcombine.low %v551_v31, %v555_v32  ;;  %v537_v17 = vld [vmem:[#allocation6 + $0x90] sm:$0xff]  ;;  %s9420_s20 = scalar_lea.hbm %s9560_s16, %s7214_s22  ;;  %p7831_p9 = scmp.lt.s32.totalorder %s7829_s10, %s7823_s29 }
 0x10f   : > { %v563_v40 = vld [vmem:[#allocation6 + $0x160] sm:$0xff]  ;;  %v564_v42 = vld [vmem:[#allocation6 + $0x168] sm:$0xff]  ;;  %v6595_v44 = vcombine.low %v552_v33, %v556_v34  ;;  %v541_v18 = vld [vmem:[#allocation6 + $0xb0] sm:$0xff]  ;;  %v6573_v21 = vcombine.low %v529_v8, %v533_v9  ;;  %v6575_v22 = vcombine.low %v530_v10, %v534_v11  ;;  %p7825_p12 = pnand %p7824_p7, %p9561_p8 }
 0x110   : > { %v6602_v45 = vcombine.high %v559_v39, %v563_v40  ;;  %v6604_v46 = vcombine.high %v560_v41, %v564_v42  ;;  %v567_v47 = vld [vmem:[#allocation6 + $0x180] sm:$0xff]  ;;  %v568_v49 = vld [vmem:[#allocation6 + $0x188] sm:$0xff]  ;;  %v6601_v51 = vcombine.low %v559_v39, %v563_v40  ;;  %v6603_v52 = vcombine.low %v560_v41, %v564_v42  ;;  %v538_v19 = vld [vmem:[#allocation6 + $0x98] sm:$0xff]  ;;  %p7832_p4 = por %p7831_p9, %p7830_p13 }
 0x111   : > { %908 = vmatpush1.bf16.msra.mxu0 %v6577_v27  ;;  %949 = vmatpush1.bf16.msra.mxu1 %v6579_v28  ;;  %v571_v48 = vld [vmem:[#allocation6 + $0x1a0] sm:$0xff]  ;;  %v572_v50 = vld [vmem:[#allocation6 + $0x1a8] sm:$0xff]  ;;  %v542_v20 = vld [vmem:[#allocation6 + $0xb8] sm:$0xff]  ;;  %v6582_v23 = vcombine.high %v537_v17, %v541_v18  ;;  %p7826_p3 = pneg %p7825_p12 }
 0x112   : > { %909 = vmatprep.subr.bf16.mxu0 %v6586_v29  ;;  %950 = vmatprep.subr.bf16.mxu1 %v6588_v30  ;;  %v6610_v53 = vcombine.high %v567_v47, %v571_v48  ;;  %v6612_v54 = vcombine.high %v568_v49, %v572_v50  ;;  %v575_v55 = vld [vmem:[#allocation6 + $0x1c0] sm:$0xff]  ;;  %v576_v57 = vld [vmem:[#allocation6 + $0x1c8] sm:$0xff]  ;;  %v6609_v59 = vcombine.low %v567_v47, %v571_v48  ;;  %v545_v25 = vld [vmem:[#allocation6 + $0xd0] sm:$0xff] }
 0x113   : > { %v579_v56 = vld [vmem:[#allocation6 + $0x1e0] sm:$0xff]  ;;  %v580_v58 = vld [vmem:[#allocation6 + $0x1e8] sm:$0xff]  ;;  %v6611_v60 = vcombine.low %v568_v49, %v572_v50  ;;  %v6584_v24 = vcombine.high %v538_v19, %v542_v20  ;;  %v549_v26 = vld [vmem:[#allocation6 + $0xf0] sm:$0xff]  ;;  %v6581_v29 = vcombine.low %v537_v17, %v541_v18  ;;  %v6583_v30 = vcombine.low %v538_v19, %v542_v20  ;;  %p7833_p6 = pnand %p7832_p4, %p7826_p3 }
 0x114   : > { %v6618_v61 = vcombine.high %v575_v55, %v579_v56  ;;  %v6620_v62 = vcombine.high %v576_v57, %v580_v58  ;;  %v6617_v4 = vcombine.low %v575_v55, %v579_v56  ;;  %v6619_v5 = vcombine.low %v576_v57, %v580_v58  ;;  %v546_v27 = vld [vmem:[#allocation6 + $0xd8] sm:$0xff]  ;;  %v553_v33 = vld [vmem:[#allocation6 + $0x110] sm:$0xff] }
 0x115   : > { %910 = vmatpush1.bf16.msra.mxu0 %v6585_v35  ;;  %951 = vmatpush1.bf16.msra.mxu1 %v6587_v36  ;;  %v550_v28 = vld [vmem:[#allocation6 + $0xf8] sm:$0xff]  ;;  %v6590_v31 = vcombine.high %v545_v25, %v549_v26  ;;  %v557_v34 = vld [vmem:[#allocation6 + $0x130] sm:$0xff] }
 0x116   : > { %911 = vmatprep.subr.bf16.mxu0 %v6594_v37  ;;  %952 = vmatprep.subr.bf16.mxu1 %v6596_v38  ;;  %v6592_v32 = vcombine.high %v546_v27, %v550_v28  ;;  %v554_v35 = vld [vmem:[#allocation6 + $0x118] sm:$0xff]  ;;  %v6589_v37 = vcombine.low %v545_v25, %v549_v26  ;;  %v6591_v38 = vcombine.low %v546_v27, %v550_v28  ;;  %v561_v40 = vld [vmem:[#allocation6 + $0x150] sm:$0xff] }
 0x117   : > { %v558_v36 = vld [vmem:[#allocation6 + $0x138] sm:$0xff]  ;;  %v6598_v39 = vcombine.high %v553_v33, %v557_v34  ;;  %v565_v41 = vld [vmem:[#allocation6 + $0x170] sm:$0xff] }
 0x118   : > { %v562_v42 = vld [vmem:[#allocation6 + $0x158] sm:$0xff]  ;;  %v569_v48 = vld [vmem:[#allocation6 + $0x190] sm:$0xff] }
 0x119   : > { %912 = vmatpush1.bf16.msra.mxu0 %v6593_v43  ;;  %953 = vmatpush1.bf16.msra.mxu1 %v6595_v44  ;;  %v566_v43 = vld [vmem:[#allocation6 + $0x178] sm:$0xff]  ;;  %v6597_v44 = vcombine.low %v553_v33, %v557_v34  ;;  %v573_v49 = vld [vmem:[#allocation6 + $0x1b0] sm:$0xff] }
 0x11a   : > { %913 = vmatprep.subr.bf16.mxu0 %v6602_v45  ;;  %954 = vmatprep.subr.bf16.mxu1 %v6604_v46  ;;  %v6599_v45 = vcombine.low %v554_v35, %v558_v36  ;;  %v6606_v46 = vcombine.high %v561_v40, %v565_v41  ;;  %v6608_v47 = vcombine.high %v562_v42, %v566_v43  ;;  %v570_v50 = vld [vmem:[#allocation6 + $0x198] sm:$0xff]  ;;  %v577_v56 = vld [vmem:[#allocation6 + $0x1d0] sm:$0xff] }
 0x11b   : > { %v581_v57 = vld [vmem:[#allocation6 + $0x1f0] sm:$0xff]  ;;  %v578_v58 = vld [vmem:[#allocation6 + $0x1d8] sm:$0xff] }
 0x11c   : > { %v6621_v1 = vcombine.low %v577_v56, %v581_v57  ;;  %v1503_v3 = vld [vmem:[%s8316_s0] sm:$0xff] }
 0x11d   : > { %914 = vmatpush1.bf16.msra.mxu0 %v6601_v51  ;;  %955 = vmatpush1.bf16.msra.mxu1 %v6603_v52  ;;  %v574_v51 = vld [vmem:[#allocation6 + $0x1b8] sm:$0xff]  ;;  %v6605_v52 = vcombine.low %v561_v40, %v565_v41  ;;  %v1511_v11 = vld [vmem:[%s8316_s0 + $0x40] sm:$0xff] }
 0x11e   : > { %915 = vmatprep.subr.bf16.mxu0 %v6610_v53  ;;  %956 = vmatprep.subr.bf16.mxu1 %v6612_v54  ;;  %v6607_v53 = vcombine.low %v562_v42, %v566_v43  ;;  %v6614_v54 = vcombine.high %v569_v48, %v573_v49  ;;  %v6616_v55 = vcombine.high %v570_v50, %v574_v51  ;;  %v1519_v19 = vld [vmem:[%s8316_s0 + $0x80] sm:$0xff] }
 0x11f   : > { %v1523_v20 = vld [vmem:[%s8316_s0 + $0xa0] sm:$0xff] }
 0x120   : > { %v1527_v27 = vld [vmem:[%s8316_s0 + $0xc0] sm:$0xff] }
 0x121   : > { %916 = vmatpush1.bf16.msra.mxu0 %v6609_v59  ;;  %957 = vmatpush1.bf16.msra.mxu1 %v6611_v60  ;;  %v582_v59 = vld [vmem:[#allocation6 + $0x1f8] sm:$0xff]  ;;  %v6613_v60 = vcombine.low %v569_v48, %v573_v49  ;;  %v1531_v28 = vld [vmem:[%s8316_s0 + $0xe0] sm:$0xff] }
 0x122   : > { %917 = vmatprep.subr.bf16.mxu0 %v6618_v61  ;;  %958 = vmatprep.subr.bf16.mxu1 %v6620_v62  ;;  %v6615_v61 = vcombine.low %v570_v50, %v574_v51  ;;  %v6622_v62 = vcombine.high %v577_v56, %v581_v57  ;;  %v6624_v63 = vcombine.high %v578_v58, %v582_v59  ;;  %v1543_v42 = vld [vmem:[%s8316_s0 + $0x140] sm:$0xff] }
 0x123   : > { %v6623_v2 = vcombine.low %v578_v58, %v582_v59  ;;  %v1547_v43 = vld [vmem:[%s8316_s0 + $0x160] sm:$0xff] }
 0x124   : > { %v1551_v50 = vld [vmem:[%s8316_s0 + $0x180] sm:$0xff] }
 0x125   : > { %918 = vmatpush1.bf16.msra.mxu0 %v6617_v4  ;;  %959 = vmatpush1.bf16.msra.mxu1 %v6619_v5  ;;  %v1507_v4 = vld [vmem:[%s8316_s0 + $0x20] sm:$0xff]  ;;  %v1504_v5 = vld [vmem:[%s8316_s0 + $0x8] sm:$0xff] }
 0x126   : > { %985 = vmatprep.subr.bf16.mxu0 %v6566_v6  ;;  %1026 = vmatprep.subr.bf16.mxu1 %v6568_v7  ;;  %v6638_v6 = vcombine.high %v1503_v3, %v1507_v4  ;;  %v1508_v7 = vld [vmem:[%s8316_s0 + $0x28] sm:$0xff]  ;;  %v6637_v8 = vcombine.low %v1503_v3, %v1507_v4  ;;  %v1555_v51 = vld [vmem:[%s8316_s0 + $0x1a0] sm:$0xff] }
 0x127   : > { %v6639_v9 = vcombine.low %v1504_v5, %v1508_v7  ;;  %v6640_v10 = vcombine.high %v1504_v5, %v1508_v7  ;;  %v1559_v58 = vld [vmem:[%s8316_s0 + $0x1c0] sm:$0xff]  ;;  %v1568_v5 = vld [vmem:[%s8316_s0 + $0x208] sm:$0xff] }
 0x128   : > { %936 = vmatmul.mubr.bf16.vlgmr.msra.gmra.mrb[0].mxu0 %v8324_v12  ;;  %977 = vmatmul.mubr.bf16.vlgmr.msra.gmra.mrb[0].mxu1 %v8324_v12  ;;  %v1563_v59 = vld [vmem:[%s8316_s0 + $0x1e0] sm:$0xff]  ;;  %v1572_v7 = vld [vmem:[%s8316_s0 + $0x228] sm:$0xff] }
 0x129   : > { %986 = vmatpush1.bf16.msra.mxu0 %v6565_v13  ;;  %1027 = vmatpush1.bf16.msra.mxu1 %v6567_v14  ;;  %v1515_v13 = vld [vmem:[%s8316_s0 + $0x60] sm:$0xff]  ;;  %v1512_v14 = vld [vmem:[%s8316_s0 + $0x48] sm:$0xff] }
 0x12a   : > { %987 = vmatprep.subr.bf16.mxu0 %v6574_v15  ;;  %1028 = vmatprep.subr.bf16.mxu1 %v6576_v16  ;;  %v1516_v15 = vld [vmem:[%s8316_s0 + $0x68] sm:$0xff]  ;;  %v6645_v16 = vcombine.low %v1511_v11, %v1515_v13  ;;  %v1567_v3 = vld [vmem:[%s8316_s0 + $0x200] sm:$0xff] }
 0x12b   : > { %1017 = vmatprep.mubr.bf16.mxu0 %v7932_v0  ;;  %1058 = vmatprep.mubr.bf16.mxu1 %v7932_v0  ;;  %v6600_v0 = vcombine.high %v554_v35, %v558_v36  ;;  %v6647_v17 = vcombine.low %v1512_v14, %v1516_v15  ;;  %v6648_v18 = vcombine.high %v1512_v14, %v1516_v15  ;;  %v1535_v35 = vld [vmem:[%s8316_s0 + $0x100] sm:$0xff]  ;;  %v1576_v14 = vld [vmem:[%s8316_s0 + $0x248] sm:$0xff] }
 0x12c   : > { %v1539_v36 = vld [vmem:[%s8316_s0 + $0x120] sm:$0xff]  ;;  %v1580_v15 = vld [vmem:[%s8316_s0 + $0x268] sm:$0xff] }
 0x12d   : > { %988 = vmatpush1.bf16.msra.mxu0 %v6573_v21  ;;  %1029 = vmatpush1.bf16.msra.mxu1 %v6575_v22  ;;  %v1520_v21 = vld [vmem:[%s8316_s0 + $0x88] sm:$0xff]  ;;  %v6654_v22 = vcombine.high %v1519_v19, %v1523_v20  ;;  %v1571_v4 = vld [vmem:[%s8316_s0 + $0x220] sm:$0xff] }
 0x12e   : > { %989 = vmatprep.subr.bf16.mxu0 %v6582_v23  ;;  %1030 = vmatprep.subr.bf16.mxu1 %v6584_v24  ;;  %v1524_v23 = vld [vmem:[%s8316_s0 + $0xa8] sm:$0xff]  ;;  %v6653_v24 = vcombine.low %v1519_v19, %v1523_v20  ;;  %v1583_v19 = vld [vmem:[%s8316_s0 + $0x280] sm:$0xff] }
 0x12f   : > { %v6655_v25 = vcombine.low %v1520_v21, %v1524_v23  ;;  %v6656_v26 = vcombine.high %v1520_v21, %v1524_v23  ;;  %v1587_v20 = vld [vmem:[%s8316_s0 + $0x2a0] sm:$0xff]  ;;  %v1588_v23 = vld [vmem:[%s8316_s0 + $0x2a8] sm:$0xff] }
 0x130   : > { %v6718_v21 = vcombine.high %v1583_v19, %v1587_v20 }
 0x131   : > { %990 = vmatpush1.bf16.msra.mxu0 %v6581_v29  ;;  %1031 = vmatpush1.bf16.msra.mxu1 %v6583_v30  ;;  %v1528_v29 = vld [vmem:[%s8316_s0 + $0xc8] sm:$0xff]  ;;  %v6662_v30 = vcombine.high %v1527_v27, %v1531_v28 }
 0x132   : > { %991 = vmatprep.subr.bf16.mxu0 %v6590_v31  ;;  %1032 = vmatprep.subr.bf16.mxu1 %v6592_v32  ;;  %v1532_v31 = vld [vmem:[%s8316_s0 + $0xe8] sm:$0xff]  ;;  %v6661_v32 = vcombine.low %v1527_v27, %v1531_v28  ;;  %v1591_v27 = vld [vmem:[%s8316_s0 + $0x2c0] sm:$0xff] }
 0x133   : > { %v6663_v33 = vcombine.low %v1528_v29, %v1532_v31  ;;  %v6664_v34 = vcombine.high %v1528_v29, %v1532_v31  ;;  %v1595_v28 = vld [vmem:[%s8316_s0 + $0x2e0] sm:$0xff]  ;;  %v1592_v29 = vld [vmem:[%s8316_s0 + $0x2c8] sm:$0xff] }
 0x134   : > { %v1596_v31 = vld [vmem:[%s8316_s0 + $0x2e8] sm:$0xff] }
 0x135   : > { %992 = vmatpush1.bf16.msra.mxu0 %v6589_v37  ;;  %1033 = vmatpush1.bf16.msra.mxu1 %v6591_v38  ;;  %v1536_v37 = vld [vmem:[%s8316_s0 + $0x108] sm:$0xff]  ;;  %v6670_v38 = vcombine.high %v1535_v35, %v1539_v36 }
 0x136   : > { %993 = vmatprep.subr.bf16.mxu0 %v6598_v39  ;;  %1034 = vmatprep.subr.bf16.mxu1 %v6600_v0  ;;  %v1540_v39 = vld [vmem:[%s8316_s0 + $0x128] sm:$0xff]  ;;  %v6669_v0 = vcombine.low %v1535_v35, %v1539_v36  ;;  %v1599_v35 = vld [vmem:[%s8316_s0 + $0x300] sm:$0xff] }
 0x137   : > { %v6671_v40 = vcombine.low %v1536_v37, %v1540_v39  ;;  %v6672_v41 = vcombine.high %v1536_v37, %v1540_v39  ;;  %v1603_v36 = vld [vmem:[%s8316_s0 + $0x320] sm:$0xff]  ;;  %v1600_v37 = vld [vmem:[%s8316_s0 + $0x308] sm:$0xff] }
 0x138   : > { %v1604_v39 = vld [vmem:[%s8316_s0 + $0x328] sm:$0xff] }
 0x139   : > { %994 = vmatpush1.bf16.msra.mxu0 %v6597_v44  ;;  %1035 = vmatpush1.bf16.msra.mxu1 %v6599_v45  ;;  %v1544_v44 = vld [vmem:[%s8316_s0 + $0x148] sm:$0xff]  ;;  %v6678_v45 = vcombine.high %v1543_v42, %v1547_v43 }
 0x13a   : > { %995 = vmatprep.subr.bf16.mxu0 %v6606_v46  ;;  %1036 = vmatprep.subr.bf16.mxu1 %v6608_v47  ;;  %v1548_v46 = vld [vmem:[%s8316_s0 + $0x168] sm:$0xff]  ;;  %v6677_v47 = vcombine.low %v1543_v42, %v1547_v43  ;;  %v1607_v42 = vld [vmem:[%s8316_s0 + $0x340] sm:$0xff] }
 0x13b   : > { %v6679_v48 = vcombine.low %v1544_v44, %v1548_v46  ;;  %v6680_v49 = vcombine.high %v1544_v44, %v1548_v46  ;;  %v1611_v43 = vld [vmem:[%s8316_s0 + $0x360] sm:$0xff]  ;;  %v1608_v44 = vld [vmem:[%s8316_s0 + $0x348] sm:$0xff] }
 0x13c   : > { %v1612_v46 = vld [vmem:[%s8316_s0 + $0x368] sm:$0xff] }
 0x13d   : > { %996 = vmatpush1.bf16.msra.mxu0 %v6605_v52  ;;  %1037 = vmatpush1.bf16.msra.mxu1 %v6607_v53  ;;  %v1552_v52 = vld [vmem:[%s8316_s0 + $0x188] sm:$0xff]  ;;  %v6686_v53 = vcombine.high %v1551_v50, %v1555_v51 }
 0x13e   : > { %997 = vmatprep.subr.bf16.mxu0 %v6614_v54  ;;  %1038 = vmatprep.subr.bf16.mxu1 %v6616_v55  ;;  %v1556_v54 = vld [vmem:[%s8316_s0 + $0x1a8] sm:$0xff]  ;;  %v6685_v55 = vcombine.low %v1551_v50, %v1555_v51  ;;  %v1615_v50 = vld [vmem:[%s8316_s0 + $0x380] sm:$0xff] }
 0x13f   : > { %v6687_v56 = vcombine.low %v1552_v52, %v1556_v54  ;;  %v6688_v57 = vcombine.high %v1552_v52, %v1556_v54  ;;  %v1619_v51 = vld [vmem:[%s8316_s0 + $0x3a0] sm:$0xff]  ;;  %v1616_v52 = vld [vmem:[%s8316_s0 + $0x388] sm:$0xff] }
 0x140   : > { %v1620_v54 = vld [vmem:[%s8316_s0 + $0x3a8] sm:$0xff] }
 0x141   : > { %998 = vmatpush1.bf16.msra.mxu0 %v6613_v60  ;;  %1039 = vmatpush1.bf16.msra.mxu1 %v6615_v61  ;;  %v1560_v60 = vld [vmem:[%s8316_s0 + $0x1c8] sm:$0xff]  ;;  %v6694_v61 = vcombine.high %v1559_v58, %v1563_v59 }
 0x142   : > { %999 = vmatprep.subr.bf16.mxu0 %v6622_v62  ;;  %1040 = vmatprep.subr.bf16.mxu1 %v6624_v63  ;;  %v1564_v62 = vld [vmem:[%s8316_s0 + $0x1e8] sm:$0xff]  ;;  %v6693_v63 = vcombine.low %v1559_v58, %v1563_v59  ;;  %v1623_v58 = vld [vmem:[%s8316_s0 + $0x3c0] sm:$0xff] }
 0x143   : > { %v1627_v59 = vld [vmem:[%s8316_s0 + $0x3e0] sm:$0xff] }
 0x145   : > { %1000 = vmatpush1.bf16.msra.mxu0 %v6621_v1  ;;  %1041 = vmatpush1.bf16.msra.mxu1 %v6623_v2  ;;  %v6695_v1 = vcombine.low %v1560_v60, %v1564_v62  ;;  %v6696_v2 = vcombine.high %v1560_v60, %v1564_v62  ;;  %v1624_v60 = vld [vmem:[%s8316_s0 + $0x3c8] sm:$0xff]  ;;  %v6758_v62 = vcombine.high %v1623_v58, %v1627_v59 }
 0x146   : > { %4603 = vmatprep.subr.bf16.mxu0 %v6638_v6  ;;  %4767 = vmatprep.subr.bf16.mxu1 %v6640_v10  ;;  %v6702_v6 = vcombine.high %v1567_v3, %v1571_v4  ;;  %v6704_v10 = vcombine.high %v1568_v5, %v1572_v7 }
 0x148   : > { %1018 = vmatmul.mubr.bf16.vlgmr.msra.gmra.mrb[4].mxu0 %v8324_v12  ;;  %1059 = vmatmul.mubr.bf16.vlgmr.msra.gmra.mrb[4].mxu1 %v8324_v12  ;;  %v6646_v12 = vcombine.high %v1511_v11, %v1515_v13  ;;  %v1575_v11 = vld [vmem:[%s8316_s0 + $0x240] sm:$0xff] }
 0x149   : > { %4604 = vmatpush1.bf16.msra.mxu0 %v6637_v8  ;;  %4768 = vmatpush1.bf16.msra.mxu1 %v6639_v9  ;;  %v6701_v8 = vcombine.low %v1567_v3, %v1571_v4  ;;  %v6703_v9 = vcombine.low %v1568_v5, %v1572_v7  ;;  %v1579_v13 = vld [vmem:[%s8316_s0 + $0x260] sm:$0xff]  ;;  %v8403_v5 = vld [vmem:[%s8316_s0 + $0x408] sm:$0xff] }
 0x14a   : > { %4605 = vmatprep.subr.bf16.mxu0 %v6646_v12  ;;  %4769 = vmatprep.subr.bf16.mxu1 %v6648_v18  ;;  %v6710_v12 = vcombine.high %v1575_v11, %v1579_v13  ;;  %v6712_v18 = vcombine.high %v1576_v14, %v1580_v15  ;;  %v8397_v3 = vld [vmem:[%s8316_s0 + $0x400] sm:$0xff]  ;;  %v8408_v7 = vld [vmem:[%s8316_s0 + $0x428] sm:$0xff] }
 0x14b   : > { %v8400_v4 = vld [vmem:[%s8316_s0 + $0x420] sm:$0xff] }
 0x14d   : > { %4606 = vmatpush1.bf16.msra.mxu0 %v6645_v16  ;;  %4770 = vmatpush1.bf16.msra.mxu1 %v6647_v17  ;;  %v6709_v16 = vcombine.low %v1575_v11, %v1579_v13  ;;  %v6711_v17 = vcombine.low %v1576_v14, %v1580_v15 }
 0x14e   : > { %4607 = vmatprep.subr.bf16.mxu0 %v6654_v22  ;;  %4771 = vmatprep.subr.bf16.mxu1 %v6656_v26  ;;  %v1584_v22 = vld [vmem:[%s8316_s0 + $0x288] sm:$0xff] }
 0x14f   : > { %v6720_v26 = vcombine.high %v1584_v22, %v1588_v23 }
 0x151   : > { %4608 = vmatpush1.bf16.msra.mxu0 %v6653_v24  ;;  %4772 = vmatpush1.bf16.msra.mxu1 %v6655_v25  ;;  %v6717_v24 = vcombine.low %v1583_v19, %v1587_v20  ;;  %v6719_v25 = vcombine.low %v1584_v22, %v1588_v23 }
 0x152   : > { %4609 = vmatprep.subr.bf16.mxu0 %v6662_v30  ;;  %4773 = vmatprep.subr.bf16.mxu1 %v6664_v34  ;;  %v6726_v30 = vcombine.high %v1591_v27, %v1595_v28  ;;  %v6728_v34 = vcombine.high %v1592_v29, %v1596_v31 }
 0x155   : > { %4610 = vmatpush1.bf16.msra.mxu0 %v6661_v32  ;;  %4774 = vmatpush1.bf16.msra.mxu1 %v6663_v33  ;;  %v6725_v32 = vcombine.low %v1591_v27, %v1595_v28  ;;  %v6727_v33 = vcombine.low %v1592_v29, %v1596_v31 }
 0x156   : > { %4611 = vmatprep.subr.bf16.mxu0 %v6670_v38  ;;  %4775 = vmatprep.subr.bf16.mxu1 %v6672_v41  ;;  %v6734_v38 = vcombine.high %v1599_v35, %v1603_v36  ;;  %v6736_v41 = vcombine.high %v1600_v37, %v1604_v39 }
 0x159   : > { %4612 = vmatpush1.bf16.msra.mxu0 %v6669_v0  ;;  %4776 = vmatpush1.bf16.msra.mxu1 %v6671_v40  ;;  %v6733_v0 = vcombine.low %v1599_v35, %v1603_v36  ;;  %v6735_v40 = vcombine.low %v1600_v37, %v1604_v39 }
 0x15a   : > { %4613 = vmatprep.subr.bf16.mxu0 %v6678_v45  ;;  %4777 = vmatprep.subr.bf16.mxu1 %v6680_v49  ;;  %v6742_v45 = vcombine.high %v1607_v42, %v1611_v43  ;;  %v6744_v49 = vcombine.high %v1608_v44, %v1612_v46 }
 0x15d   : > { %4614 = vmatpush1.bf16.msra.mxu0 %v6677_v47  ;;  %4778 = vmatpush1.bf16.msra.mxu1 %v6679_v48  ;;  %v6741_v47 = vcombine.low %v1607_v42, %v1611_v43  ;;  %v6743_v48 = vcombine.low %v1608_v44, %v1612_v46 }
 0x15e   : > { %4615 = vmatprep.subr.bf16.mxu0 %v6686_v53  ;;  %4779 = vmatprep.subr.bf16.mxu1 %v6688_v57  ;;  %v6750_v53 = vcombine.high %v1615_v50, %v1619_v51  ;;  %v6752_v57 = vcombine.high %v1616_v52, %v1620_v54 }
 0x161   : > { %4616 = vmatpush1.bf16.msra.mxu0 %v6685_v55  ;;  %4780 = vmatpush1.bf16.msra.mxu1 %v6687_v56  ;;  %v6749_v55 = vcombine.low %v1615_v50, %v1619_v51  ;;  %v6751_v56 = vcombine.low %v1616_v52, %v1620_v54 }
 0x162   : > { %4617 = vmatprep.subr.bf16.mxu0 %v6694_v61  ;;  %4781 = vmatprep.subr.bf16.mxu1 %v6696_v2  ;;  %v6757_v61 = vcombine.low %v1623_v58, %v1627_v59 }
 0x165   : > { %4618 = vmatpush1.bf16.msra.mxu0 %v6693_v63  ;;  %4782 = vmatpush1.bf16.msra.mxu1 %v6695_v1  ;;  %v1628_v63 = vld [vmem:[%s8316_s0 + $0x3e8] sm:$0xff] }
 0x166   : > { %4619 = vmatprep.subr.bf16.mxu0 %v6702_v6  ;;  %4783 = vmatprep.subr.bf16.mxu1 %v6704_v10  ;;  %v6759_v1 = vcombine.low %v1624_v60, %v1628_v63  ;;  %v6760_v2 = vcombine.high %v1624_v60, %v1628_v63  ;;  %v6766_v6 = vcombine.high %v8397_v3, %v8400_v4 }
 0x167   : > { %v6768_v10 = vcombine.high %v8403_v5, %v8408_v7 }
 0x169   : > { %4620 = vmatpush1.bf16.msra.mxu0 %v6701_v8  ;;  %4784 = vmatpush1.bf16.msra.mxu1 %v6703_v9  ;;  %v6765_v8 = vcombine.low %v8397_v3, %v8400_v4  ;;  %v6767_v9 = vcombine.low %v8403_v5, %v8408_v7  ;;  %v1659_v3 = vld [vmem:[%s8316_s0 + $0x4e0] sm:$0xff]  ;;  %v1656_v4 = vld [vmem:[%s8316_s0 + $0x4c8] sm:$0xff] }
 0x16a   : > { %4621 = vmatprep.subr.bf16.mxu0 %v6710_v12  ;;  %4785 = vmatprep.subr.bf16.mxu1 %v6712_v18  ;;  %v1660_v5 = vld [vmem:[%s8316_s0 + $0x4e8] sm:$0xff] }
 0x16d   : > { %4622 = vmatpush1.bf16.msra.mxu0 %v6709_v16  ;;  %4786 = vmatpush1.bf16.msra.mxu1 %v6711_v17 }
 0x16e   : > { %4623 = vmatprep.subr.bf16.mxu0 %v6718_v21  ;;  %4787 = vmatprep.subr.bf16.mxu1 %v6720_v26 }
 0x171   : > { %4624 = vmatpush1.bf16.msra.mxu0 %v6717_v24  ;;  %4788 = vmatpush1.bf16.msra.mxu1 %v6719_v25 }
 0x172   : > { %4625 = vmatprep.subr.bf16.mxu0 %v6726_v30  ;;  %4789 = vmatprep.subr.bf16.mxu1 %v6728_v34 }
 0x175   : > { %4626 = vmatpush1.bf16.msra.mxu0 %v6725_v32  ;;  %4790 = vmatpush1.bf16.msra.mxu1 %v6727_v33 }
 0x176   : > { %4627 = vmatprep.subr.bf16.mxu0 %v6734_v38  ;;  %4791 = vmatprep.subr.bf16.mxu1 %v6736_v41 }
 0x179   : > { %4628 = vmatpush1.bf16.msra.mxu0 %v6733_v0  ;;  %4792 = vmatpush1.bf16.msra.mxu1 %v6735_v40 }
 0x17a   : > { %4629 = vmatprep.subr.bf16.mxu0 %v6742_v45  ;;  %4793 = vmatprep.subr.bf16.mxu1 %v6744_v49 }
 0x17d   : > { %4630 = vmatpush1.bf16.msra.mxu0 %v6741_v47  ;;  %4794 = vmatpush1.bf16.msra.mxu1 %v6743_v48 }
 0x17e   : > { %4631 = vmatprep.subr.bf16.mxu0 %v6750_v53  ;;  %4795 = vmatprep.subr.bf16.mxu1 %v6752_v57 }
 0x181   : > { %4632 = vmatpush1.bf16.msra.mxu0 %v6749_v55  ;;  %4796 = vmatpush1.bf16.msra.mxu1 %v6751_v56 }
 0x182   : > { %4633 = vmatprep.subr.bf16.mxu0 %v6758_v62  ;;  %4797 = vmatprep.subr.bf16.mxu1 %v6760_v2 }
 0x185   : > { %4634 = vmatpush1.bf16.msra.mxu0 %v6757_v61  ;;  %4798 = vmatpush1.bf16.msra.mxu1 %v6759_v1 }
 0x186   : > { %4644 = vmatprep.subr.bf16.mxu0 %v6766_v6  ;;  %4808 = vmatprep.subr.bf16.mxu1 %v6768_v10 }
 0x1fb   : > { %v8416_v11 = vpop.f32.mrb[0].mxu0  ;;  %v8421_v12 = vpop.f32.mrb[0].mxu1 }
 0x1fc   : > { %v1069_v13 = vrot.slane %v8416_v11, 4  ;;  %v1126_v14 = vmul.f32 %v8416_v11, %v8416_v11  ;;  %v8423_v15 = vpop.f32.mrb[1].mxu0  ;;  %v1081_v16 = vrot.slane %v8421_v12, 4  ;;  %v1128_v17 = vmul.f32 %v8421_v12, %v8421_v12  ;;  %v8431_v20 = vpop.f32.mrb[1].mxu1 }
 0x1fd   : > { %v1075_v18 = vrot.slane %v8423_v15, 4  ;;  %v1127_v19 = vmul.f32 %v8423_v15, %v8423_v15  ;;  %v941_v21 = vpop.f32.mrb[2].mxu0  ;;  %v1087_v24 = vrot.slane %v8431_v20, 4  ;;  %v1129_v25 = vmul.f32 %v8431_v20, %v8431_v20  ;;  %v982_v26 = vpop.f32.mrb[2].mxu1 }
 0x1fe   : > { %v1070_v22 = vadd.f32 %v1069_v13, %v8416_v11  ;;  %v1134_v23 = vrot.slane %v1126_v14, 4  ;;  %v942_v27 = vpop.f32.mrb[3].mxu0  ;;  %v1082_v28 = vadd.f32 %v1081_v16, %v8421_v12  ;;  %v1146_v29 = vrot.slane %v1128_v17, 4  ;;  %v983_v32 = vpop.f32.mrb[3].mxu1 }
 0x1ff   : > { %v1076_v30 = vadd.f32 %v1075_v18, %v8423_v15  ;;  %v1140_v31 = vrot.slane %v1127_v19, 4  ;;  %v1088_v35 = vadd.f32 %v1087_v24, %v8431_v20  ;;  %v1152_v36 = vrot.slane %v1129_v25, 4 }
 0x200   : > { %v1071_v33 = vrot.slane %v1070_v22, 2  ;;  %v1135_v34 = vadd.f32 %v1134_v23, %v1126_v14  ;;  %v1083_v37 = vrot.slane %v1082_v28, 2  ;;  %v1147_v38 = vadd.f32 %v1146_v29, %v1128_v17 }
 0x201   : > { %v1077_v39 = vrot.slane %v1076_v30, 2  ;;  %v1141_v0 = vadd.f32 %v1140_v31, %v1127_v19  ;;  %v1089_v42 = vrot.slane %v1088_v35, 2  ;;  %v1153_v43 = vadd.f32 %v1152_v36, %v1129_v25 }
 0x202   : > { %v1072_v40 = vadd.f32 %v1071_v33, %v1070_v22  ;;  %v1136_v41 = vrot.slane %v1135_v34, 2  ;;  %v1084_v44 = vadd.f32 %v1083_v37, %v1082_v28  ;;  %v1148_v45 = vrot.slane %v1147_v38, 2 }
 0x203   : > { %v1078_v46 = vadd.f32 %v1077_v39, %v1076_v30  ;;  %v1142_v47 = vrot.slane %v1141_v0, 2  ;;  %v1090_v50 = vadd.f32 %v1089_v42, %v1088_v35  ;;  %v1154_v51 = vrot.slane %v1153_v43, 2 }
 0x204   : > { %v1073_v48 = vrot.slane %v1072_v40, 1  ;;  %v1137_v49 = vadd.f32 %v1136_v41, %v1135_v34  ;;  %v1085_v52 = vrot.slane %v1084_v44, 1  ;;  %v1149_v53 = vadd.f32 %v1148_v45, %v1147_v38 }
 0x205   : > { %v1079_v54 = vrot.slane %v1078_v46, 1  ;;  %v1143_v55 = vadd.f32 %v1142_v47, %v1141_v0  ;;  %v1091_v58 = vrot.slane %v1090_v50, 1  ;;  %v1155_v59 = vadd.f32 %v1154_v51, %v1153_v43 }
 0x206   : > { %v1074_v56 = vadd.f32 %v1073_v48, %v1072_v40  ;;  %v1138_v57 = vrot.slane %v1137_v49, 1  ;;  %v1086_v60 = vadd.f32 %v1085_v52, %v1084_v44  ;;  %v1150_v61 = vrot.slane %v1149_v53, 1 }
 0x207   : > { %v1080_v62 = vadd.f32 %v1079_v54, %v1078_v46  ;;  %v1144_v63 = vrot.slane %v1143_v55, 1  ;;  %v1092_v6 = vadd.f32 %v1091_v58, %v1090_v50  ;;  %v1156_v10 = vrot.slane %v1155_v59, 1 }
 0x208   : > { %v8440_v1 = vmul.f32 0.125, %v1074_v56  ;;  %v1139_v2 = vadd.f32 %v1138_v57, %v1137_v49  ;;  %v8442_v13 = vmul.f32 0.125, %v1086_v60  ;;  %v1151_v14 = vadd.f32 %v1150_v61, %v1149_v53 }
 0x209   : > { %v8444_v16 = vmul.f32 0.125, %v1080_v62  ;;  %v1145_v17 = vadd.f32 %v1144_v63, %v1143_v55  ;;  %v8448_v21 = vmul.f32 0.125, %v1092_v6  ;;  %v1157_v22 = vadd.f32 %v1156_v10, %v1155_v59 }
 0x20a   : > { %v1182_v18 = vmul.f32 0.125, %v1139_v2  ;;  %v1190_v19 = vmul.f32 %v8440_v1, %v8440_v1  ;;  %v1184_v23 = vmul.f32 0.125, %v1151_v14  ;;  %v1192_v24 = vmul.f32 %v8442_v13, %v8442_v13 }
 0x20b   : > { %v1183_v25 = vmul.f32 0.125, %v1145_v17  ;;  %v1191_v26 = vmul.f32 %v8444_v16, %v8444_v16  ;;  %v1185_v28 = vmul.f32 0.125, %v1157_v22  ;;  %v1193_v29 = vmul.f32 %v8448_v21, %v8448_v21 }
 0x20c   : > { %v1198_v27 = vsub.f32 %v1182_v18, %v1190_v19  ;;  %v1200_v30 = vsub.f32 %v1184_v23, %v1192_v24  ;;  %v7933_v40 = vmov 1966171168   ;;  %v1245_v42 = vlaneseq }
 0x20d   : > { %v1199_v31 = vsub.f32 %v1183_v25, %v1191_v26  ;;  %v1201_v33 = vsub.f32 %v1185_v28, %v1193_v29  ;;  %v1243_v41 = vunpack.c.l.s4 %v7933_v40 }
 0x20e   : > { %v1206_v32 = vmax.f32 %v1198_v27, 0.0  ;;  %v1208_v34 = vmax.f32 %v1200_v30, 0.0  ;;  %v8456_v44 = vshrl.u32 %v1245_v42, 7 }
 0x20f   : > { %v1207_v35 = vmax.f32 %v1199_v31, 0.0  ;;  %v1209_v37 = vmax.f32 %v1201_v33, 0.0  ;;  %v1244_v43 = vunpack.c.0.s8 %v1243_v41 }
 0x210   : > { %v1214_v36 = vadd.f32 1e-05, %v1206_v32  ;;  %v1216_v38 = vadd.f32 1e-05, %v1208_v34 }
 0x211   : > { %v1215_v39 = vadd.f32 1e-05, %v1207_v35  ;;  %v1217_v0 = vadd.f32 1e-05, %v1209_v37  ;;  %v8461_v47 = vsub.s32 %v1244_v43, %v8456_v44 }
 0x212   : > { %7559 = vrsqrt.f32 %v1214_v36 }
 0x213   : > { %7561 = vrsqrt.f32 %v1216_v38 }
 0x214   : > { %7563 = vrsqrt.f32 %v1215_v39 }
 0x215   : > { %7565 = vrsqrt.f32 %v1217_v0 }
 0x21b   : > { %v8458_v45 = vpop.f32.mrb[4].mxu0  ;;  %v8466_v50 = vpop.f32.mrb[4].mxu1 }
 0x21c   : > { %v7560_v46 = vpop.eup %7559  ;;  %v1093_v48 = vrot.slane %v8458_v45, 4  ;;  %v1130_v49 = vmul.f32 %v8458_v45, %v8458_v45  ;;  %v8468_v51 = vpop.f32.mrb[5].mxu0  ;;  %v1105_v53 = vrot.slane %v8466_v50, 4  ;;  %v1132_v54 = vmul.f32 %v8466_v50, %v8466_v50 }
 0x21d   : > { %v7562_v52 = vpop.eup %7561  ;;  %v1099_v55 = vrot.slane %v8468_v51, 4  ;;  %v1131_v56 = vmul.f32 %v8468_v51, %v8468_v51  ;;  %v8476_v57 = vpop.f32.mrb[5].mxu1 }
 0x21e   : > { %v1023_v58 = vpop.f32.mrb[6].mxu0  ;;  %v7564_v59 = vpop.eup %7563  ;;  %v1094_v60 = vadd.f32 %v1093_v48, %v8458_v45  ;;  %v1158_v61 = vrot.slane %v1130_v49, 4  ;;  %v1111_v62 = vrot.slane %v8476_v57, 4  ;;  %v1133_v63 = vmul.f32 %v8476_v57, %v8476_v57 }
 0x21f   : > { %v1064_v2 = vpop.f32.mrb[6].mxu1  ;;  %v1024_v6 = vpop.f32.mrb[7].mxu0  ;;  %v1238_v14 = vcombine.low %v7560_v46, %v7564_v59  ;;  %v1106_v17 = vadd.f32 %v1105_v53, %v8466_v50  ;;  %v1170_v18 = vrot.slane %v1132_v54, 4  ;;  %v1100_v19 = vadd.f32 %v1099_v55, %v8468_v51 }
 0x220   : > { %v7566_v10 = vpop.eup %7565  ;;  %v1065_v22 = vpop.f32.mrb[7].mxu1  ;;  %v1095_v24 = vrot.slane %v1094_v60, 2  ;;  %v1159_v25 = vadd.f32 %v1158_v61, %v1130_v49  ;;  %v1164_v26 = vrot.slane %v1131_v56, 4  ;;  %v1112_v38 = vadd.f32 %v1111_v62, %v8476_v57 }
 0x221   : > { %v1239_v23 = vcombine.low %v7562_v52, %v7566_v10  ;;  %v8485_v27 = vrot.slane %v1238_v14, %v8461_v47  ;;  %v1107_v28 = vrot.slane %v1106_v17, 2  ;;  %v1171_v29 = vadd.f32 %v1170_v18, %v1132_v54 }
 0x222   : > { %v1101_v30 = vrot.slane %v1100_v19, 2  ;;  %v1096_v32 = vadd.f32 %v1095_v24, %v1094_v60  ;;  %v1160_v33 = vrot.slane %v1159_v25, 2  ;;  %v1165_v34 = vadd.f32 %v1164_v26, %v1131_v56 }
 0x223   : > { %v8488_v31 = vrot.slane %v1239_v23, %v8461_v47  ;;  %v1108_v35 = vadd.f32 %v1107_v28, %v1106_v17  ;;  %v1172_v36 = vrot.slane %v1171_v29, 2  ;;  %v1113_v48 = vrot.slane %v1112_v38, 2 }
 0x224   : > { %v1102_v37 = vadd.f32 %v1101_v30, %v1100_v19  ;;  %v1097_v0 = vrot.slane %v1096_v32, 1  ;;  %v1161_v40 = vadd.f32 %v1160_v33, %v1159_v25  ;;  %v1166_v41 = vrot.slane %v1165_v34, 2 }
 0x225   : > { %v1270_v39 = vcombine.low %v8485_v27, %v8488_v31  ;;  %v1109_v42 = vrot.slane %v1108_v35, 1  ;;  %v1173_v43 = vadd.f32 %v1172_v36, %v1171_v29  ;;  %v1114_v58 = vadd.f32 %v1113_v48, %v1112_v38 }
 0x226   : > { %v1103_v46 = vrot.slane %v1102_v37, 1  ;;  %v1098_v49 = vadd.f32 %v1097_v0, %v1096_v32  ;;  %v1162_v52 = vrot.slane %v1161_v40, 1  ;;  %v1167_v53 = vadd.f32 %v1166_v41, %v1165_v34 }
 0x227   : > { %v1110_v54 = vadd.f32 %v1109_v42, %v1108_v35  ;;  %v1174_v55 = vrot.slane %v1173_v43, 1  ;;  %v1176_v62 = vrot.slane %v1133_v63, 4  ;;  %v1115_v14 = vrot.slane %v1114_v58, 1 }
 0x228   : > { %v1104_v56 = vadd.f32 %v1103_v46, %v1102_v37  ;;  %v8493_v59 = vmul.f32 0.125, %v1098_v49  ;;  %v1163_v60 = vadd.f32 %v1162_v52, %v1161_v40  ;;  %v1168_v61 = vrot.slane %v1167_v53, 1 }
 0x229   : > { %v8495_v2 = vmul.f32 0.125, %v1110_v54  ;;  %v1175_v6 = vadd.f32 %v1174_v55, %v1173_v43  ;;  %v1177_v22 = vadd.f32 %v1176_v62, %v1133_v63  ;;  %v1116_v26 = vadd.f32 %v1115_v14, %v1114_v58 }
 0x22a   : > { %v8497_v10 = vmul.f32 0.125, %v1104_v56  ;;  %v1186_v17 = vmul.f32 0.125, %v1163_v60  ;;  %v1194_v18 = vmul.f32 %v8493_v59, %v8493_v59  ;;  %v1169_v19 = vadd.f32 %v1168_v61, %v1167_v53 }
 0x22b   : > { %v1188_v23 = vmul.f32 0.125, %v1175_v6  ;;  %v1196_v24 = vmul.f32 %v8495_v2, %v8495_v2  ;;  %v1178_v30 = vrot.slane %v1177_v22, 2  ;;  %v1125_v35 = vmul.f32 0.125, %v1116_v26 }
 0x22c   : > { %v1195_v25 = vmul.f32 %v8497_v10, %v8497_v10  ;;  %v1202_v28 = vsub.f32 %v1186_v17, %v1194_v18  ;;  %v1187_v29 = vmul.f32 0.125, %v1169_v19  ;;  %v1278_v14 = vrot.slane %v1270_v39, %v8461_v47  ;;  %v1067_v18 = vld [vmem:[#allocation8] sm:$0xff] }
 0x22d   : > { %v1204_v32 = vsub.f32 %v1188_v23, %v1196_v24  ;;  %v1179_v36 = vadd.f32 %v1178_v30, %v1177_v22  ;;  %v1197_v42 = vmul.f32 %v1125_v35, %v1125_v35  ;;  %v8513_v19 = vsub.s32 0, %v8456_v44 }
 0x22e   : > { %v1210_v33 = vmax.f32 %v1202_v28, 0.0  ;;  %v1203_v34 = vsub.f32 %v1187_v29, %v1195_v25  ;;  %v8516_v23 = vsub.s32 1, %v8456_v44  ;;  %v8519_v24 = vsub.s32 2, %v8456_v44 }
 0x22f   : > { %v1180_v0 = vrot.slane %v1179_v36, 1  ;;  %v1212_v63 = vmax.f32 %v1204_v32, 0.0  ;;  %v8522_v25 = vsub.s32 3, %v8456_v44  ;;  %v8525_v26 = vsub.s32 4, %v8456_v44 }
 0x230   : > { %v1218_v37 = vadd.f32 1e-05, %v1210_v33  ;;  %v1211_v38 = vmax.f32 %v1203_v34, 0.0  ;;  %v8528_v27 = vsub.s32 5, %v8456_v44  ;;  %v8531_v31 = vsub.s32 6, %v8456_v44 }
 0x231   : > { %v1181_v41 = vadd.f32 %v1180_v0, %v1179_v36  ;;  %v1220_v46 = vadd.f32 1e-05, %v1212_v63  ;;  %v8534_v39 = vsub.s32 7, %v8456_v44 }
 0x232   : > { %7567 = vrsqrt.f32 %v1218_v37  ;;  %v1219_v40 = vadd.f32 1e-05, %v1211_v38 }
 0x233   : > { %v1189_v43 = vmul.f32 0.125, %v1181_v41 }
 0x234   : > { %7569 = vrsqrt.f32 %v1219_v40 }
 0x235   : > { %v1205_v48 = vsub.f32 %v1189_v43, %v1197_v42  ;;  %7571 = vrsqrt.f32 %v1220_v46 }
 0x237   : > { %v1213_v49 = vmax.f32 %v1205_v48, 0.0 }
 0x239   : > { %v1221_v52 = vadd.f32 1e-05, %v1213_v49 }
 0x23b   : > { %7573 = vrsqrt.f32 %v1221_v52 }
 0x23c   : > { %v7568_v53 = vpop.eup %7567 }
 0x23e   : > { %v7570_v54 = vpop.eup %7569 }
 0x23f   : > { %v1240_v55 = vcombine.low %v7568_v53, %v7570_v54  ;;  %v7572_v56 = vpop.eup %7571 }
 0x241   : > { %v1262_v60 = vrot.slane %v1240_v55, %v8461_v47 }
 0x245   : > { %v7574_v58 = vpop.eup %7573 }
 0x246   : > { %v1241_v61 = vcombine.low %v7572_v56, %v7574_v58 }
 0x248   : > { %v1269_v62 = vrot.slane %v1241_v61, %v8461_v47 }
 0x24a   : > { %v1271_v6 = vcombine.low %v1262_v60, %v1269_v62  ;;  %v1068_v60 = vld [vmem:[#allocation9] sm:$0xff] }
 0x24c   : > { %v1285_v17 = vrot.slane %v1271_v6, %v8461_v47 }
 0x24e   : > { %v1286_v22 = vcombine.low %v1278_v14, %v1285_v17 }
 0x250   : > { %v1288_v28 = vmul.f32 %v1286_v22, %v1067_v18 }
 0x252   : > { %v1293_v29 = vrot.slane %v1288_v28, %v8513_v19  ;;  %v1297_v30 = vrot.slane %v1288_v28, %v8516_v23  ;;  %v1301_v32 = vrot.slane %v1288_v28, %v8519_v24  ;;  %v1305_v33 = vrot.slane %v1288_v28, %v8522_v25 }
 0x253   : > { %v1309_v34 = vrot.slane %v1288_v28, %v8525_v26  ;;  %v1313_v36 = vrot.slane %v1288_v28, %v8528_v27  ;;  %v1317_v37 = vrot.slane %v1288_v28, %v8531_v31  ;;  %v1321_v38 = vrot.slane %v1288_v28, %v8534_v39 }
 0x254   : > { %v1330_v44 = vmul.f32 %v1293_v29, %v8440_v1  ;;  %v1331_v0 = vmul.f32 %v1297_v30, %v8444_v16  ;;  %v1332_v63 = vmul.f32 %v1301_v32, %v8442_v13  ;;  %v1333_v40 = vmul.f32 %v1305_v33, %v8448_v21 }
 0x255   : > { %v1334_v41 = vmul.f32 %v1309_v34, %v8493_v59  ;;  %v1335_v42 = vmul.f32 %v1313_v36, %v8497_v10  ;;  %v1336_v43 = vmul.f32 %v1317_v37, %v8495_v2  ;;  %v1337_v46 = vmul.f32 %v1321_v38, %v1125_v35 }
 0x256   : > { %v1346_v48 = vcombine.low %v1330_v44, %v1331_v0  ;;  %v1347_v49 = vcombine.low %v1332_v63, %v1333_v40  ;;  %v1404_v52 = vmul.f32 %v1321_v38, %v8476_v57  ;;  %v1398_v53 = vmul.f32 %v1297_v30, %v8423_v15  ;;  %v1640_v38 = vld [vmem:[%s8316_s0 + $0x448] sm:$0xff]  ;;  %v1647_v40 = vld [vmem:[%s8316_s0 + $0x480] sm:$0xff] }
 0x257   : > { %v1348_v1 = vcombine.low %v1334_v41, %v1335_v42  ;;  %v1349_v54 = vcombine.low %v1336_v43, %v1337_v46  ;;  %v1397_v16 = vmul.f32 %v1293_v29, %v8416_v11  ;;  %v1400_v13 = vmul.f32 %v1305_v33, %v8431_v20  ;;  %v1644_v44 = vld [vmem:[%s8316_s0 + $0x468] sm:$0xff]  ;;  %v1651_v46 = vld [vmem:[%s8316_s0 + $0x4a0] sm:$0xff] }
 0x258   : > { %v1356_v21 = vrot.slane %v1346_v48, %v8461_v47  ;;  %v1363_v59 = vrot.slane %v1347_v49, %v8461_v47  ;;  %v1399_v10 = vmul.f32 %v1301_v32, %v8421_v12  ;;  %v1402_v2 = vmul.f32 %v1313_v36, %v8468_v51  ;;  %v1648_v48 = vld [vmem:[%s8316_s0 + $0x488] sm:$0xff] }
 0x259   : > { %v1370_v35 = vrot.slane %v1348_v1, %v8461_v47  ;;  %v1377_v57 = vrot.slane %v1349_v54, %v8461_v47  ;;  %v1401_v20 = vmul.f32 %v1309_v34, %v8458_v45  ;;  %v1403_v58 = vmul.f32 %v1317_v37, %v8466_v50  ;;  %v1639_v34 = vld [vmem:[%s8316_s0 + $0x440] sm:$0xff]  ;;  %v1652_v49 = vld [vmem:[%s8316_s0 + $0x4a8] sm:$0xff] }
 0x25a   : > { %v1378_v55 = vcombine.low %v1356_v21, %v1363_v59  ;;  %v1643_v37 = vld [vmem:[%s8316_s0 + $0x460] sm:$0xff]  ;;  %v6776_v43 = vcombine.high %v1640_v38, %v1644_v44  ;;  %v6782_v21 = vcombine.high %v1647_v40, %v1651_v46  ;;  %v6784_v59 = vcombine.high %v1648_v48, %v1652_v49 }
 0x25b   : > { %v1379_v15 = vcombine.low %v1370_v35, %v1377_v57  ;;  %v6774_v42 = vcombine.high %v1639_v34, %v1643_v37  ;;  %v6773_v54 = vcombine.low %v1639_v34, %v1643_v37  ;;  %v6781_v7 = vcombine.low %v1647_v40, %v1651_v46  ;;  %v1663_v35 = vld [vmem:[%s8316_s0 + $0x500] sm:$0xff]  ;;  %v1692_v40 = vld [vmem:[%s8316_s0 + $0x5e8] sm:$0xff] }
 0x25c   : > { %v1386_v56 = vrot.slane %v1378_v55, %v8461_v47  ;;  %v1667_v57 = vld [vmem:[%s8316_s0 + $0x520] sm:$0xff]  ;;  %v1664_v55 = vld [vmem:[%s8316_s0 + $0x508] sm:$0xff] }
 0x25d   : > { %v1393_v11 = vrot.slane %v1379_v15, %v8461_v47  ;;  %v1668_v15 = vld [vmem:[%s8316_s0 + $0x528] sm:$0xff]  ;;  %v1687_v37 = vld [vmem:[%s8316_s0 + $0x5c0] sm:$0xff] }
 0x25f   : > { %v1394_v61 = vcombine.low %v1386_v56, %v1393_v11  ;;  %v6791_v11 = vcombine.low %v1656_v4, %v1660_v5 }
 0x261   : > { %v1396_v12 = vsub.f32 %v1068_v60, %v1394_v61  ;;  %v1671_v60 = vld [vmem:[%s8316_s0 + $0x540] sm:$0xff] }
 0x262   : > { %v1675_v61 = vld [vmem:[%s8316_s0 + $0x560] sm:$0xff] }
 0x263   : > { %v1437_v51 = vrot.slane %v1396_v12, %v8534_v39  ;;  %v1413_v62 = vrot.slane %v1396_v12, %v8516_v23  ;;  %v1409_v6 = vrot.slane %v1396_v12, %v8513_v19  ;;  %v1421_v14 = vrot.slane %v1396_v12, %v8522_v25 }
 0x264   : > { %v1417_v17 = vrot.slane %v1396_v12, %v8519_v24  ;;  %v1429_v45 = vrot.slane %v1396_v12, %v8528_v27  ;;  %v1425_v41 = vrot.slane %v1396_v12, %v8525_v26 }
 0x265   : > { %v8571_v50 = vadd.f32 %v1437_v51, %v1404_v52  ;;  %v1447_v18 = vadd.f32 %v1413_v62, %v1398_v53  ;;  %v1446_v22 = vadd.f32 %v1409_v6, %v1397_v16  ;;  %v1449_v28 = vadd.f32 %v1421_v14, %v1400_v13  ;;  %v1676_v51 = vld [vmem:[%s8316_s0 + $0x568] sm:$0xff] }
 0x266   : > { %v8573_v29 = vadd.f32 %v1417_v17, %v1399_v10  ;;  %v8575_v30 = vadd.f32 %v1429_v45, %v1402_v2  ;;  %v1433_v52 = vrot.slane %v1396_v12, %v8531_v31  ;;  %v8597_v1 = vadd.f32 %v1425_v41, %v1401_v20  ;;  %v1655_v10 = vld [vmem:[%s8316_s0 + $0x4c0] sm:$0xff]  ;;  %v1672_v12 = vld [vmem:[%s8316_s0 + $0x548] sm:$0xff] }
 0x267   : > { %v1455_v32 = vmax.f32 %v1447_v18, 0.0  ;;  %v1454_v33 = vmax.f32 %v1446_v22, 0.0  ;;  %v1457_v36 = vmax.f32 %v1449_v28, 0.0  ;;  %v6775_v16 = vcombine.low %v1640_v38, %v1644_v44  ;;  %v1679_v45 = vld [vmem:[%s8316_s0 + $0x580] sm:$0xff]  ;;  %v1680_v22 = vld [vmem:[%s8316_s0 + $0x588] sm:$0xff] }
 0x268   : > { %v8605_v13 = vadd.f32 %v1433_v52, %v1403_v58  ;;  %v6792_v2 = vcombine.high %v1656_v4, %v1660_v5  ;;  %v6789_v56 = vcombine.low %v1655_v10, %v1659_v3  ;;  %v6798_v20 = vcombine.high %v1663_v35, %v1667_v57  ;;  %v1683_v18 = vld [vmem:[%s8316_s0 + $0x5a0] sm:$0xff]  ;;  %v1684_v28 = vld [vmem:[%s8316_s0 + $0x5a8] sm:$0xff] }
 0x269   : > { %v8581_v0 = vpack.c.bf16 %v1455_v32, %v1455_v32  ;;  %v8583_v63 = vpack.c.bf16 %v1454_v33, %v1454_v33  ;;  %v8595_v53 = vpack.c.bf16 %v1457_v36, %v1457_v36  ;;  %v6800_v58 = vcombine.high %v1664_v55, %v1668_v15  ;;  %v1691_v38 = vld [vmem:[%s8316_s0 + $0x5e0] sm:$0xff]  ;;  %v1688_v44 = vld [vmem:[%s8316_s0 + $0x5c8] sm:$0xff] }
 0x26a   : > { %v6797_v62 = vcombine.low %v1663_v35, %v1667_v57  ;;  %v6799_v6 = vcombine.low %v1664_v55, %v1668_v15  ;;  %v6806_v14 = vcombine.high %v1671_v60, %v1675_v61  ;;  %v6808_v17 = vcombine.high %v1672_v12, %v1676_v51  ;;  %v1696_v52 = vld [vmem:[%s8316_s0 + $0x608] sm:$0xff]  ;;  %v1707_v4 = vld [vmem:[%s8316_s0 + $0x660] sm:$0xff] }
 0x26b   : > { %4635 = vmatprep.mubr.bf16.mxu0 %v8581_v0  ;;  %4799 = vmatprep.mubr.bf16.mxu1 %v8581_v0  ;;  %v6805_v32 = vcombine.low %v1671_v60, %v1675_v61  ;;  %v6807_v33 = vcombine.low %v1672_v12, %v1676_v51  ;;  %v6814_v34 = vcombine.high %v1679_v45, %v1683_v18  ;;  %v1704_v5 = vld [vmem:[%s8316_s0 + $0x648] sm:$0xff]  ;;  %v1711_v57 = vld [vmem:[%s8316_s0 + $0x680] sm:$0xff] }
 0x26c   : > { %4636 = vmatmul.mubr.bf16.vlgmr.msra.gmra.mrb[8].mxu0 %v8583_v63  ;;  %4800 = vmatmul.mubr.bf16.vlgmr.msra.gmra.mrb[8].mxu1 %v8583_v63  ;;  %v6816_v36 = vcombine.high %v1680_v22, %v1684_v28  ;;  %v6813_v41 = vcombine.low %v1679_v45, %v1683_v18  ;;  %v6824_v46 = vcombine.high %v1688_v44, %v1692_v40  ;;  %v1715_v55 = vld [vmem:[%s8316_s0 + $0x6a0] sm:$0xff]  ;;  %v1712_v15 = vld [vmem:[%s8316_s0 + $0x688] sm:$0xff] }
 0x26d   : > { %4645 = vmatpush1.bf16.msra.mxu0 %v6765_v8  ;;  %4809 = vmatpush1.bf16.msra.mxu1 %v6767_v9  ;;  %v6783_v8 = vcombine.low %v1648_v48, %v1652_v49  ;;  %v6790_v9 = vcombine.high %v1655_v10, %v1659_v3  ;;  %v1695_v48 = vld [vmem:[%s8316_s0 + $0x600] sm:$0xff]  ;;  %v1720_v51 = vld [vmem:[%s8316_s0 + $0x6c8] sm:$0xff] }
 0x26e   : > { %4676 = vmatprep.mubr.bf16.mxu0 %v8595_v53  ;;  %4840 = vmatprep.mubr.bf16.mxu1 %v8595_v53  ;;  %v1699_v49 = vld [vmem:[%s8316_s0 + $0x620] sm:$0xff] }
 0x26f   : > { %4646 = vmatprep.subr.bf16.mxu0 %v6774_v42  ;;  %4810 = vmatprep.subr.bf16.mxu1 %v6776_v43  ;;  %v6815_v42 = vcombine.low %v1680_v22, %v1684_v28  ;;  %v6822_v43 = vcombine.high %v1687_v37, %v1691_v38  ;;  %v1703_v3 = vld [vmem:[%s8316_s0 + $0x640] sm:$0xff]  ;;  %v1728_v28 = vld [vmem:[%s8316_s0 + $0x708] sm:$0xff] }
 0x270   : > { %v1719_v61 = vld [vmem:[%s8316_s0 + $0x6c0] sm:$0xff] }
 0x271   : > { %4647 = vmatpush1.bf16.msra.mxu0 %v6773_v54  ;;  %4811 = vmatpush1.bf16.msra.mxu1 %v6775_v16  ;;  %v1700_v54 = vld [vmem:[%s8316_s0 + $0x628] sm:$0xff]  ;;  %v6821_v16 = vcombine.low %v1687_v37, %v1691_v38  ;;  %v1723_v12 = vld [vmem:[%s8316_s0 + $0x6e0] sm:$0xff] }
 0x272   : > { %4648 = vmatprep.subr.bf16.mxu0 %v6782_v21  ;;  %4812 = vmatprep.subr.bf16.mxu1 %v6784_v59  ;;  %v6823_v21 = vcombine.low %v1688_v44, %v1692_v40  ;;  %v6830_v59 = vcombine.high %v1695_v48, %v1699_v49  ;;  %v6832_v10 = vcombine.high %v1696_v52, %v1700_v54  ;;  %v1727_v18 = vld [vmem:[%s8316_s0 + $0x700] sm:$0xff]  ;;  %v1736_v40 = vld [vmem:[%s8316_s0 + $0x748] sm:$0xff] }
 0x273   : > { %v1731_v22 = vld [vmem:[%s8316_s0 + $0x720] sm:$0xff] }
 0x274   : > { %v1735_v38 = vld [vmem:[%s8316_s0 + $0x740] sm:$0xff] }
 0x275   : > { %4649 = vmatpush1.bf16.msra.mxu0 %v6781_v7  ;;  %4813 = vmatpush1.bf16.msra.mxu1 %v6783_v8  ;;  %v1708_v7 = vld [vmem:[%s8316_s0 + $0x668] sm:$0xff]  ;;  %v6829_v8 = vcombine.low %v1695_v48, %v1699_v49  ;;  %v1739_v44 = vld [vmem:[%s8316_s0 + $0x760] sm:$0xff] }
 0x276   : > { %4650 = vmatprep.subr.bf16.mxu0 %v6790_v9  ;;  %4814 = vmatprep.subr.bf16.mxu1 %v6792_v2  ;;  %v6831_v9 = vcombine.low %v1696_v52, %v1700_v54  ;;  %v6838_v2 = vcombine.high %v1703_v3, %v1707_v4  ;;  %v6840_v35 = vcombine.high %v1704_v5, %v1708_v7  ;;  %v1743_v49 = vld [vmem:[%s8316_s0 + $0x780] sm:$0xff]  ;;  %v1744_v54 = vld [vmem:[%s8316_s0 + $0x788] sm:$0xff] }
 0x277   : > { %v1747_v52 = vld [vmem:[%s8316_s0 + $0x7a0] sm:$0xff] }
 0x279   : > { %4651 = vmatpush1.bf16.msra.mxu0 %v6789_v56  ;;  %4815 = vmatpush1.bf16.msra.mxu1 %v6791_v11  ;;  %v1716_v56 = vld [vmem:[%s8316_s0 + $0x6a8] sm:$0xff]  ;;  %v6837_v11 = vcombine.low %v1703_v3, %v1707_v4  ;;  %v1751_v4 = vld [vmem:[%s8316_s0 + $0x7c0] sm:$0xff] }
 0x27a   : > { %4652 = vmatprep.subr.bf16.mxu0 %v6798_v20  ;;  %4816 = vmatprep.subr.bf16.mxu1 %v6800_v58  ;;  %v6839_v20 = vcombine.low %v1704_v5, %v1708_v7  ;;  %v6846_v58 = vcombine.high %v1711_v57, %v1715_v55  ;;  %v6848_v60 = vcombine.high %v1712_v15, %v1716_v56  ;;  %v1755_v5 = vld [vmem:[%s8316_s0 + $0x7e0] sm:$0xff]  ;;  %v1752_v7 = vld [vmem:[%s8316_s0 + $0x7c8] sm:$0xff] }
 0x27d   : > { %4653 = vmatpush1.bf16.msra.mxu0 %v6797_v62  ;;  %4817 = vmatpush1.bf16.msra.mxu1 %v6799_v6  ;;  %v1724_v62 = vld [vmem:[%s8316_s0 + $0x6e8] sm:$0xff]  ;;  %v6845_v6 = vcombine.low %v1711_v57, %v1715_v55  ;;  %v1759_v55 = vld [vmem:[%s8316_s0 + $0x800] sm:$0xff] }
 0x27e   : > { %4654 = vmatprep.subr.bf16.mxu0 %v6806_v14  ;;  %4818 = vmatprep.subr.bf16.mxu1 %v6808_v17  ;;  %v6847_v14 = vcombine.low %v1712_v15, %v1716_v56  ;;  %v6854_v17 = vcombine.high %v1719_v61, %v1723_v12  ;;  %v6856_v45 = vcombine.high %v1720_v51, %v1724_v62  ;;  %v1763_v15 = vld [vmem:[%s8316_s0 + $0x820] sm:$0xff]  ;;  %v1760_v56 = vld [vmem:[%s8316_s0 + $0x808] sm:$0xff] }
 0x281   : > { %4655 = vmatpush1.bf16.msra.mxu0 %v6805_v32  ;;  %4819 = vmatpush1.bf16.msra.mxu1 %v6807_v33  ;;  %v1732_v32 = vld [vmem:[%s8316_s0 + $0x728] sm:$0xff]  ;;  %v6853_v33 = vcombine.low %v1719_v61, %v1723_v12  ;;  %v6894_v61 = vcombine.high %v1759_v55, %v1763_v15 }
 0x282   : > { %4656 = vmatprep.subr.bf16.mxu0 %v6814_v34  ;;  %4820 = vmatprep.subr.bf16.mxu1 %v6816_v36  ;;  %v6855_v34 = vcombine.low %v1720_v51, %v1724_v62  ;;  %v6862_v36 = vcombine.high %v1727_v18, %v1731_v22  ;;  %v6864_v37 = vcombine.high %v1728_v28, %v1732_v32  ;;  %v1459_v51 = vmax.f32 %v8575_v30, 0.0  ;;  %v1767_v62 = vld [vmem:[%s8316_s0 + $0x840] sm:$0xff] }
 0x283   : > { %v1775_v30 = vld [vmem:[%s8316_s0 + $0x880] sm:$0xff] }
 0x285   : > { %4657 = vmatpush1.bf16.msra.mxu0 %v6813_v41  ;;  %4821 = vmatpush1.bf16.msra.mxu1 %v6815_v42  ;;  %v1740_v41 = vld [vmem:[%s8316_s0 + $0x768] sm:$0xff]  ;;  %v6861_v42 = vcombine.low %v1727_v18, %v1731_v22 }
 0x286   : > { %4658 = vmatprep.subr.bf16.mxu0 %v6822_v43  ;;  %4822 = vmatprep.subr.bf16.mxu1 %v6824_v46  ;;  %v6863_v43 = vcombine.low %v1728_v28, %v1732_v32  ;;  %v6870_v46 = vcombine.high %v1735_v38, %v1739_v44  ;;  %v6872_v48 = vcombine.high %v1736_v40, %v1740_v41 }
 0x289   : > { %4659 = vmatpush1.bf16.msra.mxu0 %v6821_v16  ;;  %4823 = vmatpush1.bf16.msra.mxu1 %v6823_v21  ;;  %v1748_v16 = vld [vmem:[%s8316_s0 + $0x7a8] sm:$0xff]  ;;  %v6869_v21 = vcombine.low %v1735_v38, %v1739_v44 }
 0x28a   : > { %4660 = vmatprep.subr.bf16.mxu0 %v6830_v59  ;;  %4824 = vmatprep.subr.bf16.mxu1 %v6832_v10  ;;  %v6871_v59 = vcombine.low %v1736_v40, %v1740_v41  ;;  %v6878_v10 = vcombine.high %v1743_v49, %v1747_v52  ;;  %v6880_v3 = vcombine.high %v1744_v54, %v1748_v16  ;;  %v1783_v41 = vld [vmem:[%s8316_s0 + $0x8c0] sm:$0xff] }
 0x28d   : > { %4661 = vmatpush1.bf16.msra.mxu0 %v6829_v8  ;;  %4825 = vmatpush1.bf16.msra.mxu1 %v6831_v9  ;;  %v1756_v8 = vld [vmem:[%s8316_s0 + $0x7e8] sm:$0xff]  ;;  %v6877_v9 = vcombine.low %v1743_v49, %v1747_v52 }
 0x28e   : > { %4662 = vmatprep.subr.bf16.mxu0 %v6838_v2  ;;  %4826 = vmatprep.subr.bf16.mxu1 %v6840_v35  ;;  %v6879_v2 = vcombine.low %v1744_v54, %v1748_v16  ;;  %v6886_v35 = vcombine.high %v1751_v4, %v1755_v5  ;;  %v6888_v57 = vcombine.high %v1752_v7, %v1756_v8  ;;  %v1791_v16 = vld [vmem:[%s8316_s0 + $0x900] sm:$0xff] }
 0x291   : > { %4663 = vmatpush1.bf16.msra.mxu0 %v6837_v11  ;;  %4827 = vmatpush1.bf16.msra.mxu1 %v6839_v20  ;;  %v1764_v11 = vld [vmem:[%s8316_s0 + $0x828] sm:$0xff]  ;;  %v6885_v20 = vcombine.low %v1751_v4, %v1755_v5 }
 0x292   : > { %4664 = vmatprep.subr.bf16.mxu0 %v6846_v58  ;;  %4828 = vmatprep.subr.bf16.mxu1 %v6848_v60  ;;  %v6887_v58 = vcombine.low %v1752_v7, %v1756_v8  ;;  %v1456_v60 = vmax.f32 %v8573_v29, 0.0  ;;  %v6896_v12 = vcombine.high %v1760_v56, %v1764_v11  ;;  %v6895_v22 = vcombine.low %v1760_v56, %v1764_v11  ;;  %v1799_v8 = vld [vmem:[%s8316_s0 + $0x940] sm:$0xff] }
 0x293   : > { %v8673_v29 = vpack.c.bf16 %v1459_v51, %v1459_v51  ;;  %v1807_v11 = vld [vmem:[%s8316_s0 + $0x980] sm:$0xff] }
 0x294   : > { %v8671_v18 = vpack.c.bf16 %v1456_v60, %v1456_v60  ;;  %v1812_v60 = vld [vmem:[%s8316_s0 + $0x9a8] sm:$0xff] }
 0x295   : > { %4665 = vmatpush1.bf16.msra.mxu0 %v6845_v6  ;;  %4829 = vmatpush1.bf16.msra.mxu1 %v6847_v14  ;;  %v1771_v6 = vld [vmem:[%s8316_s0 + $0x860] sm:$0xff]  ;;  %v1768_v14 = vld [vmem:[%s8316_s0 + $0x848] sm:$0xff] }
 0x296   : > { %4666 = vmatprep.subr.bf16.mxu0 %v6854_v17  ;;  %4830 = vmatprep.subr.bf16.mxu1 %v6856_v45  ;;  %v1772_v17 = vld [vmem:[%s8316_s0 + $0x868] sm:$0xff]  ;;  %v6893_v45 = vcombine.low %v1759_v55, %v1763_v15  ;;  %v6902_v28 = vcombine.high %v1767_v62, %v1771_v6 }
 0x297   : > { %v6904_v32 = vcombine.high %v1768_v14, %v1772_v17  ;;  %v6903_v38 = vcombine.low %v1768_v14, %v1772_v17  ;;  %v1819_v14 = vld [vmem:[%s8316_s0 + $0x9e0] sm:$0xff]  ;;  %v1816_v17 = vld [vmem:[%s8316_s0 + $0x9c8] sm:$0xff] }
 0x299   : > { %4667 = vmatpush1.bf16.msra.mxu0 %v6853_v33  ;;  %4831 = vmatpush1.bf16.msra.mxu1 %v6855_v34  ;;  %v1779_v33 = vld [vmem:[%s8316_s0 + $0x8a0] sm:$0xff]  ;;  %v1776_v34 = vld [vmem:[%s8316_s0 + $0x888] sm:$0xff] }
 0x29a   : > { %4668 = vmatprep.subr.bf16.mxu0 %v6862_v36  ;;  %4832 = vmatprep.subr.bf16.mxu1 %v6864_v37  ;;  %v1780_v36 = vld [vmem:[%s8316_s0 + $0x8a8] sm:$0xff]  ;;  %v6901_v37 = vcombine.low %v1767_v62, %v1771_v6  ;;  %v6910_v44 = vcombine.high %v1775_v30, %v1779_v33  ;;  %v1815_v6 = vld [vmem:[%s8316_s0 + $0x9c0] sm:$0xff] }
 0x29b   : > { %v6912_v40 = vcombine.high %v1776_v34, %v1780_v36  ;;  %v6911_v49 = vcombine.low %v1776_v34, %v1780_v36  ;;  %v1827_v34 = vld [vmem:[%s8316_s0 + $0xa20] sm:$0xff]  ;;  %v1824_v36 = vld [vmem:[%s8316_s0 + $0xa08] sm:$0xff] }
 0x29d   : > { %4669 = vmatpush1.bf16.msra.mxu0 %v6861_v42  ;;  %4833 = vmatpush1.bf16.msra.mxu1 %v6863_v43  ;;  %v1787_v42 = vld [vmem:[%s8316_s0 + $0x8e0] sm:$0xff]  ;;  %v1784_v43 = vld [vmem:[%s8316_s0 + $0x8c8] sm:$0xff] }
 0x29e   : > { %4670 = vmatprep.subr.bf16.mxu0 %v6870_v46  ;;  %4834 = vmatprep.subr.bf16.mxu1 %v6872_v48  ;;  %v1788_v46 = vld [vmem:[%s8316_s0 + $0x8e8] sm:$0xff]  ;;  %v6909_v48 = vcombine.low %v1775_v30, %v1779_v33  ;;  %v6918_v52 = vcombine.high %v1783_v41, %v1787_v42  ;;  %v1823_v33 = vld [vmem:[%s8316_s0 + $0xa00] sm:$0xff] }
 0x29f   : > { %v6920_v54 = vcombine.high %v1784_v43, %v1788_v46  ;;  %v6919_v4 = vcombine.low %v1784_v43, %v1788_v46  ;;  %v1835_v43 = vld [vmem:[%s8316_s0 + $0xa60] sm:$0xff]  ;;  %v1832_v46 = vld [vmem:[%s8316_s0 + $0xa48] sm:$0xff] }
 0x2a1   : > { %4671 = vmatpush1.bf16.msra.mxu0 %v6869_v21  ;;  %4835 = vmatpush1.bf16.msra.mxu1 %v6871_v59  ;;  %v1795_v21 = vld [vmem:[%s8316_s0 + $0x920] sm:$0xff]  ;;  %v1792_v59 = vld [vmem:[%s8316_s0 + $0x908] sm:$0xff] }
 0x2a2   : > { %4672 = vmatprep.subr.bf16.mxu0 %v6878_v10  ;;  %4836 = vmatprep.subr.bf16.mxu1 %v6880_v3  ;;  %v1796_v10 = vld [vmem:[%s8316_s0 + $0x928] sm:$0xff]  ;;  %v6917_v3 = vcombine.low %v1783_v41, %v1787_v42  ;;  %v6926_v5 = vcombine.high %v1791_v16, %v1795_v21  ;;  %v1831_v42 = vld [vmem:[%s8316_s0 + $0xa40] sm:$0xff] }
 0x2a3   : > { %v6928_v7 = vcombine.high %v1792_v59, %v1796_v10  ;;  %v6927_v55 = vcombine.low %v1792_v59, %v1796_v10  ;;  %v1843_v59 = vld [vmem:[%s8316_s0 + $0xaa0] sm:$0xff]  ;;  %v1840_v10 = vld [vmem:[%s8316_s0 + $0xa88] sm:$0xff] }
 0x2a5   : > { %4673 = vmatpush1.bf16.msra.mxu0 %v6877_v9  ;;  %4837 = vmatpush1.bf16.msra.mxu1 %v6879_v2  ;;  %v1803_v9 = vld [vmem:[%s8316_s0 + $0x960] sm:$0xff]  ;;  %v1800_v2 = vld [vmem:[%s8316_s0 + $0x948] sm:$0xff] }
 0x2a6   : > { %4674 = vmatprep.subr.bf16.mxu0 %v6886_v35  ;;  %4838 = vmatprep.subr.bf16.mxu1 %v6888_v57  ;;  %v1804_v35 = vld [vmem:[%s8316_s0 + $0x968] sm:$0xff]  ;;  %v6925_v57 = vcombine.low %v1791_v16, %v1795_v21  ;;  %v6934_v15 = vcombine.high %v1799_v8, %v1803_v9  ;;  %v1839_v21 = vld [vmem:[%s8316_s0 + $0xa80] sm:$0xff] }
 0x2a7   : > { %v6936_v56 = vcombine.high %v1800_v2, %v1804_v35 }
 0x2a9   : > { %4675 = vmatpush1.bf16.msra.mxu0 %v6885_v20  ;;  %4839 = vmatpush1.bf16.msra.mxu1 %v6887_v58  ;;  %v1811_v20 = vld [vmem:[%s8316_s0 + $0x9a0] sm:$0xff]  ;;  %v1808_v58 = vld [vmem:[%s8316_s0 + $0x988] sm:$0xff] }
 0x2aa   : > { %4685 = vmatprep.subr.bf16.mxu0 %v6894_v61  ;;  %4849 = vmatprep.subr.bf16.mxu1 %v6896_v12  ;;  %v6933_v61 = vcombine.low %v1799_v8, %v1803_v9  ;;  %v6935_v12 = vcombine.low %v1800_v2, %v1804_v35  ;;  %v6942_v51 = vcombine.high %v1807_v11, %v1811_v20  ;;  %v1847_v9 = vld [vmem:[%s8316_s0 + $0xac0] sm:$0xff]  ;;  %v1848_v35 = vld [vmem:[%s8316_s0 + $0xac8] sm:$0xff] }
 0x2ab   : > { %v6944_v62 = vcombine.high %v1808_v58, %v1812_v60  ;;  %v1851_v2 = vld [vmem:[%s8316_s0 + $0xae0] sm:$0xff] }
 0x2ac   : > { %4677 = vmatmul.mubr.bf16.vlgmr.msra.gmra.mrb[8].mxu0 %v8671_v18  ;;  %4841 = vmatmul.mubr.bf16.vlgmr.msra.gmra.mrb[8].mxu1 %v8671_v18 }
 0x2ad   : > { %4686 = vmatpush1.bf16.msra.mxu0 %v6893_v45  ;;  %4717 = vmatprep.mubr.bf16.mxu0 %v8673_v29  ;;  %v1820_v45 = vld [vmem:[%s8316_s0 + $0x9e8] sm:$0xff] }
 0x2ae   : > { %4850 = vmatpush1.bf16.msra.mxu1 %v6895_v22  ;;  %4881 = vmatprep.mubr.bf16.mxu1 %v8673_v29  ;;  %v6941_v22 = vcombine.low %v1807_v11, %v1811_v20  ;;  %v6952_v30 = vcombine.high %v1816_v17, %v1820_v45  ;;  %v1855_v20 = vld [vmem:[%s8316_s0 + $0xb00] sm:$0xff] }
 0x2af   : > { %4687 = vmatprep.subr.bf16.mxu0 %v6902_v28  ;;  %4851 = vmatprep.subr.bf16.mxu1 %v6904_v32  ;;  %v6943_v28 = vcombine.low %v1808_v58, %v1812_v60  ;;  %v6950_v32 = vcombine.high %v1815_v6, %v1819_v14  ;;  %v1859_v58 = vld [vmem:[%s8316_s0 + $0xb20] sm:$0xff]  ;;  %v1856_v60 = vld [vmem:[%s8316_s0 + $0xb08] sm:$0xff] }
 0x2b1   : > { %4688 = vmatpush1.bf16.msra.mxu0 %v6901_v37  ;;  %v1828_v37 = vld [vmem:[%s8316_s0 + $0xa28] sm:$0xff] }
 0x2b2   : > { %4852 = vmatpush1.bf16.msra.mxu1 %v6903_v38  ;;  %4689 = vmatprep.subr.bf16.mxu0 %v6910_v44  ;;  %v6949_v38 = vcombine.low %v1815_v6, %v1819_v14  ;;  %v6951_v44 = vcombine.low %v1816_v17, %v1820_v45  ;;  %v6960_v41 = vcombine.high %v1824_v36, %v1828_v37  ;;  %v1863_v14 = vld [vmem:[%s8316_s0 + $0xb40] sm:$0xff]  ;;  %v1864_v45 = vld [vmem:[%s8316_s0 + $0xb48] sm:$0xff] }
 0x2b3   : > { %4853 = vmatprep.subr.bf16.mxu1 %v6912_v40  ;;  %v6958_v40 = vcombine.high %v1823_v33, %v1827_v34  ;;  %v1867_v17 = vld [vmem:[%s8316_s0 + $0xb60] sm:$0xff] }
 0x2b5   : > { %4690 = vmatpush1.bf16.msra.mxu0 %v6909_v48  ;;  %v1836_v48 = vld [vmem:[%s8316_s0 + $0xa68] sm:$0xff] }
 0x2b6   : > { %4854 = vmatpush1.bf16.msra.mxu1 %v6911_v49  ;;  %4691 = vmatprep.subr.bf16.mxu0 %v6918_v52  ;;  %v6957_v49 = vcombine.low %v1823_v33, %v1827_v34  ;;  %v6959_v52 = vcombine.low %v1824_v36, %v1828_v37  ;;  %v6968_v16 = vcombine.high %v1832_v46, %v1836_v48  ;;  %v1871_v34 = vld [vmem:[%s8316_s0 + $0xb80] sm:$0xff]  ;;  %v1872_v37 = vld [vmem:[%s8316_s0 + $0xb88] sm:$0xff] }
 0x2b7   : > { %4855 = vmatprep.subr.bf16.mxu1 %v6920_v54  ;;  %v6966_v54 = vcombine.high %v1831_v42, %v1835_v43  ;;  %v1875_v36 = vld [vmem:[%s8316_s0 + $0xba0] sm:$0xff] }
 0x2b9   : > { %4692 = vmatpush1.bf16.msra.mxu0 %v6917_v3  ;;  %v1844_v3 = vld [vmem:[%s8316_s0 + $0xaa8] sm:$0xff] }
 0x2ba   : > { %4856 = vmatpush1.bf16.msra.mxu1 %v6919_v4  ;;  %4693 = vmatprep.subr.bf16.mxu0 %v6926_v5  ;;  %v6965_v4 = vcombine.low %v1831_v42, %v1835_v43  ;;  %v6967_v5 = vcombine.low %v1832_v46, %v1836_v48  ;;  %v6976_v8 = vcombine.high %v1840_v10, %v1844_v3  ;;  %v1879_v43 = vld [vmem:[%s8316_s0 + $0xbc0] sm:$0xff]  ;;  %v1880_v48 = vld [vmem:[%s8316_s0 + $0xbc8] sm:$0xff] }
 0x2bb   : > { %4857 = vmatprep.subr.bf16.mxu1 %v6928_v7  ;;  %v6974_v7 = vcombine.high %v1839_v21, %v1843_v59  ;;  %v1883_v46 = vld [vmem:[%s8316_s0 + $0xbe0] sm:$0xff] }
 0x2bd   : > { %4694 = vmatpush1.bf16.msra.mxu0 %v6925_v57  ;;  %v1852_v57 = vld [vmem:[%s8316_s0 + $0xae8] sm:$0xff] }
 0x2be   : > { %4858 = vmatpush1.bf16.msra.mxu1 %v6927_v55  ;;  %4695 = vmatprep.subr.bf16.mxu0 %v6934_v15  ;;  %v6973_v55 = vcombine.low %v1839_v21, %v1843_v59  ;;  %v6975_v15 = vcombine.low %v1840_v10, %v1844_v3  ;;  %v6984_v11 = vcombine.high %v1848_v35, %v1852_v57  ;;  %v1887_v59 = vld [vmem:[%s8316_s0 + $0xc00] sm:$0xff]  ;;  %v1888_v3 = vld [vmem:[%s8316_s0 + $0xc08] sm:$0xff] }
 0x2bf   : > { %4859 = vmatprep.subr.bf16.mxu1 %v6936_v56  ;;  %v6982_v56 = vcombine.high %v1847_v9, %v1851_v2  ;;  %v1891_v10 = vld [vmem:[%s8316_s0 + $0xc20] sm:$0xff] }
 0x2c1   : > { %4696 = vmatpush1.bf16.msra.mxu0 %v6933_v61  ;;  %v1860_v61 = vld [vmem:[%s8316_s0 + $0xb28] sm:$0xff] }
 0x2c2   : > { %4860 = vmatpush1.bf16.msra.mxu1 %v6935_v12  ;;  %4697 = vmatprep.subr.bf16.mxu0 %v6942_v51  ;;  %v6981_v12 = vcombine.low %v1847_v9, %v1851_v2  ;;  %v6983_v51 = vcombine.low %v1848_v35, %v1852_v57  ;;  %v6992_v6 = vcombine.high %v1856_v60, %v1860_v61  ;;  %v1461_v35 = vmax.f32 %v8571_v50, 0.0  ;;  %v1895_v57 = vld [vmem:[%s8316_s0 + $0xc40] sm:$0xff] }
 0x2c3   : > { %4861 = vmatprep.subr.bf16.mxu1 %v6944_v62  ;;  %v6990_v62 = vcombine.high %v1855_v20, %v1859_v58  ;;  %v7022_v9 = vcombine.high %v1887_v59, %v1891_v10 }
 0x2c4   : > { %v8750_v50 = vpack.c.bf16 %v1461_v35, %v1461_v35 }
 0x2c5   : > { %4698 = vmatpush1.bf16.msra.mxu0 %v6941_v22  ;;  %v1868_v22 = vld [vmem:[%s8316_s0 + $0xb68] sm:$0xff] }
 0x2c6   : > { %4862 = vmatpush1.bf16.msra.mxu1 %v6943_v28  ;;  %4699 = vmatprep.subr.bf16.mxu0 %v6950_v32  ;;  %v6989_v28 = vcombine.low %v1855_v20, %v1859_v58  ;;  %v6991_v32 = vcombine.low %v1856_v60, %v1860_v61  ;;  %v7000_v33 = vcombine.high %v1864_v45, %v1868_v22  ;;  %v1903_v60 = vld [vmem:[%s8316_s0 + $0xc80] sm:$0xff] }
 0x2c7   : > { %4863 = vmatprep.subr.bf16.mxu1 %v6952_v30  ;;  %v6998_v30 = vcombine.high %v1863_v14, %v1867_v17  ;;  %v1907_v61 = vld [vmem:[%s8316_s0 + $0xca0] sm:$0xff] }
 0x2c9   : > { %4700 = vmatpush1.bf16.msra.mxu0 %v6949_v38  ;;  %v1876_v38 = vld [vmem:[%s8316_s0 + $0xba8] sm:$0xff] }
 0x2ca   : > { %4864 = vmatpush1.bf16.msra.mxu1 %v6951_v44  ;;  %4701 = vmatprep.subr.bf16.mxu0 %v6958_v40  ;;  %v6997_v44 = vcombine.low %v1863_v14, %v1867_v17  ;;  %v6999_v40 = vcombine.low %v1864_v45, %v1868_v22  ;;  %v7008_v42 = vcombine.high %v1872_v37, %v1876_v38  ;;  %v1911_v22 = vld [vmem:[%s8316_s0 + $0xcc0] sm:$0xff] }
 0x2cb   : > { %4865 = vmatprep.subr.bf16.mxu1 %v6960_v41  ;;  %v7006_v41 = vcombine.high %v1871_v34, %v1875_v36  ;;  %v7038_v17 = vcombine.high %v1903_v60, %v1907_v61 }
 0x2cd   : > { %4702 = vmatpush1.bf16.msra.mxu0 %v6957_v49  ;;  %v1884_v49 = vld [vmem:[%s8316_s0 + $0xbe8] sm:$0xff] }
 0x2ce   : > { %4866 = vmatpush1.bf16.msra.mxu1 %v6959_v52  ;;  %4703 = vmatprep.subr.bf16.mxu0 %v6966_v54  ;;  %v7005_v52 = vcombine.low %v1871_v34, %v1875_v36  ;;  %v7007_v54 = vcombine.low %v1872_v37, %v1876_v38  ;;  %v7016_v21 = vcombine.high %v1880_v48, %v1884_v49  ;;  %v1919_v38 = vld [vmem:[%s8316_s0 + $0xd00] sm:$0xff] }
 0x2cf   : > { %4867 = vmatprep.subr.bf16.mxu1 %v6968_v16  ;;  %v7014_v16 = vcombine.high %v1879_v43, %v1883_v46 }
 0x2d1   : > { %4704 = vmatpush1.bf16.msra.mxu0 %v6965_v4  ;;  %v1892_v4 = vld [vmem:[%s8316_s0 + $0xc28] sm:$0xff] }
 0x2d2   : > { %4868 = vmatpush1.bf16.msra.mxu1 %v6967_v5  ;;  %4705 = vmatprep.subr.bf16.mxu0 %v6974_v7  ;;  %v7013_v5 = vcombine.low %v1879_v43, %v1883_v46  ;;  %v7015_v7 = vcombine.low %v1880_v48, %v1884_v49  ;;  %v7024_v2 = vcombine.high %v1888_v3, %v1892_v4  ;;  %v1927_v49 = vld [vmem:[%s8316_s0 + $0xd40] sm:$0xff] }
 0x2d3   : > { %4869 = vmatprep.subr.bf16.mxu1 %v6976_v8  ;;  %v1458_v8 = vmax.f32 %v8597_v1, 0.0  ;;  %v7023_v1 = vcombine.low %v1888_v3, %v1892_v4  ;;  %v1935_v4 = vld [vmem:[%s8316_s0 + $0xd80] sm:$0xff] }
 0x2d5   : > { %4706 = vmatpush1.bf16.msra.mxu0 %v6973_v55  ;;  %v1899_v55 = vld [vmem:[%s8316_s0 + $0xc60] sm:$0xff]  ;;  %v8745_v20 = vpack.c.bf16 %v1458_v8, %v1458_v8  ;;  %v1940_v8 = vld [vmem:[%s8316_s0 + $0xda8] sm:$0xff] }
 0x2d6   : > { %4870 = vmatpush1.bf16.msra.mxu1 %v6975_v15  ;;  %4707 = vmatprep.subr.bf16.mxu0 %v6982_v56  ;;  %v7021_v15 = vcombine.low %v1887_v59, %v1891_v10  ;;  %v1896_v56 = vld [vmem:[%s8316_s0 + $0xc48] sm:$0xff]  ;;  %v7030_v58 = vcombine.high %v1895_v57, %v1899_v55 }
 0x2d7   : > { %4871 = vmatprep.subr.bf16.mxu1 %v6984_v11  ;;  %v1900_v11 = vld [vmem:[%s8316_s0 + $0xc68] sm:$0xff] }
 0x2d8   : > { %v7031_v14 = vcombine.low %v1896_v56, %v1900_v11 }
 0x2d9   : > { %4708 = vmatpush1.bf16.msra.mxu0 %v6981_v12  ;;  %v7032_v12 = vcombine.high %v1896_v56, %v1900_v11  ;;  %v1944_v56 = vld [vmem:[%s8316_s0 + $0xdc8] sm:$0xff] }
 0x2da   : > { %4872 = vmatpush1.bf16.msra.mxu1 %v6983_v51  ;;  %4709 = vmatprep.subr.bf16.mxu0 %v6990_v62  ;;  %v1904_v51 = vld [vmem:[%s8316_s0 + $0xc88] sm:$0xff] }
 0x2db   : > { %4873 = vmatprep.subr.bf16.mxu1 %v6992_v6  ;;  %v1908_v62 = vld [vmem:[%s8316_s0 + $0xca8] sm:$0xff]  ;;  %v7029_v6 = vcombine.low %v1895_v57, %v1899_v55  ;;  %v1943_v55 = vld [vmem:[%s8316_s0 + $0xdc0] sm:$0xff] }
 0x2dc   : > { %v7040_v45 = vcombine.high %v1904_v51, %v1908_v62  ;;  %v7039_v34 = vcombine.low %v1904_v51, %v1908_v62  ;;  %v1948_v11 = vld [vmem:[%s8316_s0 + $0xde8] sm:$0xff]  ;;  %v1955_v51 = vld [vmem:[%s8316_s0 + $0xe20] sm:$0xff] }
 0x2dd   : > { %4710 = vmatpush1.bf16.msra.mxu0 %v6989_v28  ;;  %v1915_v28 = vld [vmem:[%s8316_s0 + $0xce0] sm:$0xff]  ;;  %v1952_v62 = vld [vmem:[%s8316_s0 + $0xe08] sm:$0xff] }
 0x2de   : > { %4874 = vmatpush1.bf16.msra.mxu1 %v6991_v32  ;;  %4711 = vmatprep.subr.bf16.mxu0 %v6998_v30  ;;  %v1912_v32 = vld [vmem:[%s8316_s0 + $0xcc8] sm:$0xff]  ;;  %v7046_v36 = vcombine.high %v1911_v22, %v1915_v28 }
 0x2df   : > { %4875 = vmatprep.subr.bf16.mxu1 %v7000_v33  ;;  %v1916_v30 = vld [vmem:[%s8316_s0 + $0xce8] sm:$0xff]  ;;  %v7037_v33 = vcombine.low %v1903_v60, %v1907_v61  ;;  %v7080_v61 = vcombine.high %v1944_v56, %v1948_v11 }
 0x2e0   : > { %v7048_v37 = vcombine.high %v1912_v32, %v1916_v30  ;;  %v7047_v43 = vcombine.low %v1912_v32, %v1916_v30  ;;  %v1963_v32 = vld [vmem:[%s8316_s0 + $0xe60] sm:$0xff]  ;;  %v1960_v30 = vld [vmem:[%s8316_s0 + $0xe48] sm:$0xff] }
 0x2e1   : > { %4712 = vmatpush1.bf16.msra.mxu0 %v6997_v44  ;;  %v1923_v44 = vld [vmem:[%s8316_s0 + $0xd20] sm:$0xff] }
 0x2e2   : > { %4876 = vmatpush1.bf16.msra.mxu1 %v6999_v40  ;;  %4713 = vmatprep.subr.bf16.mxu0 %v7006_v41  ;;  %v1920_v40 = vld [vmem:[%s8316_s0 + $0xd08] sm:$0xff]  ;;  %v7054_v46 = vcombine.high %v1919_v38, %v1923_v44 }
 0x2e3   : > { %4877 = vmatprep.subr.bf16.mxu1 %v7008_v42  ;;  %v1924_v41 = vld [vmem:[%s8316_s0 + $0xd28] sm:$0xff]  ;;  %v7045_v42 = vcombine.low %v1911_v22, %v1915_v28  ;;  %v1959_v28 = vld [vmem:[%s8316_s0 + $0xe40] sm:$0xff] }
 0x2e4   : > { %v7056_v48 = vcombine.high %v1920_v40, %v1924_v41  ;;  %v7055_v59 = vcombine.low %v1920_v40, %v1924_v41  ;;  %v1971_v40 = vld [vmem:[%s8316_s0 + $0xea0] sm:$0xff]  ;;  %v1968_v41 = vld [vmem:[%s8316_s0 + $0xe88] sm:$0xff] }
 0x2e5   : > { %4714 = vmatpush1.bf16.msra.mxu0 %v7005_v52  ;;  %v1931_v52 = vld [vmem:[%s8316_s0 + $0xd60] sm:$0xff] }
 0x2e6   : > { %4878 = vmatpush1.bf16.msra.mxu1 %v7007_v54  ;;  %4715 = vmatprep.subr.bf16.mxu0 %v7014_v16  ;;  %v1928_v54 = vld [vmem:[%s8316_s0 + $0xd48] sm:$0xff]  ;;  %v7062_v10 = vcombine.high %v1927_v49, %v1931_v52 }
 0x2e7   : > { %4879 = vmatprep.subr.bf16.mxu1 %v7016_v21  ;;  %v1932_v16 = vld [vmem:[%s8316_s0 + $0xd68] sm:$0xff]  ;;  %v7053_v21 = vcombine.low %v1919_v38, %v1923_v44  ;;  %v1967_v44 = vld [vmem:[%s8316_s0 + $0xe80] sm:$0xff] }
 0x2e8   : > { %v7064_v3 = vcombine.high %v1928_v54, %v1932_v16 }
 0x2e9   : > { %4716 = vmatpush1.bf16.msra.mxu0 %v7013_v5  ;;  %v1939_v5 = vld [vmem:[%s8316_s0 + $0xda0] sm:$0xff] }
 0x2ea   : > { %4880 = vmatpush1.bf16.msra.mxu1 %v7015_v7  ;;  %4726 = vmatprep.subr.bf16.mxu0 %v7022_v9  ;;  %v1936_v7 = vld [vmem:[%s8316_s0 + $0xd88] sm:$0xff]  ;;  %v7061_v9 = vcombine.low %v1927_v49, %v1931_v52  ;;  %v7070_v35 = vcombine.high %v1935_v4, %v1939_v5  ;;  %v1975_v52 = vld [vmem:[%s8316_s0 + $0xec0] sm:$0xff] }
 0x2eb   : > { %4890 = vmatprep.subr.bf16.mxu1 %v7024_v2  ;;  %v7063_v2 = vcombine.low %v1928_v54, %v1932_v16  ;;  %v7072_v57 = vcombine.high %v1936_v7, %v1940_v8  ;;  %v1979_v54 = vld [vmem:[%s8316_s0 + $0xee0] sm:$0xff]  ;;  %v1976_v16 = vld [vmem:[%s8316_s0 + $0xec8] sm:$0xff] }
 0x2ec   : > { %4718 = vmatmul.mubr.bf16.vlgmr.msra.gmra.mrb[8].mxu0 %v8745_v20 }
 0x2ed   : > { %4882 = vmatmul.mubr.bf16.vlgmr.msra.gmra.mrb[8].mxu1 %v8745_v20  ;;  %4727 = vmatpush1.bf16.msra.mxu0 %v7021_v15  ;;  %v1947_v15 = vld [vmem:[%s8316_s0 + $0xde0] sm:$0xff] }
 0x2ee   : > { %4758 = vmatprep.mubr.bf16.mxu0 %v8750_v50  ;;  %4891 = vmatpush1.bf16.msra.mxu1 %v7023_v1  ;;  %v7069_v1 = vcombine.low %v1935_v4, %v1939_v5  ;;  %v7078_v60 = vcombine.high %v1943_v55, %v1947_v15  ;;  %v1983_v5 = vld [vmem:[%s8316_s0 + $0xf00] sm:$0xff] }
 0x2ef   : > { %4922 = vmatprep.mubr.bf16.mxu1 %v8750_v50  ;;  %4728 = vmatprep.subr.bf16.mxu0 %v7030_v58  ;;  %v7071_v58 = vcombine.low %v1936_v7, %v1940_v8  ;;  %v1987_v7 = vld [vmem:[%s8316_s0 + $0xf20] sm:$0xff]  ;;  %v1984_v8 = vld [vmem:[%s8316_s0 + $0xf08] sm:$0xff] }
 0x2f0   : > { %4892 = vmatprep.subr.bf16.mxu1 %v7032_v12  ;;  %v1951_v12 = vld [vmem:[%s8316_s0 + $0xe00] sm:$0xff] }
 0x2f1   : > { %4729 = vmatpush1.bf16.msra.mxu0 %v7029_v6  ;;  %v1956_v6 = vld [vmem:[%s8316_s0 + $0xe28] sm:$0xff] }
 0x2f2   : > { %4893 = vmatpush1.bf16.msra.mxu1 %v7031_v14  ;;  %4730 = vmatprep.subr.bf16.mxu0 %v7038_v17  ;;  %v7077_v14 = vcombine.low %v1943_v55, %v1947_v15  ;;  %v7079_v17 = vcombine.low %v1944_v56, %v1948_v11  ;;  %v7088_v22 = vcombine.high %v1952_v62, %v1956_v6  ;;  %v1991_v15 = vld [vmem:[%s8316_s0 + $0xf40] sm:$0xff]  ;;  %v1992_v11 = vld [vmem:[%s8316_s0 + $0xf48] sm:$0xff] }
 0x2f3   : > { %4894 = vmatprep.subr.bf16.mxu1 %v7040_v45  ;;  %v7086_v45 = vcombine.high %v1951_v12, %v1955_v51  ;;  %v1995_v56 = vld [vmem:[%s8316_s0 + $0xf60] sm:$0xff] }
 0x2f5   : > { %4731 = vmatpush1.bf16.msra.mxu0 %v7037_v33  ;;  %v1964_v33 = vld [vmem:[%s8316_s0 + $0xe68] sm:$0xff] }
 0x2f6   : > { %4895 = vmatpush1.bf16.msra.mxu1 %v7039_v34  ;;  %4732 = vmatprep.subr.bf16.mxu0 %v7046_v36  ;;  %v7085_v34 = vcombine.low %v1951_v12, %v1955_v51  ;;  %v7087_v36 = vcombine.low %v1952_v62, %v1956_v6  ;;  %v7096_v38 = vcombine.high %v1960_v30, %v1964_v33  ;;  %v1999_v51 = vld [vmem:[%s8316_s0 + $0xf80] sm:$0xff]  ;;  %v2000_v6 = vld [vmem:[%s8316_s0 + $0xf88] sm:$0xff] }
 0x2f7   : > { %4896 = vmatprep.subr.bf16.mxu1 %v7048_v37  ;;  %v7094_v37 = vcombine.high %v1959_v28, %v1963_v32  ;;  %v2003_v62 = vld [vmem:[%s8316_s0 + $0xfa0] sm:$0xff] }
 0x2f9   : > { %4733 = vmatpush1.bf16.msra.mxu0 %v7045_v42  ;;  %v1972_v42 = vld [vmem:[%s8316_s0 + $0xea8] sm:$0xff] }
 0x2fa   : > { %4897 = vmatpush1.bf16.msra.mxu1 %v7047_v43  ;;  %4734 = vmatprep.subr.bf16.mxu0 %v7054_v46  ;;  %v7093_v43 = vcombine.low %v1959_v28, %v1963_v32  ;;  %v7095_v46 = vcombine.low %v1960_v30, %v1964_v33  ;;  %v7104_v49 = vcombine.high %v1968_v41, %v1972_v42  ;;  %v2007_v32 = vld [vmem:[%s8316_s0 + $0xfc0] sm:$0xff]  ;;  %v2008_v33 = vld [vmem:[%s8316_s0 + $0xfc8] sm:$0xff] }
 0x2fb   : > { %4898 = vmatprep.subr.bf16.mxu1 %v7056_v48  ;;  %v7102_v48 = vcombine.high %v1967_v44, %v1971_v40  ;;  %v2011_v30 = vld [vmem:[%s8316_s0 + $0xfe0] sm:$0xff] }
 0x2fd   : > { %4735 = vmatpush1.bf16.msra.mxu0 %v7053_v21  ;;  %v1980_v21 = vld [vmem:[%s8316_s0 + $0xee8] sm:$0xff] }
 0x2fe   : > { %4899 = vmatpush1.bf16.msra.mxu1 %v7055_v59  ;;  %4736 = vmatprep.subr.bf16.mxu0 %v7062_v10  ;;  %v7101_v59 = vcombine.low %v1967_v44, %v1971_v40  ;;  %v7103_v10 = vcombine.low %v1968_v41, %v1972_v42  ;;  %v7112_v4 = vcombine.high %v1976_v16, %v1980_v21  ;;  %v1505_v40 = vld [vmem:[%s8316_s0 + $0x10] sm:$0xff]  ;;  %v1506_v42 = vld [vmem:[%s8316_s0 + $0x18] sm:$0xff] }
 0x2ff   : > { %4900 = vmatprep.subr.bf16.mxu1 %v7064_v3  ;;  %v7110_v3 = vcombine.high %v1975_v52, %v1979_v54  ;;  %v1509_v41 = vld [vmem:[%s8316_s0 + $0x30] sm:$0xff] }
 0x301   : > { %4737 = vmatpush1.bf16.msra.mxu0 %v7061_v9  ;;  %v1988_v9 = vld [vmem:[%s8316_s0 + $0xf28] sm:$0xff] }
 0x302   : > { %4901 = vmatpush1.bf16.msra.mxu1 %v7063_v2  ;;  %4738 = vmatprep.subr.bf16.mxu0 %v7070_v35  ;;  %v7109_v2 = vcombine.low %v1975_v52, %v1979_v54  ;;  %v7111_v35 = vcombine.low %v1976_v16, %v1980_v21  ;;  %v7120_v55 = vcombine.high %v1984_v8, %v1988_v9  ;;  %v1513_v16 = vld [vmem:[%s8316_s0 + $0x50] sm:$0xff] }
 0x303   : > { %4902 = vmatprep.subr.bf16.mxu1 %v7072_v57  ;;  %v7118_v57 = vcombine.high %v1983_v5, %v1987_v7  ;;  %v6642_v52 = vcombine.high %v1505_v40, %v1509_v41  ;;  %v1517_v21 = vld [vmem:[%s8316_s0 + $0x70] sm:$0xff] }
 0x305   : > { %4739 = vmatpush1.bf16.msra.mxu0 %v7069_v1  ;;  %v1996_v1 = vld [vmem:[%s8316_s0 + $0xf68] sm:$0xff] }
 0x306   : > { %4903 = vmatpush1.bf16.msra.mxu1 %v7071_v58  ;;  %4740 = vmatprep.subr.bf16.mxu0 %v7078_v60  ;;  %v7117_v58 = vcombine.low %v1983_v5, %v1987_v7  ;;  %v7119_v60 = vcombine.low %v1984_v8, %v1988_v9  ;;  %v7128_v12 = vcombine.high %v1992_v11, %v1996_v1  ;;  %v1521_v7 = vld [vmem:[%s8316_s0 + $0x90] sm:$0xff] }
 0x307   : > { %4904 = vmatprep.subr.bf16.mxu1 %v7080_v61  ;;  %v7126_v61 = vcombine.high %v1991_v15, %v1995_v56  ;;  %v1525_v8 = vld [vmem:[%s8316_s0 + $0xb0] sm:$0xff] }
 0x309   : > { %4741 = vmatpush1.bf16.msra.mxu0 %v7077_v14  ;;  %v2004_v14 = vld [vmem:[%s8316_s0 + $0xfa8] sm:$0xff] }
 0x30a   : > { %4905 = vmatpush1.bf16.msra.mxu1 %v7079_v17  ;;  %4742 = vmatprep.subr.bf16.mxu0 %v7086_v45  ;;  %v7125_v17 = vcombine.low %v1991_v15, %v1995_v56  ;;  %v7127_v45 = vcombine.low %v1992_v11, %v1996_v1  ;;  %v7136_v28 = vcombine.high %v2000_v6, %v2004_v14  ;;  %v1529_v11 = vld [vmem:[%s8316_s0 + $0xd0] sm:$0xff] }
 0x30b   : > { %4906 = vmatprep.subr.bf16.mxu1 %v7088_v22  ;;  %v7134_v22 = vcombine.high %v1999_v51, %v2003_v62  ;;  %v6658_v15 = vcombine.high %v1521_v7, %v1525_v8  ;;  %v1533_v1 = vld [vmem:[%s8316_s0 + $0xf0] sm:$0xff] }
 0x30d   : > { %4743 = vmatpush1.bf16.msra.mxu0 %v7085_v34  ;;  %v2012_v34 = vld [vmem:[%s8316_s0 + $0xfe8] sm:$0xff] }
 0x30e   : > { %4907 = vmatpush1.bf16.msra.mxu1 %v7087_v36  ;;  %4744 = vmatprep.subr.bf16.mxu0 %v7094_v37  ;;  %v7133_v36 = vcombine.low %v1999_v51, %v2003_v62  ;;  %v7135_v37 = vcombine.low %v2000_v6, %v2004_v14  ;;  %v7144_v44 = vcombine.high %v2008_v33, %v2012_v34  ;;  %v1537_v62 = vld [vmem:[%s8316_s0 + $0x110] sm:$0xff]  ;;  %v1538_v14 = vld [vmem:[%s8316_s0 + $0x118] sm:$0xff] }
 0x30f   : > { %4908 = vmatprep.subr.bf16.mxu1 %v7096_v38  ;;  %v7142_v38 = vcombine.high %v2007_v32, %v2011_v30  ;;  %v6666_v51 = vcombine.high %v1529_v11, %v1533_v1  ;;  %v1541_v6 = vld [vmem:[%s8316_s0 + $0x130] sm:$0xff] }
 0x311   : > { %4745 = vmatpush1.bf16.msra.mxu0 %v7093_v43  ;;  %v1510_v43 = vld [vmem:[%s8316_s0 + $0x38] sm:$0xff] }
 0x312   : > { %4909 = vmatpush1.bf16.msra.mxu1 %v7095_v46  ;;  %4746 = vmatprep.subr.bf16.mxu0 %v7102_v48  ;;  %v7141_v46 = vcombine.low %v2007_v32, %v2011_v30  ;;  %v7143_v48 = vcombine.low %v2008_v33, %v2012_v34  ;;  %v6644_v54 = vcombine.high %v1506_v42, %v1510_v43  ;;  %v1545_v30 = vld [vmem:[%s8316_s0 + $0x150] sm:$0xff]  ;;  %v1546_v34 = vld [vmem:[%s8316_s0 + $0x158] sm:$0xff] }
 0x313   : > { %4910 = vmatprep.subr.bf16.mxu1 %v7104_v49  ;;  %v1460_v49 = vmax.f32 %v8605_v13, 0.0  ;;  %v6643_v5 = vcombine.low %v1506_v42, %v1510_v43  ;;  %v6650_v13 = vcombine.high %v1513_v16, %v1517_v21  ;;  %v1549_v33 = vld [vmem:[%s8316_s0 + $0x170] sm:$0xff]  ;;  %v1554_v43 = vld [vmem:[%s8316_s0 + $0x198] sm:$0xff] }
 0x314   : > { %v1557_v42 = vld [vmem:[%s8316_s0 + $0x1b0] sm:$0xff] }
 0x315   : > { %4747 = vmatpush1.bf16.msra.mxu0 %v7101_v59  ;;  %v6641_v59 = vcombine.low %v1505_v40, %v1509_v41  ;;  %v1553_v41 = vld [vmem:[%s8316_s0 + $0x190] sm:$0xff] }
 0x316   : > { %4911 = vmatpush1.bf16.msra.mxu1 %v7103_v10  ;;  %4748 = vmatprep.subr.bf16.mxu0 %v7110_v3  ;;  %v1514_v10 = vld [vmem:[%s8316_s0 + $0x58] sm:$0xff] }
 0x317   : > { %4912 = vmatprep.subr.bf16.mxu1 %v7112_v4  ;;  %v1518_v3 = vld [vmem:[%s8316_s0 + $0x78] sm:$0xff]  ;;  %v8818_v4 = vpack.c.bf16 %v1460_v49, %v1460_v49 }
 0x318   : > { %v6652_v9 = vcombine.high %v1514_v10, %v1518_v3 }
 0x319   : > { %4749 = vmatpush1.bf16.msra.mxu0 %v7109_v2  ;;  %v1522_v2 = vld [vmem:[%s8316_s0 + $0x98] sm:$0xff] }
 0x31a   : > { %4913 = vmatpush1.bf16.msra.mxu1 %v7111_v35  ;;  %4750 = vmatprep.subr.bf16.mxu0 %v7118_v57  ;;  %v1526_v35 = vld [vmem:[%s8316_s0 + $0xb8] sm:$0xff]  ;;  %v6649_v57 = vcombine.low %v1513_v16, %v1517_v21  ;;  %v1561_v16 = vld [vmem:[%s8316_s0 + $0x1d0] sm:$0xff] }
 0x31b   : > { %4914 = vmatprep.subr.bf16.mxu1 %v7120_v55  ;;  %v6651_v55 = vcombine.low %v1514_v10, %v1518_v3  ;;  %v6660_v56 = vcombine.high %v1522_v2, %v1526_v35  ;;  %v1565_v21 = vld [vmem:[%s8316_s0 + $0x1f0] sm:$0xff]  ;;  %v1566_v10 = vld [vmem:[%s8316_s0 + $0x1f8] sm:$0xff]  ;;  %v6689_v3 = vcombine.low %v1553_v41, %v1557_v42 }
 0x31d   : > { %4751 = vmatpush1.bf16.msra.mxu0 %v7117_v58  ;;  %v1530_v58 = vld [vmem:[%s8316_s0 + $0xd8] sm:$0xff] }
 0x31e   : > { %4915 = vmatpush1.bf16.msra.mxu1 %v7119_v60  ;;  %4752 = vmatprep.subr.bf16.mxu0 %v7126_v61  ;;  %v1534_v60 = vld [vmem:[%s8316_s0 + $0xf8] sm:$0xff]  ;;  %v6657_v61 = vcombine.low %v1521_v7, %v1525_v8  ;;  %v1569_v8 = vld [vmem:[%s8316_s0 + $0x210] sm:$0xff] }
 0x31f   : > { %4916 = vmatprep.subr.bf16.mxu1 %v7128_v12  ;;  %v6659_v12 = vcombine.low %v1522_v2, %v1526_v35  ;;  %v1570_v2 = vld [vmem:[%s8316_s0 + $0x218] sm:$0xff] }
 0x320   : > { %v1574_v35 = vld [vmem:[%s8316_s0 + $0x238] sm:$0xff] }
 0x321   : > { %4753 = vmatpush1.bf16.msra.mxu0 %v7125_v17  ;;  %v1542_v17 = vld [vmem:[%s8316_s0 + $0x138] sm:$0xff] }
 0x322   : > { %4917 = vmatpush1.bf16.msra.mxu1 %v7127_v45  ;;  %4754 = vmatprep.subr.bf16.mxu0 %v7134_v22  ;;  %v6665_v45 = vcombine.low %v1529_v11, %v1533_v1  ;;  %v6667_v22 = vcombine.low %v1530_v58, %v1534_v60  ;;  %v6676_v32 = vcombine.high %v1538_v14, %v1542_v17  ;;  %v1577_v11 = vld [vmem:[%s8316_s0 + $0x250] sm:$0xff] }
 0x323   : > { %4918 = vmatprep.subr.bf16.mxu1 %v7136_v28  ;;  %v6674_v28 = vcombine.high %v1537_v62, %v1541_v6  ;;  %v1581_v1 = vld [vmem:[%s8316_s0 + $0x270] sm:$0xff] }
 0x325   : > { %4755 = vmatpush1.bf16.msra.mxu0 %v7133_v36  ;;  %v1550_v36 = vld [vmem:[%s8316_s0 + $0x178] sm:$0xff] }
 0x326   : > { %4919 = vmatpush1.bf16.msra.mxu1 %v7135_v37  ;;  %4756 = vmatprep.subr.bf16.mxu0 %v7142_v38  ;;  %v6673_v37 = vcombine.low %v1537_v62, %v1541_v6  ;;  %v6675_v38 = vcombine.low %v1538_v14, %v1542_v17  ;;  %v6684_v40 = vcombine.high %v1546_v34, %v1550_v36  ;;  %v1585_v62 = vld [vmem:[%s8316_s0 + $0x290] sm:$0xff]  ;;  %v1586_v14 = vld [vmem:[%s8316_s0 + $0x298] sm:$0xff] }
 0x327   : > { %4920 = vmatprep.subr.bf16.mxu1 %v7144_v44  ;;  %v6682_v44 = vcombine.high %v1545_v30, %v1549_v33  ;;  %v6683_v49 = vcombine.low %v1546_v34, %v1550_v36  ;;  %v1589_v6 = vld [vmem:[%s8316_s0 + $0x2b0] sm:$0xff]  ;;  %v1590_v17 = vld [vmem:[%s8316_s0 + $0x2b8] sm:$0xff] }
 0x328   : > { %v1594_v34 = vld [vmem:[%s8316_s0 + $0x2d8] sm:$0xff] }
 0x329   : > { %4757 = vmatpush1.bf16.msra.mxu0 %v7141_v46  ;;  %v1558_v46 = vld [vmem:[%s8316_s0 + $0x1b8] sm:$0xff] }
 0x32a   : > { %4921 = vmatpush1.bf16.msra.mxu1 %v7143_v48  ;;  %4931 = vmatprep.subr.bf16.mxu0 %v6642_v52  ;;  %v6681_v48 = vcombine.low %v1545_v30, %v1549_v33  ;;  %v6690_v52 = vcombine.high %v1553_v41, %v1557_v42  ;;  %v1593_v30 = vld [vmem:[%s8316_s0 + $0x2d0] sm:$0xff]  ;;  %v1598_v36 = vld [vmem:[%s8316_s0 + $0x2f8] sm:$0xff] }
 0x32b   : > { %5095 = vmatprep.subr.bf16.mxu1 %v6644_v54  ;;  %v6692_v54 = vcombine.high %v1554_v43, %v1558_v46  ;;  %v1597_v33 = vld [vmem:[%s8316_s0 + $0x2f0] sm:$0xff] }
 0x32c   : > { %4759 = vmatmul.mubr.bf16.vlgmr.msra.gmra.mrb[8].mxu0 %v8818_v4  ;;  %v1601_v41 = vld [vmem:[%s8316_s0 + $0x310] sm:$0xff] }
 0x32d   : > { %4923 = vmatmul.mubr.bf16.vlgmr.msra.gmra.mrb[8].mxu1 %v8818_v4  ;;  %4932 = vmatpush1.bf16.msra.mxu0 %v6641_v59  ;;  %v1562_v59 = vld [vmem:[%s8316_s0 + $0x1d8] sm:$0xff]  ;;  %v1605_v42 = vld [vmem:[%s8316_s0 + $0x330] sm:$0xff] }
 0x32e   : > { %4963 = vmatprep.mubr.bf16.mxu0 %v8581_v0  ;;  %5096 = vmatpush1.bf16.msra.mxu1 %v6643_v5  ;;  %v6691_v5 = vcombine.low %v1554_v43, %v1558_v46  ;;  %v6700_v7 = vcombine.high %v1562_v59, %v1566_v10  ;;  %v1602_v43 = vld [vmem:[%s8316_s0 + $0x318] sm:$0xff] }
 0x32f   : > { %5127 = vmatprep.mubr.bf16.mxu1 %v8581_v0  ;;  %4933 = vmatprep.subr.bf16.mxu0 %v6650_v13  ;;  %v6668_v0 = vcombine.high %v1530_v58, %v1534_v60  ;;  %v6698_v13 = vcombine.high %v1561_v16, %v1565_v21  ;;  %v1578_v58 = vld [vmem:[%s8316_s0 + $0x258] sm:$0xff] }
 0x330   : > { %5097 = vmatprep.subr.bf16.mxu1 %v6652_v9  ;;  %v1573_v9 = vld [vmem:[%s8316_s0 + $0x230] sm:$0xff]  ;;  %v1582_v60 = vld [vmem:[%s8316_s0 + $0x278] sm:$0xff] }
 0x331   : > { %4934 = vmatpush1.bf16.msra.mxu0 %v6649_v57  ;;  %v6697_v57 = vcombine.low %v1561_v16, %v1565_v21  ;;  %v1606_v46 = vld [vmem:[%s8316_s0 + $0x338] sm:$0xff]  ;;  %v1609_v16 = vld [vmem:[%s8316_s0 + $0x350] sm:$0xff] }
 0x332   : > { %5098 = vmatpush1.bf16.msra.mxu1 %v6651_v55  ;;  %4935 = vmatprep.subr.bf16.mxu0 %v6658_v15  ;;  %v6699_v55 = vcombine.low %v1562_v59, %v1566_v10  ;;  %v6706_v15 = vcombine.high %v1569_v8, %v1573_v9  ;;  %v1613_v21 = vld [vmem:[%s8316_s0 + $0x370] sm:$0xff]  ;;  %v1610_v59 = vld [vmem:[%s8316_s0 + $0x358] sm:$0xff] }
 0x333   : > { %5099 = vmatprep.subr.bf16.mxu1 %v6660_v56  ;;  %v6708_v56 = vcombine.high %v1570_v2, %v1574_v35  ;;  %v1614_v10 = vld [vmem:[%s8316_s0 + $0x378] sm:$0xff] }
 0x335   : > { %4936 = vmatpush1.bf16.msra.mxu0 %v6657_v61  ;;  %v6705_v61 = vcombine.low %v1569_v8, %v1573_v9  ;;  %v1617_v8 = vld [vmem:[%s8316_s0 + $0x390] sm:$0xff] }
 0x336   : > { %5100 = vmatpush1.bf16.msra.mxu1 %v6659_v12  ;;  %4937 = vmatprep.subr.bf16.mxu0 %v6666_v51  ;;  %v6707_v12 = vcombine.low %v1570_v2, %v1574_v35  ;;  %v6714_v51 = vcombine.high %v1577_v11, %v1581_v1  ;;  %v1621_v9 = vld [vmem:[%s8316_s0 + $0x3b0] sm:$0xff]  ;;  %v1618_v2 = vld [vmem:[%s8316_s0 + $0x398] sm:$0xff] }
 0x337   : > { %5101 = vmatprep.subr.bf16.mxu1 %v6668_v0  ;;  %v6716_v0 = vcombine.high %v1578_v58, %v1582_v60  ;;  %v1622_v35 = vld [vmem:[%s8316_s0 + $0x3b8] sm:$0xff] }
 0x339   : > { %4938 = vmatpush1.bf16.msra.mxu0 %v6665_v45  ;;  %v6713_v45 = vcombine.low %v1577_v11, %v1581_v1  ;;  %v1625_v11 = vld [vmem:[%s8316_s0 + $0x3d0] sm:$0xff] }
 0x33a   : > { %5102 = vmatpush1.bf16.msra.mxu1 %v6667_v22  ;;  %4939 = vmatprep.subr.bf16.mxu0 %v6674_v28  ;;  %v6715_v22 = vcombine.low %v1578_v58, %v1582_v60  ;;  %v6722_v28 = vcombine.high %v1585_v62, %v1589_v6  ;;  %v1629_v1 = vld [vmem:[%s8316_s0 + $0x3f0] sm:$0xff]  ;;  %v1626_v58 = vld [vmem:[%s8316_s0 + $0x3d8] sm:$0xff] }
 0x33b   : > { %5103 = vmatprep.subr.bf16.mxu1 %v6676_v32  ;;  %v6724_v32 = vcombine.high %v1586_v14, %v1590_v17  ;;  %v1630_v60 = vld [vmem:[%s8316_s0 + $0x3f8] sm:$0xff] }
 0x33d   : > { %4940 = vmatpush1.bf16.msra.mxu0 %v6673_v37  ;;  %v6721_v37 = vcombine.low %v1585_v62, %v1589_v6  ;;  %v1633_v62 = vld [vmem:[%s8316_s0 + $0x410] sm:$0xff] }
 0x33e   : > { %5104 = vmatpush1.bf16.msra.mxu1 %v6675_v38  ;;  %4941 = vmatprep.subr.bf16.mxu0 %v6682_v44  ;;  %v6723_v38 = vcombine.low %v1586_v14, %v1590_v17  ;;  %v6730_v44 = vcombine.high %v1593_v30, %v1597_v33  ;;  %v1637_v6 = vld [vmem:[%s8316_s0 + $0x430] sm:$0xff]  ;;  %v1634_v14 = vld [vmem:[%s8316_s0 + $0x418] sm:$0xff] }
 0x33f   : > { %5105 = vmatprep.subr.bf16.mxu1 %v6684_v40  ;;  %v6732_v40 = vcombine.high %v1594_v34, %v1598_v36  ;;  %v1638_v17 = vld [vmem:[%s8316_s0 + $0x438] sm:$0xff] }
 0x341   : > { %4942 = vmatpush1.bf16.msra.mxu0 %v6681_v48  ;;  %v6729_v48 = vcombine.low %v1593_v30, %v1597_v33  ;;  %v1641_v30 = vld [vmem:[%s8316_s0 + $0x450] sm:$0xff] }
 0x342   : > { %5106 = vmatpush1.bf16.msra.mxu1 %v6683_v49  ;;  %4943 = vmatprep.subr.bf16.mxu0 %v6690_v52  ;;  %v6731_v49 = vcombine.low %v1594_v34, %v1598_v36  ;;  %v6738_v52 = vcombine.high %v1601_v41, %v1605_v42  ;;  %v1645_v33 = vld [vmem:[%s8316_s0 + $0x470] sm:$0xff]  ;;  %v6769_v34 = vcombine.low %v1633_v62, %v1637_v6  ;;  %v1642_v36 = vld [vmem:[%s8316_s0 + $0x458] sm:$0xff] }
 0x343   : > { %5107 = vmatprep.subr.bf16.mxu1 %v6692_v54  ;;  %v6740_v54 = vcombine.high %v1602_v43, %v1606_v46 }
 0x345   : > { %4944 = vmatpush1.bf16.msra.mxu0 %v6689_v3  ;;  %v6737_v3 = vcombine.low %v1601_v41, %v1605_v42  ;;  %v1653_v41 = vld [vmem:[%s8316_s0 + $0x4b0] sm:$0xff] }
 0x346   : > { %5108 = vmatpush1.bf16.msra.mxu1 %v6691_v5  ;;  %4945 = vmatprep.subr.bf16.mxu0 %v6698_v13  ;;  %v6739_v5 = vcombine.low %v1602_v43, %v1606_v46  ;;  %v6746_v13 = vcombine.high %v1609_v16, %v1613_v21  ;;  %v1650_v43 = vld [vmem:[%s8316_s0 + $0x498] sm:$0xff] }
 0x347   : > { %5109 = vmatprep.subr.bf16.mxu1 %v6700_v7  ;;  %v6748_v7 = vcombine.high %v1610_v59, %v1614_v10  ;;  %v1654_v46 = vld [vmem:[%s8316_s0 + $0x4b8] sm:$0xff] }
 0x349   : > { %4946 = vmatpush1.bf16.msra.mxu0 %v6697_v57  ;;  %v6745_v57 = vcombine.low %v1609_v16, %v1613_v21  ;;  %v1657_v16 = vld [vmem:[%s8316_s0 + $0x4d0] sm:$0xff] }
 0x34a   : > { %5110 = vmatpush1.bf16.msra.mxu1 %v6699_v55  ;;  %4947 = vmatprep.subr.bf16.mxu0 %v6706_v15  ;;  %v6747_v55 = vcombine.low %v1610_v59, %v1614_v10  ;;  %v6754_v15 = vcombine.high %v1617_v8, %v1621_v9  ;;  %v1661_v21 = vld [vmem:[%s8316_s0 + $0x4f0] sm:$0xff]  ;;  %v1658_v59 = vld [vmem:[%s8316_s0 + $0x4d8] sm:$0xff] }
 0x34b   : > { %5111 = vmatprep.subr.bf16.mxu1 %v6708_v56  ;;  %v6756_v56 = vcombine.high %v1618_v2, %v1622_v35 }
 0x34d   : > { %4948 = vmatpush1.bf16.msra.mxu0 %v6705_v61  ;;  %v6753_v61 = vcombine.low %v1617_v8, %v1621_v9  ;;  %v1666_v8 = vld [vmem:[%s8316_s0 + $0x518] sm:$0xff] }
 0x34e   : > { %5112 = vmatpush1.bf16.msra.mxu1 %v6707_v12  ;;  %4949 = vmatprep.subr.bf16.mxu0 %v6714_v51  ;;  %v6755_v12 = vcombine.low %v1618_v2, %v1622_v35  ;;  %v6762_v51 = vcombine.high %v1625_v11, %v1629_v1  ;;  %v1670_v9 = vld [vmem:[%s8316_s0 + $0x538] sm:$0xff]  ;;  %v6793_v2 = vcombine.low %v1657_v16, %v1661_v21 }
 0x34f   : > { %5113 = vmatprep.subr.bf16.mxu1 %v6716_v0  ;;  %v6764_v0 = vcombine.high %v1626_v58, %v1630_v60 }
 0x351   : > { %4950 = vmatpush1.bf16.msra.mxu0 %v6713_v45  ;;  %v6761_v45 = vcombine.low %v1625_v11, %v1629_v1  ;;  %v1674_v11 = vld [vmem:[%s8316_s0 + $0x558] sm:$0xff] }
 0x352   : > { %5114 = vmatpush1.bf16.msra.mxu1 %v6715_v22  ;;  %4951 = vmatprep.subr.bf16.mxu0 %v6722_v28  ;;  %v6763_v22 = vcombine.low %v1626_v58, %v1630_v60  ;;  %v6770_v28 = vcombine.high %v1633_v62, %v1637_v6  ;;  %v1678_v1 = vld [vmem:[%s8316_s0 + $0x578] sm:$0xff]  ;;  %v6803_v60 = vcombine.low %v1666_v8, %v1670_v9 }
 0x353   : > { %5115 = vmatprep.subr.bf16.mxu1 %v6724_v32  ;;  %v6772_v32 = vcombine.high %v1634_v14, %v1638_v17  ;;  %v1682_v62 = vld [vmem:[%s8316_s0 + $0x598] sm:$0xff] }
 0x354   : > { %v1686_v6 = vld [vmem:[%s8316_s0 + $0x5b8] sm:$0xff] }
 0x355   : > { %4952 = vmatpush1.bf16.msra.mxu0 %v6721_v37  ;;  %v1646_v37 = vld [vmem:[%s8316_s0 + $0x478] sm:$0xff] }
 0x356   : > { %5116 = vmatpush1.bf16.msra.mxu1 %v6723_v38  ;;  %4953 = vmatprep.subr.bf16.mxu0 %v6730_v44  ;;  %v6771_v38 = vcombine.low %v1634_v14, %v1638_v17  ;;  %v6778_v44 = vcombine.high %v1641_v30, %v1645_v33  ;;  %v6780_v42 = vcombine.high %v1642_v36, %v1646_v37 }
 0x357   : > { %5117 = vmatprep.subr.bf16.mxu1 %v6732_v40  ;;  %v1649_v40 = vld [vmem:[%s8316_s0 + $0x490] sm:$0xff]  ;;  %v6811_v17 = vcombine.low %v1674_v11, %v1678_v1 }
 0x358   : > { %v6785_v10 = vcombine.low %v1649_v40, %v1653_v41 }
 0x359   : > { %4954 = vmatpush1.bf16.msra.mxu0 %v6729_v48  ;;  %v6777_v48 = vcombine.low %v1641_v30, %v1645_v33  ;;  %v1690_v30 = vld [vmem:[%s8316_s0 + $0x5d8] sm:$0xff] }
 0x35a   : > { %5118 = vmatpush1.bf16.msra.mxu1 %v6731_v49  ;;  %4955 = vmatprep.subr.bf16.mxu0 %v6738_v52  ;;  %v6779_v49 = vcombine.low %v1642_v36, %v1646_v37  ;;  %v6786_v52 = vcombine.high %v1649_v40, %v1653_v41  ;;  %v1694_v33 = vld [vmem:[%s8316_s0 + $0x5f8] sm:$0xff]  ;;  %v6819_v36 = vcombine.low %v1682_v62, %v1686_v6  ;;  %v1701_v40 = vld [vmem:[%s8316_s0 + $0x630] sm:$0xff] }
 0x35b   : > { %5119 = vmatprep.subr.bf16.mxu1 %v6740_v54  ;;  %v6788_v54 = vcombine.high %v1650_v43, %v1654_v46  ;;  %v1698_v41 = vld [vmem:[%s8316_s0 + $0x618] sm:$0xff] }
 0x35d   : > { %4956 = vmatpush1.bf16.msra.mxu0 %v6737_v3  ;;  %v6787_v3 = vcombine.low %v1650_v43, %v1654_v46  ;;  %v6827_v46 = vcombine.low %v1690_v30, %v1694_v33 }
 0x35e   : > { %5120 = vmatpush1.bf16.msra.mxu1 %v6739_v5  ;;  %4957 = vmatprep.subr.bf16.mxu0 %v6746_v13  ;;  %v6794_v5 = vcombine.high %v1657_v16, %v1661_v21  ;;  %v1665_v13 = vld [vmem:[%s8316_s0 + $0x510] sm:$0xff]  ;;  %v1706_v16 = vld [vmem:[%s8316_s0 + $0x658] sm:$0xff] }
 0x35f   : > { %5121 = vmatprep.subr.bf16.mxu1 %v6748_v7  ;;  %v1669_v7 = vld [vmem:[%s8316_s0 + $0x530] sm:$0xff]  ;;  %v1710_v21 = vld [vmem:[%s8316_s0 + $0x678] sm:$0xff] }
 0x360   : > { %v6801_v58 = vcombine.low %v1665_v13, %v1669_v7 }
 0x361   : > { %4958 = vmatpush1.bf16.msra.mxu0 %v6745_v57  ;;  %v6802_v57 = vcombine.high %v1665_v13, %v1669_v7  ;;  %v1714_v13 = vld [vmem:[%s8316_s0 + $0x698] sm:$0xff] }
 0x362   : > { %5122 = vmatpush1.bf16.msra.mxu1 %v6747_v55  ;;  %4959 = vmatprep.subr.bf16.mxu0 %v6754_v15  ;;  %v6804_v55 = vcombine.high %v1666_v8, %v1670_v9  ;;  %v1673_v15 = vld [vmem:[%s8316_s0 + $0x550] sm:$0xff]  ;;  %v1718_v7 = vld [vmem:[%s8316_s0 + $0x6b8] sm:$0xff]  ;;  %v6843_v9 = vcombine.low %v1706_v16, %v1710_v21 }
 0x363   : > { %5123 = vmatprep.subr.bf16.mxu1 %v6756_v56  ;;  %v1677_v56 = vld [vmem:[%s8316_s0 + $0x570] sm:$0xff] }
 0x364   : > { %v6809_v14 = vcombine.low %v1673_v15, %v1677_v56 }
 0x365   : > { %4960 = vmatpush1.bf16.msra.mxu0 %v6753_v61  ;;  %v6810_v61 = vcombine.high %v1673_v15, %v1677_v56  ;;  %v1722_v15 = vld [vmem:[%s8316_s0 + $0x6d8] sm:$0xff] }
 0x366   : > { %5124 = vmatpush1.bf16.msra.mxu1 %v6755_v12  ;;  %4961 = vmatprep.subr.bf16.mxu0 %v6762_v51  ;;  %v6812_v12 = vcombine.high %v1674_v11, %v1678_v1  ;;  %v1681_v51 = vld [vmem:[%s8316_s0 + $0x590] sm:$0xff]  ;;  %v1726_v56 = vld [vmem:[%s8316_s0 + $0x6f8] sm:$0xff]  ;;  %v6851_v1 = vcombine.low %v1714_v13, %v1718_v7 }
 0x367   : > { %5125 = vmatprep.subr.bf16.mxu1 %v6764_v0  ;;  %v1685_v0 = vld [vmem:[%s8316_s0 + $0x5b0] sm:$0xff] }
 0x369   : > { %4962 = vmatpush1.bf16.msra.mxu0 %v6761_v45  ;;  %v6818_v45 = vcombine.high %v1681_v51, %v1685_v0 }
 0x36a   : > { %5126 = vmatpush1.bf16.msra.mxu1 %v6763_v22  ;;  %4972 = vmatprep.subr.bf16.mxu0 %v6770_v28  ;;  %v6820_v22 = vcombine.high %v1682_v62, %v1686_v6  ;;  %v1689_v28 = vld [vmem:[%s8316_s0 + $0x5d0] sm:$0xff]  ;;  %v6859_v6 = vcombine.low %v1722_v15, %v1726_v56 }
 0x36b   : > { %5136 = vmatprep.subr.bf16.mxu1 %v6772_v32  ;;  %v1693_v32 = vld [vmem:[%s8316_s0 + $0x5f0] sm:$0xff] }
 0x36c   : > { %4964 = vmatmul.mubr.bf16.vlgmr.msra.gmra.mrb[12].mxu0 %v8583_v63  ;;  %v6826_v37 = vcombine.high %v1689_v28, %v1693_v32  ;;  %v6825_v43 = vcombine.low %v1689_v28, %v1693_v32  ;;  %v1738_v28 = vld [vmem:[%s8316_s0 + $0x758] sm:$0xff] }
 0x36d   : > { %5128 = vmatmul.mubr.bf16.vlgmr.msra.gmra.mrb[12].mxu1 %v8583_v63  ;;  %4973 = vmatpush1.bf16.msra.mxu0 %v6769_v34  ;;  %v1662_v63 = vld [vmem:[%s8316_s0 + $0x4f8] sm:$0xff]  ;;  %v6817_v34 = vcombine.low %v1681_v51, %v1685_v0 }
 0x36e   : > { %5004 = vmatprep.mubr.bf16.mxu0 %v8595_v53  ;;  %5137 = vmatpush1.bf16.msra.mxu1 %v6771_v38  ;;  %v6795_v35 = vcombine.low %v1658_v59, %v1662_v63  ;;  %v6828_v38 = vcombine.high %v1690_v30, %v1694_v33  ;;  %v1730_v51 = vld [vmem:[%s8316_s0 + $0x718] sm:$0xff] }
 0x36f   : > { %5168 = vmatprep.mubr.bf16.mxu1 %v8595_v53  ;;  %4974 = vmatprep.subr.bf16.mxu0 %v6778_v44  ;;  %v6796_v53 = vcombine.high %v1658_v59, %v1662_v63  ;;  %v1697_v44 = vld [vmem:[%s8316_s0 + $0x610] sm:$0xff]  ;;  %v1734_v0 = vld [vmem:[%s8316_s0 + $0x738] sm:$0xff] }
 0x370   : > { %5138 = vmatprep.subr.bf16.mxu1 %v6780_v42  ;;  %v1702_v42 = vld [vmem:[%s8316_s0 + $0x638] sm:$0xff]  ;;  %v6833_v59 = vcombine.low %v1697_v44, %v1701_v40  ;;  %v6867_v33 = vcombine.low %v1730_v51, %v1734_v0 }
 0x371   : > { %4975 = vmatpush1.bf16.msra.mxu0 %v6777_v48  ;;  %v6834_v48 = vcombine.high %v1697_v44, %v1701_v40  ;;  %v6835_v63 = vcombine.low %v1698_v41, %v1702_v42  ;;  %v1742_v32 = vld [vmem:[%s8316_s0 + $0x778] sm:$0xff] }
 0x372   : > { %5139 = vmatpush1.bf16.msra.mxu1 %v6779_v49  ;;  %4976 = vmatprep.subr.bf16.mxu0 %v6786_v52  ;;  %v6836_v49 = vcombine.high %v1698_v41, %v1702_v42  ;;  %v1705_v52 = vld [vmem:[%s8316_s0 + $0x650] sm:$0xff]  ;;  %v1746_v44 = vld [vmem:[%s8316_s0 + $0x798] sm:$0xff]  ;;  %v6875_v42 = vcombine.low %v1738_v28, %v1742_v32 }
 0x373   : > { %5140 = vmatprep.subr.bf16.mxu1 %v6788_v54  ;;  %v1709_v54 = vld [vmem:[%s8316_s0 + $0x670] sm:$0xff]  ;;  %v1750_v40 = vld [vmem:[%s8316_s0 + $0x7b8] sm:$0xff] }
 0x374   : > { %v6841_v8 = vcombine.low %v1705_v52, %v1709_v54 }
 0x375   : > { %4977 = vmatpush1.bf16.msra.mxu0 %v6785_v10  ;;  %v6842_v10 = vcombine.high %v1705_v52, %v1709_v54  ;;  %v1754_v52 = vld [vmem:[%s8316_s0 + $0x7d8] sm:$0xff] }
 0x376   : > { %5141 = vmatpush1.bf16.msra.mxu1 %v6787_v3  ;;  %4978 = vmatprep.subr.bf16.mxu0 %v6794_v5  ;;  %v6844_v3 = vcombine.high %v1706_v16, %v1710_v21  ;;  %v1713_v5 = vld [vmem:[%s8316_s0 + $0x690] sm:$0xff]  ;;  %v1758_v54 = vld [vmem:[%s8316_s0 + $0x7f8] sm:$0xff]  ;;  %v6883_v21 = vcombine.low %v1746_v44, %v1750_v40 }
 0x377   : > { %5142 = vmatprep.subr.bf16.mxu1 %v6796_v53  ;;  %v1717_v53 = vld [vmem:[%s8316_s0 + $0x6b0] sm:$0xff] }
 0x378   : > { %v6849_v11 = vcombine.low %v1713_v5, %v1717_v53 }
 0x379   : > { %4979 = vmatpush1.bf16.msra.mxu0 %v6793_v2  ;;  %v6850_v2 = vcombine.high %v1713_v5, %v1717_v53  ;;  %v1762_v5 = vld [vmem:[%s8316_s0 + $0x818] sm:$0xff] }
 0x37a   : > { %5143 = vmatpush1.bf16.msra.mxu1 %v6795_v35  ;;  %4980 = vmatprep.subr.bf16.mxu0 %v6802_v57  ;;  %v6852_v35 = vcombine.high %v1714_v13, %v1718_v7  ;;  %v1721_v57 = vld [vmem:[%s8316_s0 + $0x6d0] sm:$0xff]  ;;  %v1766_v53 = vld [vmem:[%s8316_s0 + $0x838] sm:$0xff]  ;;  %v6891_v7 = vcombine.low %v1754_v52, %v1758_v54 }
 0x37b   : > { %5144 = vmatprep.subr.bf16.mxu1 %v6804_v55  ;;  %v1725_v55 = vld [vmem:[%s8316_s0 + $0x6f0] sm:$0xff] }
 0x37c   : > { %v6857_v62 = vcombine.low %v1721_v57, %v1725_v55 }
 0x37d   : > { %4981 = vmatpush1.bf16.msra.mxu0 %v6801_v58  ;;  %v6858_v58 = vcombine.high %v1721_v57, %v1725_v55  ;;  %v1770_v55 = vld [vmem:[%s8316_s0 + $0x858] sm:$0xff] }
 0x37e   : > { %5145 = vmatpush1.bf16.msra.mxu1 %v6803_v60  ;;  %4982 = vmatprep.subr.bf16.mxu0 %v6810_v61  ;;  %v6860_v60 = vcombine.high %v1722_v15, %v1726_v56  ;;  %v1729_v61 = vld [vmem:[%s8316_s0 + $0x710] sm:$0xff]  ;;  %v1774_v15 = vld [vmem:[%s8316_s0 + $0x878] sm:$0xff]  ;;  %v6899_v56 = vcombine.low %v1762_v5, %v1766_v53 }
 0x37f   : > { %5146 = vmatprep.subr.bf16.mxu1 %v6812_v12  ;;  %v1733_v12 = vld [vmem:[%s8316_s0 + $0x730] sm:$0xff] }
 0x380   : > { %v6865_v30 = vcombine.low %v1729_v61, %v1733_v12 }
 0x381   : > { %4983 = vmatpush1.bf16.msra.mxu0 %v6809_v14  ;;  %v6866_v14 = vcombine.high %v1729_v61, %v1733_v12  ;;  %v1778_v61 = vld [vmem:[%s8316_s0 + $0x898] sm:$0xff] }
 0x382   : > { %5147 = vmatpush1.bf16.msra.mxu1 %v6811_v17  ;;  %4984 = vmatprep.subr.bf16.mxu0 %v6818_v45  ;;  %v6868_v17 = vcombine.high %v1730_v51, %v1734_v0  ;;  %v1737_v45 = vld [vmem:[%s8316_s0 + $0x750] sm:$0xff]  ;;  %v1782_v12 = vld [vmem:[%s8316_s0 + $0x8b8] sm:$0xff]  ;;  %v6907_v0 = vcombine.low %v1770_v55, %v1774_v15 }
 0x383   : > { %5148 = vmatprep.subr.bf16.mxu1 %v6820_v22  ;;  %v1741_v22 = vld [vmem:[%s8316_s0 + $0x770] sm:$0xff] }
 0x384   : > { %v6873_v41 = vcombine.low %v1737_v45, %v1741_v22 }
 0x385   : > { %4985 = vmatpush1.bf16.msra.mxu0 %v6817_v34  ;;  %v6874_v34 = vcombine.high %v1737_v45, %v1741_v22  ;;  %v1786_v45 = vld [vmem:[%s8316_s0 + $0x8d8] sm:$0xff] }
 0x386   : > { %5149 = vmatpush1.bf16.msra.mxu1 %v6819_v36  ;;  %4986 = vmatprep.subr.bf16.mxu0 %v6826_v37  ;;  %v6876_v36 = vcombine.high %v1738_v28, %v1742_v32  ;;  %v1745_v37 = vld [vmem:[%s8316_s0 + $0x790] sm:$0xff]  ;;  %v6915_v28 = vcombine.low %v1778_v61, %v1782_v12 }
 0x387   : > { %5150 = vmatprep.subr.bf16.mxu1 %v6828_v38  ;;  %v1749_v38 = vld [vmem:[%s8316_s0 + $0x7b0] sm:$0xff] }
 0x388   : > { %v6881_v16 = vcombine.low %v1745_v37, %v1749_v38 }
 0x389   : > { %4987 = vmatpush1.bf16.msra.mxu0 %v6825_v43  ;;  %v6882_v43 = vcombine.high %v1745_v37, %v1749_v38 }
 0x38a   : > { %5151 = vmatpush1.bf16.msra.mxu1 %v6827_v46  ;;  %4988 = vmatprep.subr.bf16.mxu0 %v6834_v48  ;;  %v6884_v46 = vcombine.high %v1746_v44, %v1750_v40  ;;  %v1753_v48 = vld [vmem:[%s8316_s0 + $0x7d0] sm:$0xff] }
 0x38b   : > { %5152 = vmatprep.subr.bf16.mxu1 %v6836_v49  ;;  %v1757_v49 = vld [vmem:[%s8316_s0 + $0x7f0] sm:$0xff] }
 0x38c   : > { %v6889_v13 = vcombine.low %v1753_v48, %v1757_v49 }
 0x38d   : > { %4989 = vmatpush1.bf16.msra.mxu0 %v6833_v59  ;;  %v6890_v59 = vcombine.high %v1753_v48, %v1757_v49 }
 0x38e   : > { %5153 = vmatpush1.bf16.msra.mxu1 %v6835_v63  ;;  %4990 = vmatprep.subr.bf16.mxu0 %v6842_v10  ;;  %v6892_v63 = vcombine.high %v1754_v52, %v1758_v54  ;;  %v1761_v10 = vld [vmem:[%s8316_s0 + $0x810] sm:$0xff] }
 0x38f   : > { %5154 = vmatprep.subr.bf16.mxu1 %v6844_v3  ;;  %v1765_v3 = vld [vmem:[%s8316_s0 + $0x830] sm:$0xff] }
 0x390   : > { %v6897_v57 = vcombine.low %v1761_v10, %v1765_v3 }
 0x391   : > { %4991 = vmatpush1.bf16.msra.mxu0 %v6841_v8  ;;  %v6898_v8 = vcombine.high %v1761_v10, %v1765_v3 }
 0x392   : > { %5155 = vmatpush1.bf16.msra.mxu1 %v6843_v9  ;;  %4992 = vmatprep.subr.bf16.mxu0 %v6850_v2  ;;  %v6900_v9 = vcombine.high %v1762_v5, %v1766_v53  ;;  %v1769_v2 = vld [vmem:[%s8316_s0 + $0x850] sm:$0xff] }
 0x393   : > { %5156 = vmatprep.subr.bf16.mxu1 %v6852_v35  ;;  %v1773_v35 = vld [vmem:[%s8316_s0 + $0x870] sm:$0xff] }
 0x394   : > { %v6905_v51 = vcombine.low %v1769_v2, %v1773_v35 }
 0x395   : > { %4993 = vmatpush1.bf16.msra.mxu0 %v6849_v11  ;;  %v6906_v11 = vcombine.high %v1769_v2, %v1773_v35 }
 0x396   : > { %5157 = vmatpush1.bf16.msra.mxu1 %v6851_v1  ;;  %4994 = vmatprep.subr.bf16.mxu0 %v6858_v58  ;;  %v1777_v1 = vld [vmem:[%s8316_s0 + $0x890] sm:$0xff] }
 0x397   : > { %5158 = vmatprep.subr.bf16.mxu1 %v6860_v60  ;;  %v1781_v58 = vld [vmem:[%s8316_s0 + $0x8b0] sm:$0xff]  ;;  %v6908_v60 = vcombine.high %v1770_v55, %v1774_v15 }
 0x398   : > { %v6913_v22 = vcombine.low %v1777_v1, %v1781_v58  ;;  %v1825_v15 = vld [vmem:[%s8316_s0 + $0xa10] sm:$0xff] }
 0x399   : > { %4995 = vmatpush1.bf16.msra.mxu0 %v6857_v62  ;;  %v6914_v62 = vcombine.high %v1777_v1, %v1781_v58  ;;  %v1830_v1 = vld [vmem:[%s8316_s0 + $0xa38] sm:$0xff] }
 0x39a   : > { %5159 = vmatpush1.bf16.msra.mxu1 %v6859_v6  ;;  %4996 = vmatprep.subr.bf16.mxu0 %v6866_v14  ;;  %v6916_v6 = vcombine.high %v1778_v61, %v1782_v12  ;;  %v1785_v14 = vld [vmem:[%s8316_s0 + $0x8d0] sm:$0xff] }
 0x39b   : > { %5160 = vmatprep.subr.bf16.mxu1 %v6868_v17  ;;  %v1789_v17 = vld [vmem:[%s8316_s0 + $0x8f0] sm:$0xff] }
 0x39c   : > { %v6922_v32 = vcombine.high %v1785_v14, %v1789_v17  ;;  %v6921_v37 = vcombine.low %v1785_v14, %v1789_v17 }
 0x39d   : > { %4997 = vmatpush1.bf16.msra.mxu0 %v6865_v30  ;;  %v1793_v30 = vld [vmem:[%s8316_s0 + $0x910] sm:$0xff] }
 0x39e   : > { %5161 = vmatpush1.bf16.msra.mxu1 %v6867_v33  ;;  %4998 = vmatprep.subr.bf16.mxu0 %v6874_v34  ;;  %v1797_v33 = vld [vmem:[%s8316_s0 + $0x930] sm:$0xff]  ;;  %v1794_v34 = vld [vmem:[%s8316_s0 + $0x918] sm:$0xff] }
 0x39f   : > { %5162 = vmatprep.subr.bf16.mxu1 %v6876_v36  ;;  %v1798_v36 = vld [vmem:[%s8316_s0 + $0x938] sm:$0xff]  ;;  %v6930_v44 = vcombine.high %v1793_v30, %v1797_v33  ;;  %v6929_v48 = vcombine.low %v1793_v30, %v1797_v33 }
 0x3a0   : > { %v6932_v40 = vcombine.high %v1794_v34, %v1798_v36  ;;  %v6931_v49 = vcombine.low %v1794_v34, %v1798_v36 }
 0x3a1   : > { %4999 = vmatpush1.bf16.msra.mxu0 %v6873_v41  ;;  %v1801_v41 = vld [vmem:[%s8316_s0 + $0x950] sm:$0xff] }
 0x3a2   : > { %5163 = vmatpush1.bf16.msra.mxu1 %v6875_v42  ;;  %5000 = vmatprep.subr.bf16.mxu0 %v6882_v43  ;;  %v1805_v42 = vld [vmem:[%s8316_s0 + $0x970] sm:$0xff]  ;;  %v1802_v43 = vld [vmem:[%s8316_s0 + $0x958] sm:$0xff] }
 0x3a3   : > { %5164 = vmatprep.subr.bf16.mxu1 %v6884_v46  ;;  %v1806_v46 = vld [vmem:[%s8316_s0 + $0x978] sm:$0xff]  ;;  %v6938_v52 = vcombine.high %v1801_v41, %v1805_v42  ;;  %v6937_v10 = vcombine.low %v1801_v41, %v1805_v42 }
 0x3a4   : > { %v6940_v54 = vcombine.high %v1802_v43, %v1806_v46  ;;  %v6939_v3 = vcombine.low %v1802_v43, %v1806_v46 }
 0x3a5   : > { %5001 = vmatpush1.bf16.msra.mxu0 %v6881_v16  ;;  %v1809_v16 = vld [vmem:[%s8316_s0 + $0x990] sm:$0xff] }
 0x3a6   : > { %5165 = vmatpush1.bf16.msra.mxu1 %v6883_v21  ;;  %5002 = vmatprep.subr.bf16.mxu0 %v6890_v59  ;;  %v1813_v21 = vld [vmem:[%s8316_s0 + $0x9b0] sm:$0xff]  ;;  %v1810_v59 = vld [vmem:[%s8316_s0 + $0x998] sm:$0xff] }
 0x3a7   : > { %5166 = vmatprep.subr.bf16.mxu1 %v6892_v63  ;;  %v1814_v63 = vld [vmem:[%s8316_s0 + $0x9b8] sm:$0xff]  ;;  %v6946_v5 = vcombine.high %v1809_v16, %v1813_v21  ;;  %v6945_v2 = vcombine.low %v1809_v16, %v1813_v21 }
 0x3a8   : > { %v6948_v53 = vcombine.high %v1810_v59, %v1814_v63  ;;  %v6947_v35 = vcombine.low %v1810_v59, %v1814_v63 }
 0x3a9   : > { %5003 = vmatpush1.bf16.msra.mxu0 %v6889_v13  ;;  %v1817_v13 = vld [vmem:[%s8316_s0 + $0x9d0] sm:$0xff] }
 0x3aa   : > { %5167 = vmatpush1.bf16.msra.mxu1 %v6891_v7  ;;  %5013 = vmatprep.subr.bf16.mxu0 %v6898_v8  ;;  %v1821_v7 = vld [vmem:[%s8316_s0 + $0x9f0] sm:$0xff]  ;;  %v1818_v8 = vld [vmem:[%s8316_s0 + $0x9d8] sm:$0xff] }
 0x3ab   : > { %5177 = vmatprep.subr.bf16.mxu1 %v6900_v9  ;;  %v1822_v9 = vld [vmem:[%s8316_s0 + $0x9f8] sm:$0xff]  ;;  %v6953_v58 = vcombine.low %v1817_v13, %v1821_v7 }
 0x3ac   : > { %5005 = vmatmul.mubr.bf16.vlgmr.msra.gmra.mrb[12].mxu0 %v8671_v18  ;;  %v6956_v55 = vcombine.high %v1818_v8, %v1822_v9 }
 0x3ad   : > { %5169 = vmatmul.mubr.bf16.vlgmr.msra.gmra.mrb[12].mxu1 %v8671_v18  ;;  %5014 = vmatpush1.bf16.msra.mxu0 %v6897_v57  ;;  %v1790_v18 = vld [vmem:[%s8316_s0 + $0x8f8] sm:$0xff]  ;;  %v6954_v57 = vcombine.high %v1817_v13, %v1821_v7 }
 0x3ae   : > { %5045 = vmatprep.mubr.bf16.mxu0 %v8673_v29  ;;  %5178 = vmatpush1.bf16.msra.mxu1 %v6899_v56  ;;  %v6923_v38 = vcombine.low %v1786_v45, %v1790_v18  ;;  %v1829_v56 = vld [vmem:[%s8316_s0 + $0xa30] sm:$0xff] }
 0x3af   : > { %5209 = vmatprep.mubr.bf16.mxu1 %v8673_v29  ;;  %5015 = vmatprep.subr.bf16.mxu0 %v6906_v11  ;;  %v6924_v29 = vcombine.high %v1786_v45, %v1790_v18  ;;  %v1826_v11 = vld [vmem:[%s8316_s0 + $0xa18] sm:$0xff]  ;;  %v6962_v61 = vcombine.high %v1825_v15, %v1829_v56  ;;  %v6961_v14 = vcombine.low %v1825_v15, %v1829_v56 }
 0x3b0   : > { %5179 = vmatprep.subr.bf16.mxu1 %v6908_v60  ;;  %v6955_v60 = vcombine.low %v1818_v8, %v1822_v9  ;;  %v6964_v12 = vcombine.high %v1826_v11, %v1830_v1  ;;  %v6963_v17 = vcombine.low %v1826_v11, %v1830_v1 }
 0x3b1   : > { %5016 = vmatpush1.bf16.msra.mxu0 %v6905_v51  ;;  %v1833_v51 = vld [vmem:[%s8316_s0 + $0xa50] sm:$0xff] }
 0x3b2   : > { %5180 = vmatpush1.bf16.msra.mxu1 %v6907_v0  ;;  %5017 = vmatprep.subr.bf16.mxu0 %v6914_v62  ;;  %v1837_v0 = vld [vmem:[%s8316_s0 + $0xa70] sm:$0xff]  ;;  %v1834_v62 = vld [vmem:[%s8316_s0 + $0xa58] sm:$0xff] }
 0x3b3   : > { %5181 = vmatprep.subr.bf16.mxu1 %v6916_v6  ;;  %v1838_v6 = vld [vmem:[%s8316_s0 + $0xa78] sm:$0xff]  ;;  %v6970_v45 = vcombine.high %v1833_v51, %v1837_v0  ;;  %v6969_v30 = vcombine.low %v1833_v51, %v1837_v0 }
 0x3b4   : > { %v6972_v18 = vcombine.high %v1834_v62, %v1838_v6  ;;  %v6971_v33 = vcombine.low %v1834_v62, %v1838_v6 }
 0x3b5   : > { %5018 = vmatpush1.bf16.msra.mxu0 %v6913_v22  ;;  %v1841_v22 = vld [vmem:[%s8316_s0 + $0xa90] sm:$0xff] }
 0x3b6   : > { %5182 = vmatpush1.bf16.msra.mxu1 %v6915_v28  ;;  %5019 = vmatprep.subr.bf16.mxu0 %v6922_v32  ;;  %v1845_v28 = vld [vmem:[%s8316_s0 + $0xab0] sm:$0xff]  ;;  %v1842_v32 = vld [vmem:[%s8316_s0 + $0xa98] sm:$0xff] }
 0x3b7   : > { %5183 = vmatprep.subr.bf16.mxu1 %v6924_v29  ;;  %v1846_v29 = vld [vmem:[%s8316_s0 + $0xab8] sm:$0xff]  ;;  %v6978_v34 = vcombine.high %v1841_v22, %v1845_v28  ;;  %v6977_v41 = vcombine.low %v1841_v22, %v1845_v28 }
 0x3b8   : > { %v6980_v36 = vcombine.high %v1842_v32, %v1846_v29  ;;  %v6979_v42 = vcombine.low %v1842_v32, %v1846_v29 }
 0x3b9   : > { %5020 = vmatpush1.bf16.msra.mxu0 %v6921_v37  ;;  %v1849_v37 = vld [vmem:[%s8316_s0 + $0xad0] sm:$0xff] }
 0x3ba   : > { %5184 = vmatpush1.bf16.msra.mxu1 %v6923_v38  ;;  %5021 = vmatprep.subr.bf16.mxu0 %v6930_v44  ;;  %v1853_v38 = vld [vmem:[%s8316_s0 + $0xaf0] sm:$0xff]  ;;  %v1850_v44 = vld [vmem:[%s8316_s0 + $0xad8] sm:$0xff] }
 0x3bb   : > { %5185 = vmatprep.subr.bf16.mxu1 %v6932_v40  ;;  %v1854_v40 = vld [vmem:[%s8316_s0 + $0xaf8] sm:$0xff]  ;;  %v6986_v43 = vcombine.high %v1849_v37, %v1853_v38  ;;  %v6985_v16 = vcombine.low %v1849_v37, %v1853_v38 }
 0x3bc   : > { %v6988_v46 = vcombine.high %v1850_v44, %v1854_v40  ;;  %v6987_v21 = vcombine.low %v1850_v44, %v1854_v40  ;;  %v1902_v37 = vld [vmem:[%s8316_s0 + $0xc78] sm:$0xff]  ;;  %v1905_v40 = vld [vmem:[%s8316_s0 + $0xc90] sm:$0xff] }
 0x3bd   : > { %5022 = vmatpush1.bf16.msra.mxu0 %v6929_v48  ;;  %v1857_v48 = vld [vmem:[%s8316_s0 + $0xb10] sm:$0xff] }
 0x3be   : > { %5186 = vmatpush1.bf16.msra.mxu1 %v6931_v49  ;;  %5023 = vmatprep.subr.bf16.mxu0 %v6938_v52  ;;  %v1861_v49 = vld [vmem:[%s8316_s0 + $0xb30] sm:$0xff]  ;;  %v1858_v52 = vld [vmem:[%s8316_s0 + $0xb18] sm:$0xff] }
 0x3bf   : > { %5187 = vmatprep.subr.bf16.mxu1 %v6940_v54  ;;  %v1862_v54 = vld [vmem:[%s8316_s0 + $0xb38] sm:$0xff]  ;;  %v6994_v59 = vcombine.high %v1857_v48, %v1861_v49  ;;  %v6993_v13 = vcombine.low %v1857_v48, %v1861_v49 }
 0x3c0   : > { %v6996_v63 = vcombine.high %v1858_v52, %v1862_v54  ;;  %v6995_v7 = vcombine.low %v1858_v52, %v1862_v54 }
 0x3c1   : > { %5024 = vmatpush1.bf16.msra.mxu0 %v6937_v10  ;;  %v1865_v10 = vld [vmem:[%s8316_s0 + $0xb50] sm:$0xff] }
 0x3c2   : > { %5188 = vmatpush1.bf16.msra.mxu1 %v6939_v3  ;;  %5025 = vmatprep.subr.bf16.mxu0 %v6946_v5  ;;  %v1869_v3 = vld [vmem:[%s8316_s0 + $0xb70] sm:$0xff]  ;;  %v1866_v5 = vld [vmem:[%s8316_s0 + $0xb58] sm:$0xff] }
 0x3c3   : > { %5189 = vmatprep.subr.bf16.mxu1 %v6948_v53  ;;  %v1870_v53 = vld [vmem:[%s8316_s0 + $0xb78] sm:$0xff]  ;;  %v7002_v8 = vcombine.high %v1865_v10, %v1869_v3  ;;  %v7001_v15 = vcombine.low %v1865_v10, %v1869_v3 }
 0x3c4   : > { %v7004_v9 = vcombine.high %v1866_v5, %v1870_v53  ;;  %v7003_v56 = vcombine.low %v1866_v5, %v1870_v53  ;;  %v1921_v5 = vld [vmem:[%s8316_s0 + $0xd10] sm:$0xff] }
 0x3c5   : > { %5026 = vmatpush1.bf16.msra.mxu0 %v6945_v2  ;;  %v1873_v2 = vld [vmem:[%s8316_s0 + $0xb90] sm:$0xff] }
 0x3c6   : > { %5190 = vmatpush1.bf16.msra.mxu1 %v6947_v35  ;;  %5027 = vmatprep.subr.bf16.mxu0 %v6954_v57  ;;  %v1877_v35 = vld [vmem:[%s8316_s0 + $0xbb0] sm:$0xff]  ;;  %v1874_v57 = vld [vmem:[%s8316_s0 + $0xb98] sm:$0xff] }
 0x3c7   : > { %5191 = vmatprep.subr.bf16.mxu1 %v6956_v55  ;;  %v1878_v55 = vld [vmem:[%s8316_s0 + $0xbb8] sm:$0xff]  ;;  %v7010_v11 = vcombine.high %v1873_v2, %v1877_v35  ;;  %v7009_v51 = vcombine.low %v1873_v2, %v1877_v35  ;;  %v1925_v53 = vld [vmem:[%s8316_s0 + $0xd30] sm:$0xff] }
 0x3c8   : > { %v7012_v1 = vcombine.high %v1874_v57, %v1878_v55  ;;  %v7011_v0 = vcombine.low %v1874_v57, %v1878_v55  ;;  %v7058_v2 = vcombine.high %v1921_v5, %v1925_v53  ;;  %v9041_v35 = vld [vmem:[%s8316_s0 + $0xd50] sm:$0xff]  ;;  %v9047_v55 = vld [vmem:[%s8316_s0 + $0xd58] sm:$0xff] }
 0x3c9   : > { %5028 = vmatpush1.bf16.msra.mxu0 %v6953_v58  ;;  %v1881_v58 = vld [vmem:[%s8316_s0 + $0xbd0] sm:$0xff] }
 0x3ca   : > { %5192 = vmatpush1.bf16.msra.mxu1 %v6955_v60  ;;  %5029 = vmatprep.subr.bf16.mxu0 %v6962_v61  ;;  %v1885_v60 = vld [vmem:[%s8316_s0 + $0xbf0] sm:$0xff]  ;;  %v1882_v61 = vld [vmem:[%s8316_s0 + $0xbd8] sm:$0xff] }
 0x3cb   : > { %5193 = vmatprep.subr.bf16.mxu1 %v6964_v12  ;;  %v1886_v12 = vld [vmem:[%s8316_s0 + $0xbf8] sm:$0xff]  ;;  %v7018_v62 = vcombine.high %v1881_v58, %v1885_v60  ;;  %v7017_v22 = vcombine.low %v1881_v58, %v1885_v60  ;;  %v9044_v57 = vld [vmem:[%s8316_s0 + $0xd70] sm:$0xff] }
 0x3cc   : > { %v7020_v6 = vcombine.high %v1882_v61, %v1886_v12  ;;  %v7019_v28 = vcombine.low %v1882_v61, %v1886_v12  ;;  %v9059_v58 = vld [vmem:[%s8316_s0 + $0xd98] sm:$0xff]  ;;  %v9065_v61 = vld [vmem:[%s8316_s0 + $0xdd0] sm:$0xff]  ;;  %v7057_v12 = vcombine.low %v1921_v5, %v1925_v53 }
 0x3cd   : > { %5030 = vmatpush1.bf16.msra.mxu0 %v6961_v14  ;;  %v1889_v14 = vld [vmem:[%s8316_s0 + $0xc10] sm:$0xff]  ;;  %v9062_v60 = vld [vmem:[%s8316_s0 + $0xdb8] sm:$0xff] }
 0x3ce   : > { %5194 = vmatpush1.bf16.msra.mxu1 %v6963_v17  ;;  %5031 = vmatprep.subr.bf16.mxu0 %v6970_v45  ;;  %v1893_v17 = vld [vmem:[%s8316_s0 + $0xc30] sm:$0xff]  ;;  %v1890_v45 = vld [vmem:[%s8316_s0 + $0xc18] sm:$0xff] }
 0x3cf   : > { %5195 = vmatprep.subr.bf16.mxu1 %v6972_v18  ;;  %v1894_v18 = vld [vmem:[%s8316_s0 + $0xc38] sm:$0xff]  ;;  %v7026_v32 = vcombine.high %v1889_v14, %v1893_v17 }
 0x3d0   : > { %v7028_v29 = vcombine.high %v1890_v45, %v1894_v18  ;;  %v7027_v38 = vcombine.low %v1890_v45, %v1894_v18  ;;  %v9082_v45 = vld [vmem:[%s8316_s0 + $0xe30] sm:$0xff]  ;;  %v9085_v18 = vld [vmem:[%s8316_s0 + $0xe18] sm:$0xff] }
 0x3d1   : > { %5032 = vmatpush1.bf16.msra.mxu0 %v6969_v30  ;;  %v1897_v30 = vld [vmem:[%s8316_s0 + $0xc50] sm:$0xff] }
 0x3d2   : > { %5196 = vmatpush1.bf16.msra.mxu1 %v6971_v33  ;;  %5033 = vmatprep.subr.bf16.mxu0 %v6978_v34  ;;  %v1901_v33 = vld [vmem:[%s8316_s0 + $0xc70] sm:$0xff]  ;;  %v7025_v34 = vcombine.low %v1889_v14, %v1893_v17  ;;  %v7066_v14 = vcombine.high %v9041_v35, %v9044_v57 }
 0x3d3   : > { %5197 = vmatprep.subr.bf16.mxu1 %v6980_v36  ;;  %v1898_v36 = vld [vmem:[%s8316_s0 + $0xc58] sm:$0xff]  ;;  %v7034_v44 = vcombine.high %v1897_v30, %v1901_v33  ;;  %v7033_v48 = vcombine.low %v1897_v30, %v1901_v33  ;;  %v9079_v17 = vld [vmem:[%s8316_s0 + $0xe10] sm:$0xff] }
 0x3d4   : > { %v7035_v49 = vcombine.low %v1898_v36, %v1902_v37  ;;  %v9096_v30 = vld [vmem:[%s8316_s0 + $0xe38] sm:$0xff]  ;;  %v9099_v33 = vld [vmem:[%s8316_s0 + $0xe50] sm:$0xff] }
 0x3d5   : > { %5034 = vmatpush1.bf16.msra.mxu0 %v6977_v41  ;;  %v1909_v41 = vld [vmem:[%s8316_s0 + $0xcb0] sm:$0xff] }
 0x3d6   : > { %5198 = vmatpush1.bf16.msra.mxu1 %v6979_v42  ;;  %5035 = vmatprep.subr.bf16.mxu0 %v6986_v43  ;;  %v7036_v42 = vcombine.high %v1898_v36, %v1902_v37  ;;  %v1906_v43 = vld [vmem:[%s8316_s0 + $0xc98] sm:$0xff]  ;;  %v7042_v52 = vcombine.high %v1905_v40, %v1909_v41  ;;  %v7075_v37 = vcombine.low %v9059_v58, %v9062_v60 }
 0x3d7   : > { %5199 = vmatprep.subr.bf16.mxu1 %v6988_v46  ;;  %v1910_v46 = vld [vmem:[%s8316_s0 + $0xcb8] sm:$0xff] }
 0x3d8   : > { %v7044_v54 = vcombine.high %v1906_v43, %v1910_v46  ;;  %v7043_v10 = vcombine.low %v1906_v43, %v1910_v46 }
 0x3d9   : > { %5036 = vmatpush1.bf16.msra.mxu0 %v6985_v16  ;;  %v1913_v16 = vld [vmem:[%s8316_s0 + $0xcd0] sm:$0xff] }
 0x3da   : > { %5200 = vmatpush1.bf16.msra.mxu1 %v6987_v21  ;;  %5037 = vmatprep.subr.bf16.mxu0 %v6994_v59  ;;  %v1917_v21 = vld [vmem:[%s8316_s0 + $0xcf0] sm:$0xff]  ;;  %v1914_v59 = vld [vmem:[%s8316_s0 + $0xcd8] sm:$0xff] }
 0x3db   : > { %5201 = vmatprep.subr.bf16.mxu1 %v6996_v63  ;;  %v7041_v63 = vcombine.low %v1905_v40, %v1909_v41  ;;  %v9113_v40 = vld [vmem:[%s8316_s0 + $0xe58] sm:$0xff] }
 0x3dc   : > { %v9116_v41 = vld [vmem:[%s8316_s0 + $0xe78] sm:$0xff] }
 0x3dd   : > { %5038 = vmatpush1.bf16.msra.mxu0 %v6993_v13  ;;  %v1922_v13 = vld [vmem:[%s8316_s0 + $0xd18] sm:$0xff] }
 0x3de   : > { %5202 = vmatpush1.bf16.msra.mxu1 %v6995_v7  ;;  %5039 = vmatprep.subr.bf16.mxu0 %v7002_v8  ;;  %v1926_v7 = vld [vmem:[%s8316_s0 + $0xd38] sm:$0xff]  ;;  %v7049_v8 = vcombine.low %v1913_v16, %v1917_v21 }
 0x3df   : > { %5203 = vmatprep.subr.bf16.mxu1 %v7004_v9 }
 0x3e1   : > { %5040 = vmatpush1.bf16.msra.mxu0 %v7001_v15  ;;  %v7060_v15 = vcombine.high %v1922_v13, %v1926_v7 }
 0x3e2   : > { %5204 = vmatpush1.bf16.msra.mxu1 %v7003_v56  ;;  %5041 = vmatprep.subr.bf16.mxu0 %v7010_v11  ;;  %v9050_v56 = vld [vmem:[%s8316_s0 + $0xd78] sm:$0xff]  ;;  %v9053_v11 = vld [vmem:[%s8316_s0 + $0xd90] sm:$0xff] }
 0x3e3   : > { %5205 = vmatprep.subr.bf16.mxu1 %v7012_v1  ;;  %v9056_v1 = vld [vmem:[%s8316_s0 + $0xdb0] sm:$0xff] }
 0x3e4   : > { %v7073_v36 = vcombine.low %v9053_v11, %v9056_v1 }
 0x3e5   : > { %5042 = vmatpush1.bf16.msra.mxu0 %v7009_v51  ;;  %v9068_v51 = vld [vmem:[%s8316_s0 + $0xdf0] sm:$0xff] }
 0x3e6   : > { %5206 = vmatpush1.bf16.msra.mxu1 %v7011_v0  ;;  %5043 = vmatprep.subr.bf16.mxu0 %v7018_v62  ;;  %v9071_v0 = vld [vmem:[%s8316_s0 + $0xdd8] sm:$0xff]  ;;  %v7081_v43 = vcombine.low %v9065_v61, %v9068_v51 }
 0x3e7   : > { %5207 = vmatprep.subr.bf16.mxu1 %v7020_v6  ;;  %v9074_v62 = vld [vmem:[%s8316_s0 + $0xdf8] sm:$0xff]  ;;  %v7059_v6 = vcombine.low %v1922_v13, %v1926_v7 }
 0x3e8   : > { %v7083_v46 = vcombine.low %v9071_v0, %v9074_v62 }
 0x3e9   : > { %5044 = vmatpush1.bf16.msra.mxu0 %v7017_v22  ;;  %v7065_v22 = vcombine.low %v9041_v35, %v9044_v57 }
 0x3ea   : > { %5208 = vmatpush1.bf16.msra.mxu1 %v7019_v28  ;;  %5054 = vmatprep.subr.bf16.mxu0 %v7026_v32  ;;  %v7067_v28 = vcombine.low %v9047_v55, %v9050_v56  ;;  %v7068_v32 = vcombine.high %v9047_v55, %v9050_v56 }
 0x3eb   : > { %5218 = vmatprep.subr.bf16.mxu1 %v7028_v29  ;;  %v7074_v29 = vcombine.high %v9053_v11, %v9056_v1 }
 0x3ec   : > { %5046 = vmatmul.mubr.bf16.vlgmr.msra.gmra.mrb[12].mxu0 %v8745_v20 }
 0x3ed   : > { %5210 = vmatmul.mubr.bf16.vlgmr.msra.gmra.mrb[12].mxu1 %v8745_v20  ;;  %5055 = vmatpush1.bf16.msra.mxu0 %v7025_v34  ;;  %v1918_v20 = vld [vmem:[%s8316_s0 + $0xcf8] sm:$0xff]  ;;  %v9102_v34 = vld [vmem:[%s8316_s0 + $0xe70] sm:$0xff] }
 0x3ee   : > { %5086 = vmatprep.mubr.bf16.mxu0 %v8750_v50  ;;  %5219 = vmatpush1.bf16.msra.mxu1 %v7027_v38  ;;  %v7052_v3 = vcombine.high %v1914_v59, %v1918_v20  ;;  %v7051_v9 = vcombine.low %v1914_v59, %v1918_v20  ;;  %v7076_v38 = vcombine.high %v9059_v58, %v9062_v60 }
 0x3ef   : > { %5250 = vmatprep.mubr.bf16.mxu1 %v8750_v50  ;;  %5056 = vmatprep.subr.bf16.mxu0 %v7034_v44  ;;  %v7050_v50 = vcombine.high %v1913_v16, %v1917_v21  ;;  %v7082_v44 = vcombine.high %v9065_v61, %v9068_v51  ;;  %v9136_v16 = vld [vmem:[%s8316_s0 + $0xeb8] sm:$0xff]  ;;  %v9549_v61 = vcombine.high %v9085_v18, %v9096_v30 }
 0x3f0   : > { %5220 = vmatprep.subr.bf16.mxu1 %v7036_v42  ;;  %v9119_v42 = vld [vmem:[%s8316_s0 + $0xe90] sm:$0xff] }
 0x3f1   : > { %5057 = vmatpush1.bf16.msra.mxu0 %v7033_v48  ;;  %v7084_v48 = vcombine.high %v9071_v0, %v9074_v62 }
 0x3f2   : > { %5221 = vmatpush1.bf16.msra.mxu1 %v7035_v49  ;;  %5058 = vmatprep.subr.bf16.mxu0 %v7042_v52  ;;  %v9130_v52 = vld [vmem:[%s8316_s0 + $0xeb0] sm:$0xff] }
 0x3f3   : > { %5222 = vmatprep.subr.bf16.mxu1 %v7044_v54  ;;  %v9133_v54 = vld [vmem:[%s8316_s0 + $0xe98] sm:$0xff] }
 0x3f5   : > { %5059 = vmatpush1.bf16.msra.mxu0 %v7041_v63 }
 0x3f6   : > { %5223 = vmatpush1.bf16.msra.mxu1 %v7043_v10  ;;  %5060 = vmatprep.subr.bf16.mxu0 %v7050_v50 }
 0x3f7   : > { %5224 = vmatprep.subr.bf16.mxu1 %v7052_v3 }
 0x3f9   : > { %5061 = vmatpush1.bf16.msra.mxu0 %v7049_v8 }
 0x3fa   : > { %5225 = vmatpush1.bf16.msra.mxu1 %v7051_v9  ;;  %5062 = vmatprep.subr.bf16.mxu0 %v7058_v2 }
 0x3fb   : > { %5226 = vmatprep.subr.bf16.mxu1 %v7060_v15 }
 0x3fd   : > { %5063 = vmatpush1.bf16.msra.mxu0 %v7057_v12 }
 0x3fe   : > { %5227 = vmatpush1.bf16.msra.mxu1 %v7059_v6  ;;  %5064 = vmatprep.subr.bf16.mxu0 %v7066_v14 }
 0x3ff   : > { %v9144_v63 = vpop.f32.mrb[8].mxu0  ;;  %5228 = vmatprep.subr.bf16.mxu1 %v7068_v32 }
 0x400   : > { %v5261_v53 = vrot.slane %v9144_v63, 4  ;;  %v5318_v13 = vmul.f32 %v9144_v63, %v9144_v63  ;;  %v9157_v7 = vpop.f32.mrb[8].mxu1  ;;  %v9159_v8 = vpop.f32.mrb[9].mxu0 }
 0x401   : > { %v5273_v35 = vrot.slane %v9157_v7, 4  ;;  %v5320_v57 = vmul.f32 %v9157_v7, %v9157_v7  ;;  %v5267_v55 = vrot.slane %v9159_v8, 4  ;;  %v5319_v15 = vmul.f32 %v9159_v8, %v9159_v8  ;;  %v9171_v56 = vpop.f32.mrb[9].mxu1  ;;  %v4764_v11 = vpop.f32.mrb[10].mxu0  ;;  %5065 = vmatpush1.bf16.msra.mxu0 %v7065_v22 }
 0x402   : > { %v5262_v1 = vadd.f32 %v5261_v53, %v9144_v63  ;;  %v5326_v12 = vrot.slane %v5318_v13, 4  ;;  %v5279_v6 = vrot.slane %v9171_v56, 4  ;;  %v5321_v14 = vmul.f32 %v9171_v56, %v9171_v56  ;;  %v4928_v32 = vpop.f32.mrb[10].mxu1  ;;  %5229 = vmatpush1.bf16.msra.mxu1 %v7067_v28  ;;  %v4765_v2 = vpop.f32.mrb[11].mxu0  ;;  %5066 = vmatprep.subr.bf16.mxu0 %v7074_v29 }
 0x403   : > { %v5274_v9 = vadd.f32 %v5273_v35, %v9157_v7  ;;  %v5338_v3 = vrot.slane %v5320_v57, 4  ;;  %v5268_v10 = vadd.f32 %v5267_v55, %v9159_v8  ;;  %v5332_v5 = vrot.slane %v5319_v15, 4  ;;  %v4929_v11 = vpop.f32.mrb[11].mxu1  ;;  %5230 = vmatprep.subr.bf16.mxu1 %v7076_v38 }
 0x404   : > { %v5263_v22 = vrot.slane %v5262_v1, 2  ;;  %v5327_v53 = vadd.f32 %v5326_v12, %v5318_v13  ;;  %v5280_v50 = vadd.f32 %v5279_v6, %v9171_v56  ;;  %v5344_v59 = vrot.slane %v5321_v14, 4 }
 0x405   : > { %v5275_v21 = vrot.slane %v5274_v9, 2  ;;  %v5339_v20 = vadd.f32 %v5338_v3, %v5320_v57  ;;  %v5269_v49 = vrot.slane %v5268_v10, 2  ;;  %v5333_v32 = vadd.f32 %v5332_v5, %v5319_v15  ;;  %5067 = vmatpush1.bf16.msra.mxu0 %v7073_v36 }
 0x406   : > { %v5264_v28 = vadd.f32 %v5263_v22, %v5262_v1  ;;  %v5328_v29 = vrot.slane %v5327_v53, 2  ;;  %v5281_v2 = vrot.slane %v5280_v50, 2  ;;  %v5345_v35 = vadd.f32 %v5344_v59, %v5321_v14  ;;  %5231 = vmatpush1.bf16.msra.mxu1 %v7075_v37  ;;  %5068 = vmatprep.subr.bf16.mxu0 %v7082_v44 }
 0x407   : > { %v5276_v38 = vadd.f32 %v5275_v21, %v5274_v9  ;;  %v5340_v13 = vrot.slane %v5339_v20, 2  ;;  %v5270_v55 = vadd.f32 %v5269_v49, %v5268_v10  ;;  %v5334_v12 = vrot.slane %v5333_v32, 2  ;;  %5232 = vmatprep.subr.bf16.mxu1 %v7084_v48 }
 0x408   : > { %v5265_v3 = vrot.slane %v5264_v28, 1  ;;  %v5329_v5 = vadd.f32 %v5328_v29, %v5327_v53  ;;  %v5282_v36 = vadd.f32 %v5281_v2, %v5280_v50  ;;  %v5346_v57 = vrot.slane %v5345_v35, 2 }
 0x409   : > { %v5277_v15 = vrot.slane %v5276_v38, 1  ;;  %v5341_v1 = vadd.f32 %v5340_v13, %v5339_v20  ;;  %v5271_v59 = vrot.slane %v5270_v55, 1  ;;  %v5335_v6 = vadd.f32 %v5334_v12, %v5333_v32  ;;  %5069 = vmatpush1.bf16.msra.mxu0 %v7081_v43  ;;  %v1981_v12 = vld [vmem:[%s8316_s0 + $0xef0] sm:$0xff] }
 0x40a   : > { %v5266_v58 = vadd.f32 %v5265_v3, %v5264_v28  ;;  %v5330_v60 = vrot.slane %v5329_v5, 1  ;;  %v5283_v37 = vrot.slane %v5282_v36, 1  ;;  %v5347_v44 = vadd.f32 %v5346_v57, %v5345_v35  ;;  %5233 = vmatpush1.bf16.msra.mxu1 %v7083_v46 }
 0x40b   : > { %v9548_v48 = vcombine.high %v9079_v17, %v9082_v45  ;;  %v5278_v49 = vadd.f32 %v5277_v15, %v5276_v38  ;;  %v5342_v21 = vrot.slane %v5341_v1, 1  ;;  %v5272_v20 = vadd.f32 %v5271_v59, %v5270_v55  ;;  %5234 = vmatprep.subr.bf16.mxu1 %v9549_v61  ;;  %v1977_v55 = vld [vmem:[%s8316_s0 + $0xed0] sm:$0xff] }
 0x40c   : > { %v5336_v10 = vrot.slane %v5335_v6, 1  ;;  %v9198_v51 = vmul.f32 0.125, %v5266_v58  ;;  %v5331_v43 = vadd.f32 %v5330_v60, %v5329_v5  ;;  %v5284_v50 = vadd.f32 %v5283_v37, %v5282_v36  ;;  %v1978_v5 = vld [vmem:[%s8316_s0 + $0xed8] sm:$0xff] }
 0x40d   : > { %5070 = vmatprep.subr.bf16.mxu0 %v9548_v48  ;;  %v5348_v9 = vrot.slane %v5347_v44, 1  ;;  %v9200_v14 = vmul.f32 0.125, %v5278_v49  ;;  %v5343_v0 = vadd.f32 %v5342_v21, %v5341_v1  ;;  %v9202_v62 = vmul.f32 0.125, %v5272_v20  ;;  %v1982_v36 = vld [vmem:[%s8316_s0 + $0xef8] sm:$0xff]  ;;  %v1985_v20 = vld [vmem:[%s8316_s0 + $0xf10] sm:$0xff] }
 0x40e   : > { %v5337_v46 = vadd.f32 %v5336_v10, %v5335_v6  ;;  %v9550_v11 = vcombine.low %v9079_v17, %v9082_v45  ;;  %v5374_v22 = vmul.f32 0.125, %v5331_v43  ;;  %v5382_v53 = vmul.f32 %v9198_v51, %v9198_v51  ;;  %v1989_v10 = vld [vmem:[%s8316_s0 + $0xf30] sm:$0xff] }
 0x40f   : > { %v9209_v32 = vmul.f32 0.125, %v5284_v50  ;;  %v5349_v28 = vadd.f32 %v5348_v9, %v5347_v44  ;;  %v9551_v29 = vcombine.low %v9085_v18, %v9096_v30  ;;  %v9552_v2 = vcombine.high %v9099_v33, %v9102_v34 }
 0x410   : > { %5071 = vmatpush1.bf16.msra.mxu0 %v9550_v11  ;;  %v5376_v35 = vmul.f32 0.125, %v5343_v0  ;;  %v5384_v17 = vmul.f32 %v9200_v14, %v9200_v14  ;;  %v5375_v45 = vmul.f32 0.125, %v5337_v46  ;;  %v5383_v38 = vmul.f32 %v9202_v62, %v9202_v62  ;;  %v1993_v46 = vld [vmem:[%s8316_s0 + $0xf50] sm:$0xff] }
 0x411   : > { %5235 = vmatpush1.bf16.msra.mxu1 %v9551_v29  ;;  %5072 = vmatprep.subr.bf16.mxu0 %v9552_v2  ;;  %v9553_v13 = vcombine.high %v9113_v40, %v9116_v41  ;;  %v5390_v18 = vsub.f32 %v5374_v22, %v5382_v53  ;;  %v5377_v30 = vmul.f32 0.125, %v5349_v28  ;;  %v5385_v3 = vmul.f32 %v9209_v32, %v9209_v32  ;;  %v1997_v11 = vld [vmem:[%s8316_s0 + $0xf70] sm:$0xff]  ;;  %v1994_v22 = vld [vmem:[%s8316_s0 + $0xf58] sm:$0xff] }
 0x412   : > { %v5392_v57 = vsub.f32 %v5376_v35, %v5384_v17  ;;  %v5391_v15 = vsub.f32 %v5375_v45, %v5383_v38  ;;  %v9554_v1 = vcombine.low %v9099_v33, %v9102_v34  ;;  %v7105_v59 = vcombine.low %v9119_v42, %v9130_v52  ;;  %v1998_v53 = vld [vmem:[%s8316_s0 + $0xf78] sm:$0xff]  ;;  %v2001_v17 = vld [vmem:[%s8316_s0 + $0xf90] sm:$0xff] }
 0x413   : > { %5236 = vmatprep.subr.bf16.mxu1 %v9553_v13  ;;  %v5398_v6 = vmax.f32 %v5390_v18, 0.0  ;;  %v5393_v58 = vsub.f32 %v5377_v30, %v5385_v3  ;;  %v9555_v60 = vcombine.low %v9113_v40, %v9116_v41  ;;  %v9556_v37 = vcombine.high %v9119_v42, %v9130_v52  ;;  %v1986_v41 = vld [vmem:[%s8316_s0 + $0xf18] sm:$0xff]  ;;  %v2005_v45 = vld [vmem:[%s8316_s0 + $0xfb0] sm:$0xff] }
 0x414   : > { %5073 = vmatpush1.bf16.msra.mxu0 %v9554_v1  ;;  %v7107_v44 = vcombine.low %v9133_v54, %v9136_v16  ;;  %v7114_v33 = vcombine.high %v1977_v55, %v1981_v12  ;;  %v5400_v34 = vmax.f32 %v5392_v57, 0.0  ;;  %v5399_v48 = vmax.f32 %v5391_v15, 0.0  ;;  %v1990_v42 = vld [vmem:[%s8316_s0 + $0xf38] sm:$0xff]  ;;  %v2009_v3 = vld [vmem:[%s8316_s0 + $0xfd0] sm:$0xff] }
 0x415   : > { %5237 = vmatpush1.bf16.msra.mxu1 %v9555_v60  ;;  %5074 = vmatprep.subr.bf16.mxu0 %v9556_v37  ;;  %v9557_v49 = vcombine.high %v9133_v54, %v9136_v16  ;;  %v7116_v21 = vcombine.high %v1978_v5, %v1982_v36  ;;  %v5406_v61 = vadd.f32 1e-05, %v5398_v6  ;;  %v5401_v40 = vmax.f32 %v5393_v58, 0.0  ;;  %v2002_v38 = vld [vmem:[%s8316_s0 + $0xf98] sm:$0xff] }
 0x416   : > { %v5408_v52 = vadd.f32 1e-05, %v5400_v34  ;;  %v5407_v43 = vadd.f32 1e-05, %v5399_v48  ;;  %v7113_v50 = vcombine.low %v1977_v55, %v1981_v12  ;;  %v7115_v54 = vcombine.low %v1978_v5, %v1982_v36  ;;  %v2006_v13 = vld [vmem:[%s8316_s0 + $0xfb8] sm:$0xff]  ;;  %v2013_v5 = vld [vmem:[%s8316_s0 + $0xff0] sm:$0xff] }
 0x417   : > { %5238 = vmatprep.subr.bf16.mxu1 %v9557_v49  ;;  %7575 = vrsqrt.f32 %v5406_v61  ;;  %v5409_v9 = vadd.f32 1e-05, %v5401_v40  ;;  %v7122_v16 = vcombine.high %v1985_v20, %v1989_v10  ;;  %v7124_v0 = vcombine.high %v1986_v41, %v1990_v42  ;;  %v2010_v57 = vld [vmem:[%s8316_s0 + $0xfd8] sm:$0xff]  ;;  %v7495_v61 = vld [vmem:[%s9273_s15 + $0x40] sm:$0xff]  }
 0x418   : > { %5075 = vmatpush1.bf16.msra.mxu0 %v7105_v59  ;;  %7577 = vrsqrt.f32 %v5408_v52  ;;  %v7121_v28 = vcombine.low %v1985_v20, %v1989_v10  ;;  %v7123_v29 = vcombine.low %v1986_v41, %v1990_v42  ;;  %v7130_v2 = vcombine.high %v1993_v46, %v1997_v11  ;;  %v2014_v15 = vld [vmem:[%s8316_s0 + $0xff8] sm:$0xff]  ;;  %v7496_v40 = vld [vmem:[%s9273_s15 + $0xc0] sm:$0xff]   ;;  %v7499_v42 = vld [vmem:[%s9273_s15 + $0x48] sm:$0xff]  }
 0x419   : > { %5239 = vmatpush1.bf16.msra.mxu1 %v7107_v44  ;;  %5076 = vmatprep.subr.bf16.mxu0 %v7114_v33  ;;  %7579 = vrsqrt.f32 %v5407_v43  ;;  %v7132_v35 = vcombine.high %v1994_v22, %v1998_v53  ;;  %v7129_v55 = vcombine.low %v1993_v46, %v1997_v11  ;;  %v7131_v12 = vcombine.low %v1994_v22, %v1998_v53  ;;  %v7497_v41 = vld [vmem:[%s9273_s15] sm:$0xff]   ;;  %v7500_v52 = vld [vmem:[%s9273_s15 + $0xc8] sm:$0xff]   ;;  %v7507_v46 = vld [vmem:[%s9273_s15 + $0x58] sm:$0xff]  }
 0x41a   : > { %5240 = vmatprep.subr.bf16.mxu1 %v7116_v21  ;;  %7581 = vrsqrt.f32 %v5409_v9  ;;  %v7138_v18 = vcombine.high %v2001_v17, %v2005_v45  ;;  %v7140_v30 = vcombine.high %v2002_v38, %v2006_v13  ;;  %v7137_v59 = vcombine.low %v2001_v17, %v2005_v45  ;;  %v7501_v43 = vld [vmem:[%s9273_s15 + $0x8] sm:$0xff]   ;;  %v7503_v9 = vld [vmem:[%s9273_s15 + $0x50] sm:$0xff]   ;;  %v7508_v11 = vld [vmem:[%s9273_s15 + $0xd8] sm:$0xff]  }
 0x41b   : > { %v7139_v58 = vcombine.low %v2002_v38, %v2006_v13  ;;  %v7146_v60 = vcombine.high %v2009_v3, %v2013_v5  ;;  %v7148_v33 = vcombine.high %v2010_v57, %v2014_v15  ;;  %v7145_v49 = vcombine.low %v2009_v3, %v2013_v5  ;;  %v7509_v22 = vld [vmem:[%s9273_s15 + $0x18] sm:$0xff]   ;;  %v7515_v17 = vld [vmem:[%s9273_s15 + $0x68] sm:$0xff]  }
 0x41c   : > { %5077 = vmatpush1.bf16.msra.mxu0 %v7113_v50  ;;  %v7147_v20 = vcombine.low %v2010_v57, %v2014_v15  ;;  %v7502_v50 = vld [vmem:[%s9273_s15 + $0x88] sm:$0xff]   ;;  %v7510_v53 = vld [vmem:[%s9273_s15 + $0x98] sm:$0xff]   ;;  %v7527_v15 = vld [vmem:[%s9273_s15 + $0x140] sm:$0xff]  }
 0x41d   : > { %5241 = vmatpush1.bf16.msra.mxu1 %v7115_v54  ;;  %5078 = vmatprep.subr.bf16.mxu0 %v7122_v16  ;;  %v7504_v54 = vld [vmem:[%s9273_s15 + $0xd0] sm:$0xff]   ;;  %v7516_v45 = vld [vmem:[%s9273_s15 + $0xe8] sm:$0xff]   ;;  %v7523_v3 = vld [vmem:[%s9273_s15 + $0x78] sm:$0xff]  }
 0x41e   : > { %5242 = vmatprep.subr.bf16.mxu1 %v7124_v0  ;;  %v7505_v16 = vld [vmem:[%s9273_s15 + $0x10] sm:$0xff]   ;;  %v7517_v38 = vld [vmem:[%s9273_s15 + $0x28] sm:$0xff]   ;;  %v7524_v5 = vld [vmem:[%s9273_s15 + $0xf8] sm:$0xff]  }
 0x41f   : > { %v7506_v0 = vld [vmem:[%s9273_s15 + $0x90] sm:$0xff]   ;;  %v7518_v13 = vld [vmem:[%s9273_s15 + $0xa8] sm:$0xff]   ;;  %v7526_v57 = vld [vmem:[%s9273_s15 + $0xb8] sm:$0xff]  }
 0x420   : > { %5079 = vmatpush1.bf16.msra.mxu0 %v7121_v28  ;;  %v7511_v28 = vld [vmem:[%s9273_s15 + $0x60] sm:$0xff]  }
 0x421   : > { %5243 = vmatpush1.bf16.msra.mxu1 %v7123_v29  ;;  %5080 = vmatprep.subr.bf16.mxu0 %v7130_v2  ;;  %v7576_v36 = vpop.eup %7575  ;;  %v7512_v29 = vld [vmem:[%s9273_s15 + $0xe0] sm:$0xff]  }
 0x422   : > { %5244 = vmatprep.subr.bf16.mxu1 %v7132_v35  ;;  %v7578_v1 = vpop.eup %7577  ;;  %v7513_v2 = vld [vmem:[%s9273_s15 + $0x20] sm:$0xff]  }
 0x423   : > { %v7580_v6 = vpop.eup %7579  ;;  %v7514_v35 = vld [vmem:[%s9273_s15 + $0xa0] sm:$0xff]  }
 0x424   : > { %5081 = vmatpush1.bf16.msra.mxu0 %v7129_v55  ;;  %v7582_v37 = vpop.eup %7581  ;;  %v5430_v44 = vcombine.low %v7576_v36, %v7580_v6  ;;  %v7519_v55 = vld [vmem:[%s9273_s15 + $0x70] sm:$0xff]   ;;  %v7525_v36 = vld [vmem:[%s9273_s15 + $0x38] sm:$0xff]  }
 0x425   : > { %5245 = vmatpush1.bf16.msra.mxu1 %v7131_v12  ;;  %5082 = vmatprep.subr.bf16.mxu0 %v7138_v18  ;;  %v5431_v34 = vcombine.low %v7578_v1, %v7582_v37  ;;  %v7520_v12 = vld [vmem:[%s9273_s15 + $0xf0] sm:$0xff]   ;;  %v7528_v1 = vld [vmem:[%s9273_s15 + $0x1c0] sm:$0xff]  }
 0x426   : > { %5246 = vmatprep.subr.bf16.mxu1 %v7140_v30  ;;  %v9263_v48 = vrot.slane %v5430_v44, %v8461_v47  ;;  %v7521_v18 = vld [vmem:[%s9273_s15 + $0x30] sm:$0xff]  }
 0x427   : > { %v9266_v21 = vrot.slane %v5431_v34, %v8461_v47  ;;  %v7522_v30 = vld [vmem:[%s9273_s15 + $0xb0] sm:$0xff]  }
 0x428   : > { %5083 = vmatpush1.bf16.msra.mxu0 %v7137_v59 }
 0x429   : > { %5247 = vmatpush1.bf16.msra.mxu1 %v7139_v58  ;;  %5084 = vmatprep.subr.bf16.mxu0 %v7146_v60  ;;  %v5462_v10 = vcombine.low %v9263_v48, %v9266_v21 }
 0x42a   : > { %5248 = vmatprep.subr.bf16.mxu1 %v7148_v33 }
 0x42c   : > { %5085 = vmatpush1.bf16.msra.mxu0 %v7145_v49 }
 0x42d   : > { %5249 = vmatpush1.bf16.msra.mxu1 %v7147_v20  ;;  %7233 = vmatprep.subr.bf16.mxu0 %v7495_v61 }
 0x42e   : > { %7255 = vmatprep.subr.bf16.mxu1 %v7496_v40 }
 0x42f   : > { %5087 = vmatmul.mubr.bf16.vlgmr.msra.gmra.mrb[12].mxu0 %v8818_v4 }
 0x430   : > { %5251 = vmatmul.mubr.bf16.vlgmr.msra.gmra.mrb[12].mxu1 %v8818_v4  ;;  %v7498_v4 = vld [vmem:[%s9273_s15 + $0x80] sm:$0xff]   ;;  %7234 = vmatpush3.bf16.msra.mxu0 %v7497_v41 }
 0x431   : > { %7256 = vmatpush3.bf16.msra.mxu1 %v7498_v4  ;;  %7235 = vmatprep.subr.bf16.mxu0 %v7499_v42 }
 0x432   : > { %7257 = vmatprep.subr.bf16.mxu1 %v7500_v52 }
 0x434   : > { %7236 = vmatpush3.bf16.msra.mxu0 %v7501_v43 }
 0x435   : > { %7258 = vmatpush3.bf16.msra.mxu1 %v7502_v50  ;;  %7237 = vmatprep.subr.bf16.mxu0 %v7503_v9 }
 0x436   : > { %7259 = vmatprep.subr.bf16.mxu1 %v7504_v54 }
 0x438   : > { %7238 = vmatpush3.bf16.msra.mxu0 %v7505_v16 }
 0x439   : > { %7260 = vmatpush3.bf16.msra.mxu1 %v7506_v0  ;;  %7239 = vmatprep.subr.bf16.mxu0 %v7507_v46 }
 0x43a   : > { %7261 = vmatprep.subr.bf16.mxu1 %v7508_v11 }
 0x43c   : > { %7240 = vmatpush3.bf16.msra.mxu0 %v7509_v22 }
 0x43d   : > { %7262 = vmatpush3.bf16.msra.mxu1 %v7510_v53  ;;  %7241 = vmatprep.subr.bf16.mxu0 %v7511_v28 }
 0x43e   : > { %7263 = vmatprep.subr.bf16.mxu1 %v7512_v29 }
 0x440   : > { %7242 = vmatpush3.bf16.msra.mxu0 %v7513_v2 }
 0x441   : > { %7264 = vmatpush3.bf16.msra.mxu1 %v7514_v35  ;;  %7243 = vmatprep.subr.bf16.mxu0 %v7515_v17 }
 0x442   : > { %7265 = vmatprep.subr.bf16.mxu1 %v7516_v45 }
 0x444   : > { %7244 = vmatpush3.bf16.msra.mxu0 %v7517_v38 }
 0x445   : > { %7266 = vmatpush3.bf16.msra.mxu1 %v7518_v13  ;;  %7245 = vmatprep.subr.bf16.mxu0 %v7519_v55 }
 0x446   : > { %7267 = vmatprep.subr.bf16.mxu1 %v7520_v12 }
 0x448   : > { %7246 = vmatpush3.bf16.msra.mxu0 %v7521_v18 }
 0x449   : > { %7268 = vmatpush3.bf16.msra.mxu1 %v7522_v30  ;;  %7247 = vmatprep.subr.bf16.mxu0 %v7523_v3 }
 0x44a   : > { %7269 = vmatprep.subr.bf16.mxu1 %v7524_v5 }
 0x44c   : > { %7248 = vmatpush3.bf16.msra.mxu0 %v7525_v36 }
 0x44d   : > { %7270 = vmatpush3.bf16.msra.mxu1 %v7526_v57  ;;  %7277 = vmatprep.subr.bf16.mxu0 %v7527_v15 }
 0x44e   : > { %7299 = vmatprep.subr.bf16.mxu1 %v7528_v1 }
 0x502   : > { %v9309_v59 = vpop.f32.mrb[12].mxu0 }
 0x503   : > { %v5285_v6 = vrot.slane %v9309_v59, 4  ;;  %v5322_v58 = vmul.f32 %v9309_v59, %v9309_v59  ;;  %v9314_v60 = vpop.f32.mrb[12].mxu1  ;;  %v9316_v37 = vpop.f32.mrb[13].mxu0 }
 0x504   : > { %v5297_v44 = vrot.slane %v9314_v60, 4  ;;  %v5324_v33 = vmul.f32 %v9314_v60, %v9314_v60  ;;  %v5291_v34 = vrot.slane %v9316_v37, 4  ;;  %v5323_v49 = vmul.f32 %v9316_v37, %v9316_v37  ;;  %v9324_v20 = vpop.f32.mrb[13].mxu1  ;;  %v5092_v61 = vpop.f32.mrb[14].mxu0 }
 0x505   : > { %v5286_v40 = vadd.f32 %v5285_v6, %v9309_v59  ;;  %v5350_v41 = vrot.slane %v5322_v58, 4  ;;  %v5303_v4 = vrot.slane %v9324_v20, 4  ;;  %v5325_v42 = vmul.f32 %v9324_v20, %v9324_v20  ;;  %v5256_v52 = vpop.f32.mrb[14].mxu1  ;;  %v5093_v43 = vpop.f32.mrb[15].mxu0 }
 0x506   : > { %v5298_v50 = vadd.f32 %v5297_v44, %v9314_v60  ;;  %v5362_v9 = vrot.slane %v5324_v33, 4  ;;  %v5292_v54 = vadd.f32 %v5291_v34, %v9316_v37  ;;  %v5356_v16 = vrot.slane %v5323_v49, 4  ;;  %v5257_v0 = vpop.f32.mrb[15].mxu1 }
 0x507   : > { %v5287_v46 = vrot.slane %v5286_v40, 2  ;;  %v5351_v11 = vadd.f32 %v5350_v41, %v5322_v58  ;;  %v5304_v22 = vadd.f32 %v5303_v4, %v9324_v20  ;;  %v5368_v53 = vrot.slane %v5325_v42, 4 }
 0x508   : > { %v5299_v28 = vrot.slane %v5298_v50, 2  ;;  %v5363_v29 = vadd.f32 %v5362_v9, %v5324_v33  ;;  %v5293_v2 = vrot.slane %v5292_v54, 2  ;;  %v5357_v35 = vadd.f32 %v5356_v16, %v5323_v49 }
 0x509   : > { %v5288_v17 = vadd.f32 %v5287_v46, %v5286_v40  ;;  %v5352_v45 = vrot.slane %v5351_v11, 2  ;;  %v5305_v38 = vrot.slane %v5304_v22, 2  ;;  %v5369_v13 = vadd.f32 %v5368_v53, %v5325_v42 }
 0x50a   : > { %v5300_v55 = vadd.f32 %v5299_v28, %v5298_v50  ;;  %v5364_v12 = vrot.slane %v5363_v29, 2  ;;  %v5294_v18 = vadd.f32 %v5293_v2, %v5292_v54  ;;  %v5358_v30 = vrot.slane %v5357_v35, 2 }
 0x50b   : > { %v5289_v3 = vrot.slane %v5288_v17, 1  ;;  %v5353_v5 = vadd.f32 %v5352_v45, %v5351_v11  ;;  %v5306_v36 = vadd.f32 %v5305_v38, %v5304_v22  ;;  %v5370_v57 = vrot.slane %v5369_v13, 2 }
 0x50c   : > { %v5301_v15 = vrot.slane %v5300_v55, 1  ;;  %v5365_v1 = vadd.f32 %v5364_v12, %v5363_v29  ;;  %v5295_v6 = vrot.slane %v5294_v18, 1  ;;  %v5359_v58 = vadd.f32 %v5358_v30, %v5357_v35 }
 0x50d   : > { %v5290_v44 = vadd.f32 %v5289_v3, %v5288_v17  ;;  %v5354_v33 = vrot.slane %v5353_v5, 1  ;;  %v5307_v34 = vrot.slane %v5306_v36, 1  ;;  %v5371_v49 = vadd.f32 %v5370_v57, %v5369_v13 }
 0x50e   : > { %v5302_v61 = vadd.f32 %v5301_v15, %v5300_v55  ;;  %v5366_v40 = vrot.slane %v5365_v1, 1  ;;  %v5296_v41 = vadd.f32 %v5295_v6, %v5294_v18  ;;  %v5360_v4 = vrot.slane %v5359_v58, 1 }
 0x50f   : > { %v5314_v42 = vmul.f32 0.125, %v5290_v44  ;;  %v5355_v52 = vadd.f32 %v5354_v33, %v5353_v5  ;;  %v5308_v43 = vadd.f32 %v5307_v34, %v5306_v36  ;;  %v5372_v50 = vrot.slane %v5371_v49, 1 }
 0x510   : > { %v5316_v9 = vmul.f32 0.125, %v5302_v61  ;;  %v5367_v54 = vadd.f32 %v5366_v40, %v5365_v1  ;;  %v5315_v16 = vmul.f32 0.125, %v5296_v41  ;;  %v5361_v0 = vadd.f32 %v5360_v4, %v5359_v58 }
 0x511   : > { %v5378_v46 = vmul.f32 0.125, %v5355_v52  ;;  %v5386_v11 = vmul.f32 %v5314_v42, %v5314_v42  ;;  %v5317_v22 = vmul.f32 0.125, %v5308_v43  ;;  %v5373_v53 = vadd.f32 %v5372_v50, %v5371_v49  ;;  %v5259_v43 = vld [vmem:[%s439_s4] sm:$0xff] }
 0x512   : > { %v5380_v28 = vmul.f32 0.125, %v5367_v54  ;;  %v5388_v29 = vmul.f32 %v5316_v9, %v5316_v9  ;;  %v5379_v2 = vmul.f32 0.125, %v5361_v0  ;;  %v5387_v35 = vmul.f32 %v5315_v16, %v5315_v16 }
 0x513   : > { %v5394_v17 = vsub.f32 %v5378_v46, %v5386_v11  ;;  %v5381_v45 = vmul.f32 0.125, %v5373_v53  ;;  %v5389_v38 = vmul.f32 %v5317_v22, %v5317_v22  ;;  %v5470_v4 = vrot.slane %v5462_v10, %v8461_v47 }
 0x514   : > { %v5396_v13 = vsub.f32 %v5380_v28, %v5388_v29  ;;  %v5395_v55 = vsub.f32 %v5379_v2, %v5387_v35 }
 0x515   : > { %v5402_v12 = vmax.f32 %v5394_v17, 0.0  ;;  %v5397_v18 = vsub.f32 %v5381_v45, %v5389_v38 }
 0x516   : > { %v5404_v30 = vmax.f32 %v5396_v13, 0.0  ;;  %v5403_v3 = vmax.f32 %v5395_v55, 0.0 }
 0x517   : > { %v5410_v5 = vadd.f32 1e-05, %v5402_v12  ;;  %v5405_v36 = vmax.f32 %v5397_v18, 0.0 }
 0x518   : > { %v5412_v57 = vadd.f32 1e-05, %v5404_v30  ;;  %v5411_v15 = vadd.f32 1e-05, %v5403_v3 }
 0x519   : > { %7583 = vrsqrt.f32 %v5410_v5  ;;  %v5413_v1 = vadd.f32 1e-05, %v5405_v36 }
 0x51a   : > { %7585 = vrsqrt.f32 %v5412_v57 }
 0x51b   : > { %7587 = vrsqrt.f32 %v5411_v15  ;;  %v5260_v15 = vld [vmem:[%s448_s17] sm:$0xff] }
 0x51c   : > { %7589 = vrsqrt.f32 %v5413_v1 }
 0x523   : > { %v7584_v6 = vpop.eup %7583 }
 0x524   : > { %v7586_v58 = vpop.eup %7585 }
 0x525   : > { %v7588_v44 = vpop.eup %7587 }
 0x526   : > { %v7590_v33 = vpop.eup %7589  ;;  %v5432_v34 = vcombine.low %v7584_v6, %v7588_v44 }
 0x527   : > { %v5433_v49 = vcombine.low %v7586_v58, %v7590_v33 }
 0x528   : > { %v5454_v61 = vrot.slane %v5432_v34, %v8461_v47 }
 0x529   : > { %v5461_v40 = vrot.slane %v5433_v49, %v8461_v47 }
 0x52b   : > { %v5463_v41 = vcombine.low %v5454_v61, %v5461_v40 }
 0x52d   : > { %v5477_v52 = vrot.slane %v5463_v41, %v8461_v47 }
 0x52f   : > { %v5478_v50 = vcombine.low %v5470_v4, %v5477_v52 }
 0x531   : > { %v5480_v54 = vmul.f32 %v5478_v50, %v5259_v43 }
 0x533   : > { %v5501_v0 = vrot.slane %v5480_v54, %v8525_v26  ;;  %v5505_v46 = vrot.slane %v5480_v54, %v8528_v27  ;;  %v5509_v11 = vrot.slane %v5480_v54, %v8531_v31  ;;  %v5513_v53 = vrot.slane %v5480_v54, %v8534_v39 }
 0x534   : > { %v5485_v28 = vrot.slane %v5480_v54, %v8513_v19  ;;  %v5489_v29 = vrot.slane %v5480_v54, %v8516_v23  ;;  %v5493_v48 = vrot.slane %v5480_v54, %v8519_v24  ;;  %v5497_v21 = vrot.slane %v5480_v54, %v8522_v25 }
 0x535   : > { %v5526_v10 = vmul.f32 %v5501_v0, %v5314_v42  ;;  %v5527_v2 = vmul.f32 %v5505_v46, %v5315_v16  ;;  %v5528_v35 = vmul.f32 %v5509_v11, %v5316_v9  ;;  %v5529_v17 = vmul.f32 %v5513_v53, %v5317_v22 }
 0x536   : > { %v5596_v45 = vmul.f32 %v5513_v53, %v9324_v20  ;;  %v5522_v38 = vmul.f32 %v5485_v28, %v9198_v51  ;;  %v5523_v13 = vmul.f32 %v5489_v29, %v9202_v62  ;;  %v5524_v55 = vmul.f32 %v5493_v48, %v9200_v14  ;;  %v7531_v53 = vld [vmem:[%s9273_s15 + $0x148] sm:$0xff]  }
 0x537   : > { %v5540_v12 = vcombine.low %v5526_v10, %v5527_v2  ;;  %v5541_v18 = vcombine.low %v5528_v35, %v5529_v17  ;;  %v5525_v30 = vmul.f32 %v5497_v21, %v9209_v32  ;;  %v5590_v3 = vmul.f32 %v5489_v29, %v9159_v8  ;;  %v7534_v10 = vld [vmem:[%s9273_s15 + $0x188] sm:$0xff]   ;;  %v7535_v2 = vld [vmem:[%s9273_s15 + $0x150] sm:$0xff]  }
 0x538   : > { %v5538_v5 = vcombine.low %v5522_v38, %v5523_v13  ;;  %v5592_v42 = vmul.f32 %v5497_v21, %v9171_v56  ;;  %v5589_v9 = vmul.f32 %v5485_v28, %v9144_v63  ;;  %v5591_v20 = vmul.f32 %v5493_v48, %v9157_v7  ;;  %v7532_v28 = vld [vmem:[%s9273_s15 + $0x1c8] sm:$0xff]   ;;  %v7536_v35 = vld [vmem:[%s9273_s15 + $0x1d0] sm:$0xff]   ;;  %v7539_v38 = vld [vmem:[%s9273_s15 + $0x158] sm:$0xff]  }
 0x539   : > { %v5562_v51 = vrot.slane %v5540_v12, %v8461_v47  ;;  %v5569_v62 = vrot.slane %v5541_v18, %v8461_v47  ;;  %v5539_v16 = vcombine.low %v5524_v55, %v5525_v30  ;;  %v5594_v14 = vmul.f32 %v5505_v46, %v9316_v37  ;;  %v7529_v46 = vld [vmem:[%s9273_s15 + $0x100] sm:$0xff]   ;;  %v7533_v21 = vld [vmem:[%s9273_s15 + $0x108] sm:$0xff]   ;;  %v7537_v17 = vld [vmem:[%s9273_s15 + $0x110] sm:$0xff]  }
 0x53a   : > { %v5548_v22 = vrot.slane %v5538_v5, %v8461_v47  ;;  %v5593_v32 = vmul.f32 %v5501_v0, %v9309_v59  ;;  %v5595_v8 = vmul.f32 %v5509_v11, %v9314_v60  ;;  %v7530_v11 = vld [vmem:[%s9273_s15 + $0x180] sm:$0xff]   ;;  %v7540_v13 = vld [vmem:[%s9273_s15 + $0x1d8] sm:$0xff]  }
 0x53b   : > { %v5571_v36 = vcombine.low %v5562_v51, %v5569_v62  ;;  %v5555_v56 = vrot.slane %v5539_v16, %v8461_v47  ;;  %v7541_v55 = vld [vmem:[%s9273_s15 + $0x118] sm:$0xff]   ;;  %v7543_v18 = vld [vmem:[%s9273_s15 + $0x160] sm:$0xff]   ;;  %v7550_v51 = vld [vmem:[%s9273_s15 + $0x1a8] sm:$0xff]  }
 0x53c   : > { %v7542_v12 = vld [vmem:[%s9273_s15 + $0x198] sm:$0xff]   ;;  %v7544_v30 = vld [vmem:[%s9273_s15 + $0x1e0] sm:$0xff]   ;;  %v7551_v62 = vld [vmem:[%s9273_s15 + $0x170] sm:$0xff]  }
 0x53d   : > { %v5585_v63 = vrot.slane %v5571_v36, %v8461_v47  ;;  %v5570_v57 = vcombine.low %v5548_v22, %v5555_v56  ;;  %v7546_v5 = vld [vmem:[%s9273_s15 + $0x1a0] sm:$0xff]   ;;  %v7552_v16 = vld [vmem:[%s9273_s15 + $0x1f0] sm:$0xff]   ;;  %v7557_v36 = vld [vmem:[%s9273_s15 + $0x138] sm:$0xff]  }
 0x53e   : > { %v7554_v22 = vld [vmem:[%s9273_s15 + $0x1b0] sm:$0xff]   ;;  %v7558_v56 = vld [vmem:[%s9273_s15 + $0x1b8] sm:$0xff]  }
 0x53f   : > { %v5578_v7 = vrot.slane %v5570_v57, %v8461_v47 }
 0x541   : > { %v5586_v1 = vcombine.low %v5578_v7, %v5585_v63 }
 0x543   : > { %v5588_v6 = vsub.f32 %v5260_v15, %v5586_v1 }
 0x545   : > { %v5605_v37 = vrot.slane %v5588_v6, %v8516_v23  ;;  %v5613_v58 = vrot.slane %v5588_v6, %v8522_v25  ;;  %v5601_v59 = vrot.slane %v5588_v6, %v8513_v19  ;;  %v5609_v60 = vrot.slane %v5588_v6, %v8519_v24 }
 0x546   : > { %v5621_v44 = vrot.slane %v5588_v6, %v8528_v27  ;;  %v5629_v33 = vrot.slane %v5588_v6, %v8534_v39  ;;  %v5617_v34 = vrot.slane %v5588_v6, %v8525_v26  ;;  %v5625_v47 = vrot.slane %v5588_v6, %v8531_v31 }
 0x547   : > { %v5639_v49 = vadd.f32 %v5605_v37, %v5590_v3  ;;  %v5641_v61 = vadd.f32 %v5613_v58, %v5592_v42  ;;  %v5638_v40 = vadd.f32 %v5601_v59, %v5589_v9  ;;  %v5640_v41 = vadd.f32 %v5609_v60, %v5591_v20  ;;  %v7545_v3 = vld [vmem:[%s9273_s15 + $0x120] sm:$0xff]   ;;  %v7547_v42 = vld [vmem:[%s9273_s15 + $0x168] sm:$0xff]  }
 0x548   : > { %v5643_v23 = vadd.f32 %v5621_v44, %v5594_v14  ;;  %v5645_v25 = vadd.f32 %v5629_v33, %v5596_v45  ;;  %v9379_v4 = vadd.f32 %v5617_v34, %v5593_v32  ;;  %v9381_v19 = vadd.f32 %v5625_v47, %v5595_v8  ;;  %v7538_v45 = vld [vmem:[%s9273_s15 + $0x190] sm:$0xff]   ;;  %v7548_v9 = vld [vmem:[%s9273_s15 + $0x1e8] sm:$0xff]   ;;  %v7555_v32 = vld [vmem:[%s9273_s15 + $0x178] sm:$0xff]  }
 0x549   : > { %v5647_v24 = vmax.f32 %v5639_v49, 0.0  ;;  %v5649_v27 = vmax.f32 %v5641_v61, 0.0  ;;  %v5646_v39 = vmax.f32 %v5638_v40, 0.0  ;;  %v5648_v26 = vmax.f32 %v5640_v41, 0.0  ;;  %v7549_v20 = vld [vmem:[%s9273_s15 + $0x128] sm:$0xff]   ;;  %v7553_v14 = vld [vmem:[%s9273_s15 + $0x130] sm:$0xff]  }
 0x54a   : > { %v5651_v52 = vmax.f32 %v5643_v23, 0.0  ;;  %v5653_v31 = vmax.f32 %v5645_v25, 0.0  ;;  %v7556_v8 = vld [vmem:[%s9273_s15 + $0x1f8] sm:$0xff]   ;;  %v5650_v63 = vmax.f32 %v9379_v4, 0.0  ;;  %v5652_v57 = vmax.f32 %v9381_v19, 0.0 }
 0x54b   : > { %v5656_v43 = vpack.c.bf16 %v5647_v24, %v5647_v24  ;;  %v5658_v50 = vpack.c.bf16 %v5649_v27, %v5649_v27  ;;  %v5655_v54 = vpack.c.bf16 %v5646_v39, %v5646_v39  ;;  %v5657_v0 = vpack.c.bf16 %v5648_v26, %v5648_v26 }
 0x54c   : > { %v5660_v29 = vpack.c.bf16 %v5651_v52, %v5651_v52  ;;  %v5662_v48 = vpack.c.bf16 %v5653_v31, %v5653_v31  ;;  %v5659_v7 = vpack.c.bf16 %v5650_v63, %v5650_v63  ;;  %v5661_v15 = vpack.c.bf16 %v5652_v57, %v5652_v57 }
 0x54d   : > { %6207 = vmatprep.mubr.bf16.mxu0 %v5656_v43  ;;  %6247 = vmatprep.mubr.bf16.mxu1 %v5658_v50 }
 0x54e   : > { %6208 = vmatmul.mubr.bf16.vlgmr.msra.gmra.mrb[16].mxu0 %v5655_v54  ;;  %6248 = vmatmul.mubr.bf16.vlgmr.msra.gmra.mrb[16].mxu1 %v5657_v0 }
 0x54f   : > { %7278 = vmatpush3.bf16.msra.mxu0 %v7529_v46  ;;  %7300 = vmatpush3.bf16.msra.mxu1 %v7530_v11 }
 0x550   : > { %6287 = vmatprep.mubr.bf16.mxu0 %v5660_v29  ;;  %6327 = vmatprep.mubr.bf16.mxu1 %v5662_v48 }
 0x551   : > { %7279 = vmatprep.subr.bf16.mxu0 %v7531_v53  ;;  %7301 = vmatprep.subr.bf16.mxu1 %v7532_v28 }
 0x553   : > { %7280 = vmatpush3.bf16.msra.mxu0 %v7533_v21  ;;  %7302 = vmatpush3.bf16.msra.mxu1 %v7534_v10 }
 0x554   : > { %7281 = vmatprep.subr.bf16.mxu0 %v7535_v2  ;;  %7303 = vmatprep.subr.bf16.mxu1 %v7536_v35 }
 0x557   : > { %7282 = vmatpush3.bf16.msra.mxu0 %v7537_v17  ;;  %7304 = vmatpush3.bf16.msra.mxu1 %v7538_v45 }
 0x558   : > { %7283 = vmatprep.subr.bf16.mxu0 %v7539_v38  ;;  %7305 = vmatprep.subr.bf16.mxu1 %v7540_v13 }
 0x55b   : > { %7284 = vmatpush3.bf16.msra.mxu0 %v7541_v55  ;;  %7306 = vmatpush3.bf16.msra.mxu1 %v7542_v12 }
 0x55c   : > { %7285 = vmatprep.subr.bf16.mxu0 %v7543_v18  ;;  %7307 = vmatprep.subr.bf16.mxu1 %v7544_v30 }
 0x55f   : > { %7286 = vmatpush3.bf16.msra.mxu0 %v7545_v3  ;;  %7308 = vmatpush3.bf16.msra.mxu1 %v7546_v5 }
 0x560   : > { %7287 = vmatprep.subr.bf16.mxu0 %v7547_v42  ;;  %7309 = vmatprep.subr.bf16.mxu1 %v7548_v9 }
 0x563   : > { %7288 = vmatpush3.bf16.msra.mxu0 %v7549_v20  ;;  %7310 = vmatpush3.bf16.msra.mxu1 %v7550_v51 }
 0x564   : > { %7289 = vmatprep.subr.bf16.mxu0 %v7551_v62  ;;  %7311 = vmatprep.subr.bf16.mxu1 %v7552_v16 }
 0x567   : > { %7290 = vmatpush3.bf16.msra.mxu0 %v7553_v14  ;;  %7312 = vmatpush3.bf16.msra.mxu1 %v7554_v22 }
 0x568   : > { %7291 = vmatprep.subr.bf16.mxu0 %v7555_v32  ;;  %7313 = vmatprep.subr.bf16.mxu1 %v7556_v8 }
 0x56b   : > { %7292 = vmatpush3.bf16.msra.mxu0 %v7557_v36  ;;  %7314 = vmatpush3.bf16.msra.mxu1 %v7558_v56 }
 0x56e   : > { %6288 = vmatmul.mubr.bf16.vlgmr.msra.gmra.mrb[20].mxu0 %v5659_v7  ;;  %6328 = vmatmul.mubr.bf16.vlgmr.msra.gmra.mrb[20].mxu1 %v5661_v15 }
 0x621   : > { %v7249_v1 = vpop.f32.mrb[16].mxu0  ;;  %v7271_v6 = vpop.f32.mrb[16].mxu1 }
 0x622   : > { %v7250_v37 = vpop.f32.mrb[17].mxu0  ;;  %v7272_v58 = vpop.f32.mrb[17].mxu1 }
 0x623   : > { %v7251_v59 = vadd.f32 %v7250_v37, %v7249_v1  ;;  %v7273_v60 = vadd.f32 %v7272_v58, %v7271_v6  ;;  %v7252_v44 = vpop.f32.mrb[18].mxu0  ;;  %v7274_v33 = vpop.f32.mrb[18].mxu1 }
 0x624   : > { %v7253_v34 = vpop.f32.mrb[19].mxu0  ;;  %v7275_v47 = vpop.f32.mrb[19].mxu1 }
 0x625   : > { %v6250_v49 = vadd.f32 %v7273_v60, %v7251_v59 }
 0x641   : > { %v7293_v61 = vpop.f32.mrb[20].mxu0  ;;  %v7315_v40 = vpop.f32.mrb[20].mxu1 }
 0x642   : > { %v7294_v41 = vpop.f32.mrb[21].mxu0  ;;  %v7316_v23 = vpop.f32.mrb[21].mxu1 }
 0x643   : > { %v7295_v25 = vadd.f32 %v7294_v41, %v7293_v61  ;;  %v7317_v4 = vadd.f32 %v7316_v23, %v7315_v40  ;;  %v7296_v19 = vpop.f32.mrb[22].mxu0  ;;  %v7318_v24 = vpop.f32.mrb[22].mxu1 }
 0x644   : > { %v7297_v27 = vpop.f32.mrb[23].mxu0  ;;  %v7319_v39 = vpop.f32.mrb[23].mxu1 }
 0x645   : > { %v6290_v26 = vadd.f32 %v7295_v25, %v6250_v49 }
 0x647   : > { %v6330_v52 = vadd.f32 %v7317_v4, %v6290_v26 }
 0x649   : > { %6336 = vst [vmem:[%s504_s24] sm:$0xff] %v6330_v52 }
 0x64a   : > { %7836 = shalt.err (!%p7833_p6)
}
 0x64b   : > { %s7837_s18 = scalar_lea.hbm %s9420_s20, 128  ;;  %s7841_s26 = scalar_lea.hbm %s9560_s16, 256 }
 0x64c   : > { %p7838_p5 = scmp.ne.s32.totalorder %s9420_s20, %s7837_s18  ;;  %p7842_p1 = scmp.lt.u32.totalorder %s9420_s20, %s9560_s16 }
 0x64d   : > { %p7843_p11 = scmp.lt.u32.totalorder %s7841_s26, %s7837_s18  ;;  %p7845_p7 = scmp.lt.u32.totalorder %s7837_s18, %s9420_s20 }
 0x64e   : > { %p7839_p2 = pnand %p7838_p5, %p9561_p8 }
 0x64f   : > { %p7844_p0 = por %p7843_p11, %p7842_p1 }
 0x650   : > { %p7840_p10 = pneg %p7839_p2 }
 0x651   : > { %p7846_p12 = por %p7845_p7, %p7844_p0 }
 0x653   : > { %p7847_p3 = pnand %p7846_p12, %p7840_p10 }
 0x655   : > { %7850 = shalt.err (!%p7847_p3)
}
 0x656   : > { %7393 = dma.vmem_to_hbm [thread:$0]  (%p9561_p8), %s9422_s30, 128, %s9420_s20, %s6338_s25  }
 0x657 PF: > { %s9562_s15 = sld [smem:[#allocation21_spill]]  ;;  %s9563_s27 = sld [smem:[#allocation26_spill]] }
 0x658   : > { %s9564_s4 = sld [smem:[#allocation24_spill]] }
 0x65d   : > { %s6363_s17 = sand.u32 1, %s9562_s15   ;;  %p9565_p13 = scmp.ne.s32.totalorder %s9563_s27, 0 }
 0x65e   : > { %p9566_p9 = scmp.ge.s32.totalorder %s9564_s4, 2  ;;  %s6364_s13 = scalar_lea.sflag [#allocation5], %s6363_s17 }
 0x660   : > { %p7422_p4 = pnand %p9566_p9, %p9565_p13 }
 0x662   : > { %7892 = dma.done.wait (!%p7422_p4), %s6364_s13, 128  }
 0x663   : > { %7894 = vsyncadd (!%p7422_p4), %s6364_s13, 4294967168  ;;  %s24_s10 = sadd.s32 1, %s9564_s4   ;;  %s9567_s22 = sld [smem:[#allocation22_spill]] }
 0x664   : > { %p21_p6 = scmp.ge.s32.totalorder %s24_s10, 4   ;;  %s9568_s29 = sld [smem:[#allocation28_spill]] }
 0x665   : > { %s9569_s5 = sld [smem:[#allocation27_spill]]  ;;  %s9570_s27 = smov %s7901_s28 }
 0x666   : > { %s9572_s30 = smov %s7913_s9  ;;  %23 = sbr.rel (!%p21_p6) target bundleno = 12 (0xc), region = 149 }
 0x669   : > { %s9571_s28 = smov %s9567_s22 }
 0x66b   : > { %s9573_s9 = smov %s9569_s5 }
 0x66d   :  { %6369 = vsyncpa [#allocation4], 1 }
 0x66e   :  { %6371 = vsyncpa [#allocation4 + $0x1], 1 }
 0x66f   :  { %6372 = vsyncpa [#allocation7], 1 }
 0x670   :  { %6373 = vsyncpa [#allocation10], 1 }
 0x671   :  { %6374 = vsyncpa [#allocation5], 1 }
 0x672   :  { %6376 = vsyncpa [#allocation5 + $0x1], 1 }

</bundles_post_ra>
